<compile_context>
chip_gen: v7x
topology: tpu7x:2x2x1
jax: 0.10.0
libtpu: 0.0.40
codegen_flags: <defaults>
</compile_context>

<pallas_src>
import math
import functools

import jax
import jax.numpy as jnp
from jax.experimental import pallas as pl
from jax.experimental.pallas import tpu as pltpu


# ----------------------------- Pallas kernel ---------------------------------


def _layernorm(x, gamma, beta, eps=1e-5):
    mean = jnp.mean(x, axis=-1, keepdims=True)
    var = jnp.mean(jnp.square(x - mean), axis=-1, keepdims=True)
    return (x - mean) * jax.lax.rsqrt(var + eps) * gamma + beta


def decoder_layer_kernel(
    # activations (bf16): x full target sequence, encoder output
    x_ref, enc_ref,
    # self-attention params: Wq (scale-folded), bq, fused Wk|Wv, bk|bv, Wo, bo
    sWq, sbq, sWkv, sbkv, sWo, sbo,
    # cross-attention params
    cWq, cbq, cWkv, cbkv, cWo, cbo,
    # feed-forward params
    W1, b1, W2, b2,
    # layernorm params (each (1, D), f32)
    g1, be1, g2, be2, g3, be3,
    # output
    out_ref,
    # persistent VMEM scratch: per-batch K/V caches, head-major bf16
    k_self, v_self, k_cross, v_cross,
    *, num_heads: int, t_tile: int,
):
    d_model = x_ref.shape[-1]
    d_k = d_model // num_heads
    t = pl.program_id(1)

    def fill_kv_cache(src_bf16, Wkv, bkv, k_dst, v_dst):
        # One fused (N, D) x (D, 2D) projection per input, then a single
        # head-major relayout into the persistent cache.
        n = src_bf16.shape[0]
        kv = jnp.dot(src_bf16, Wkv[...],
                     preferred_element_type=jnp.float32) + bkv[...]   # (N, 2D) f32
        k = kv[:, :d_model].astype(jnp.bfloat16).reshape(n, num_heads, d_k)
        v = kv[:, d_model:].astype(jnp.bfloat16).reshape(n, num_heads, d_k)
        k_dst[...] = jnp.transpose(k, (1, 0, 2))                      # (H, N, d_k)
        v_dst[...] = jnp.transpose(v, (1, 0, 2))

    # K/V projections depend only on the batch element -> compute once per batch
    # (first query tile) and reuse the cached result for all later tiles.
    @pl.when(t == 0)
    def _():
        fill_kv_cache(x_ref[0], sWkv, sbkv, k_self, v_self)
        fill_kv_cache(enc_ref[0], cWkv, cbkv, k_cross, v_cross)

    # Query tile: sliced from the (already resident) full-sequence x block.
    start = pl.multiple_of(t * t_tile, t_tile)
    xq = x_ref[0, pl.ds(start, t_tile), :]                            # (t_tile, D) bf16

    def attend(q_in_bf16, Wq, bq, k_cache, v_cache, Wo, bo):
        # 1/sqrt(d_k) is pre-folded into Wq/bq by prepare_params().
        q = jnp.dot(q_in_bf16, Wq[...],
                    preferred_element_type=jnp.float32) + bq[...]     # (t_tile, D)
        qh = jnp.transpose(
            q.astype(jnp.bfloat16).reshape(t_tile, num_heads, d_k), (1, 0, 2))
        kh = k_cache[...]                                             # (H, N, d_k)
        vh = v_cache[...]
        s = jnp.einsum("hqd,hkd->hqk", qh, kh,
                       preferred_element_type=jnp.float32)            # (H, t_tile, N)
        # TODO(synk): optional src/tgt masks (mask==0 -> -1e9) are not wired in;
        # only the PyTorch forward's default (mask=None) path is implemented.
        # TODO(synk): for long T/S, switch to flash-style online-softmax KV
        # chunking so the score matrix / caches stay bounded in VMEM.
        s = s - jnp.max(s, axis=-1, keepdims=True)
        e = jnp.exp(s)
        # approx=True keeps the divide on the EUP; use approx=False for tighter
        # parity with the f32 reference if required.
        p = e * pl.reciprocal(jnp.sum(e, axis=-1, keepdims=True), approx=True)
        ctx = jnp.einsum("hqk,hkd->hqd", p.astype(jnp.bfloat16), vh,
                         preferred_element_type=jnp.float32)          # (H, t_tile, d_k)
        o = jnp.transpose(ctx.astype(jnp.bfloat16), (1, 0, 2)).reshape(t_tile, d_model)
        return jnp.dot(o, Wo[...], preferred_element_type=jnp.float32) + bo[...]

    # 1) self-attention + residual + norm1   (dropout = identity, eval mode)
    a = attend(xq, sWq, sbq, k_self, v_self, sWo, sbo)
    x1 = _layernorm(xq.astype(jnp.float32) + a, g1[...], be1[...])

    # 2) cross-attention + residual + norm2
    a2 = attend(x1.astype(jnp.bfloat16), cWq, cbq, k_cross, v_cross, cWo, cbo)
    x2 = _layernorm(x1 + a2, g2[...], be2[...])

    # 3) position-wise feed-forward + residual + norm3
    # TODO(synk): chunk the FFN over d_ff (extra "arbitrary" grid axis slicing
    # W1/W2) for production-sized d_ff; at demo sizes it fits VMEM comfortably.
    h = jnp.maximum(
        jnp.dot(x2.astype(jnp.bfloat16), W1[...],
                preferred_element_type=jnp.float32) + b1[...], 0.0)
    ff = jnp.dot(h.astype(jnp.bfloat16), W2[...],
                 preferred_element_type=jnp.float32) + b2[...]
    x3 = _layernorm(x2 + ff, g3[...], be3[...])

    out_ref[0] = x3.astype(out_ref.dtype)


# ------------------------------ wrapper ---------------------------------------


def prepare_params(params, num_heads):
    """One-time weight prep (hoisted out of the per-call forward): fuse Wk|Wv into
    (D, 2D) matrices, fold 1/sqrt(d_k) into Wq/bq, cast matmul weights to bf16."""
    d_model = params["self_Wq"].shape[0]
    scale = 1.0 / math.sqrt(d_model // num_heads)

    def bf(w):
        return w.astype(jnp.bfloat16)

    def attn(prefix):
        return (
            bf(params[f"{prefix}_Wq"] * scale), params[f"{prefix}_bq"] * scale,
            bf(jnp.concatenate(
                [params[f"{prefix}_Wk"], params[f"{prefix}_Wv"]], axis=1)),
            jnp.concatenate(
                [params[f"{prefix}_bk"], params[f"{prefix}_bv"]], axis=1),
            bf(params[f"{prefix}_Wo"]), params[f"{prefix}_bo"],
        )

    return attn("self") + attn("cross") + (
        bf(params["ffn_W1"]), params["ffn_b1"],
        bf(params["ffn_W2"]), params["ffn_b2"],
        params["ln1_g"], params["ln1_b"],
        params["ln2_g"], params["ln2_b"],
        params["ln3_g"], params["ln3_b"],
    )


def _vmem_limit_bytes():
    # Generation-aware VMEM cap: ~3/4 of physical capacity (~96 MiB on the
    # 128-MiB v5e/v6e parts, ~48 MiB on 64-MiB v7x), with a safe fallback.
    try:
        cap = getattr(pltpu.get_tpu_info(), "vmem_capacity_bytes", None)
        if cap:
            return min(int(cap) * 3 // 4, 112 * 1024 * 1024)
    except Exception:
        pass
    return 48 * 1024 * 1024


def decoder_layer_forward(x, encoder_output, prepared_params, num_heads, *,
                          t_tile=128, single_buffer=True):
    """x: (B, T, D), encoder_output: (B, S, D); returns (B, T, D) f32."""
    B, T, D = x.shape
    _, S, _ = encoder_output.shape
    assert D % num_heads == 0
    t_tile = min(t_tile, T)
    assert T % t_tile == 0, "t_tile must divide T"
    n_t = T // t_tile
    d_k = D // num_heads

    # Activations travel to the kernel in bf16 (halves HBM->VMEM traffic); the
    # small residual path is upcast back to f32 inside the kernel.
    x_bf16 = x.astype(jnp.bfloat16)
    enc_bf16 = encoder_output.astype(jnp.bfloat16)

    # Grid-invariant params and the per-batch full-sequence blocks gain nothing
    # from double buffering -> request single buffering (halves their VMEM).
    sb_kwargs = ({"pipeline_mode": pl.Buffered(buffer_count=1)}
                 if single_buffer else {})

    def param_spec(shape):
        nd = len(shape)
        return pl.BlockSpec(shape, lambda b, t, _nd=nd: (0,) * _nd, **sb_kwargs)

    in_specs = [
        pl.BlockSpec((1, T, D), lambda b, t: (b, 0, 0), **sb_kwargs),  # x (full seq)
        pl.BlockSpec((1, S, D), lambda b, t: (b, 0, 0), **sb_kwargs),  # encoder out
    ] + [param_spec(p.shape) for p in prepared_params]

    kernel = functools.partial(decoder_layer_kernel,
                               num_heads=num_heads, t_tile=t_tile)

    return pl.pallas_call(
        kernel,
        out_shape=jax.ShapeDtypeStruct((B, T, D), jnp.float32),
        grid_spec=pltpu.PrefetchScalarGridSpec(
            num_scalar_prefetch=0,
            grid=(B, n_t),
            in_specs=in_specs,
            out_specs=pl.BlockSpec((1, t_tile, D), lambda b, t: (b, t, 0)),
            scratch_shapes=[
                pltpu.VMEM((num_heads, T, d_k), jnp.bfloat16),  # self-attn K cache
                pltpu.VMEM((num_heads, T, d_k), jnp.bfloat16),  # self-attn V cache
                pltpu.VMEM((num_heads, S, d_k), jnp.bfloat16),  # cross-attn K cache
                pltpu.VMEM((num_heads, S, d_k), jnp.bfloat16),  # cross-attn V cache
            ],
        ),
        compiler_params=pltpu.CompilerParams(
            # t reuses the per-batch K/V caches -> sequential ("arbitrary");
            # batch stays "parallel" so megacore parts still split work.
            dimension_semantics=("parallel", "arbitrary"),
            vmem_limit_bytes=_vmem_limit_bytes(),
        ),
    )(x_bf16, enc_bf16, *prepared_params)


# --------------------------- parameter init -----------------------------------


def init_params(key, d_model, d_ff):
    ks = jax.random.split(key, 16)

    def lin(k, fan_in, fan_out):
        # stored pre-transposed: (in, out); torch Linear is y = x @ W.T + b
        return jax.random.normal(k, (fan_in, fan_out), jnp.float32) * 0.05

    def bias(k, n):
        return jax.random.normal(k, (1, n), jnp.float32) * 0.02

    p = {}
    names = ["self_Wq", "self_Wk", "self_Wv", "self_Wo",
             "cross_Wq", "cross_Wk", "cross_Wv", "cross_Wo"]
    bnames = ["self_bq", "self_bk", "self_bv", "self_bo",
              "cross_bq", "cross_bk", "cross_bv", "cross_bo"]
    for i, (wn, bn) in enumerate(zip(names, bnames)):
        p[wn] = lin(ks[i], d_model, d_model)
        p[bn] = bias(ks[i + 8], d_model)
    k1, k2, k3, k4 = jax.random.split(ks[15], 4)
    p["ffn_W1"] = lin(k1, d_model, d_ff)
    p["ffn_b1"] = bias(k2, d_ff)
    p["ffn_W2"] = lin(k3, d_ff, d_model)
    p["ffn_b2"] = bias(k4, d_model)
    for i in (1, 2, 3):
        p[f"ln{i}_g"] = jnp.ones((1, d_model), jnp.float32)
        p[f"ln{i}_b"] = jnp.zeros((1, d_model), jnp.float32)
    return p


# --------------------------- plain-JAX reference -------------------------------


def reference_forward(x, enc, p, num_heads):
    D = x.shape[-1]
    d_k = D // num_heads

    def ln(v, g, b):
        m = jnp.mean(v, -1, keepdims=True)
        var = jnp.mean((v - m) ** 2, -1, keepdims=True)
        return (v - m) / jnp.sqrt(var + 1e-5) * g + b

    def mha(q_in, kv_in, pre):
        B, T, _ = q_in.shape
        S = kv_in.shape[1]
        q = q_in @ p[f"{pre}_Wq"] + p[f"{pre}_bq"]
        k = kv_in @ p[f"{pre}_Wk"] + p[f"{pre}_bk"]
        v = kv_in @ p[f"{pre}_Wv"] + p[f"{pre}_bv"]
        q = q.reshape(B, T, num_heads, d_k).transpose(0, 2, 1, 3)
        k = k.reshape(B, S, num_heads, d_k).transpose(0, 2, 1, 3)
        v = v.reshape(B, S, num_heads, d_k).transpose(0, 2, 1, 3)
        s = jnp.einsum("bhtd,bhsd->bhts", q, k) / math.sqrt(d_k)
        a = jax.nn.softmax(s, axis=-1)
        o = jnp.einsum("bhts,bhsd->bhtd", a, v)
        o = o.transpose(0, 2, 1, 3).reshape(B, T, D)
        return o @ p[f"{pre}_Wo"] + p[f"{pre}_bo"]

    a = mha(x, x, "self")
    x1 = ln(x + a, p["ln1_g"], p["ln1_b"])
    a2 = mha(x1, enc, "cross")
    x2 = ln(x1 + a2, p["ln2_g"], p["ln2_b"])
    ff = jnp.maximum(x2 @ p["ffn_W1"] + p["ffn_b1"], 0.0) @ p["ffn_W2"] + p["ffn_b2"]
    return ln(x2 + ff, p["ln3_g"], p["ln3_b"])


# ----------------------------------- main --------------------------------------


if __name__ == "__main__":
    # Small but lane-dense demo shapes: d_model = 128 (one full lane width).
    B, T, S = 2, 16, 16         # batch, target seq, source seq
    D, H, FF = 128, 4, 256      # d_model, num_heads, d_ff

    key = jax.random.PRNGKey(0)
    kx, ke, kp = jax.random.split(key, 3)
    x = jax.random.normal(kx, (B, T, D), jnp.float32)
    enc = jax.random.normal(ke, (B, S, D), jnp.float32)
    params = init_params(kp, D, FF)
    prepared = prepare_params(params, num_heads=H)   # one-time weight preparation

    # t_tile=8 -> 2 query tiles per batch element, exercising the per-batch
    # K/V cache reuse; production sizes would use 128-256.
    fwd = functools.partial(decoder_layer_forward, x, enc, prepared, H, t_tile=8)
    try:
        out = jax.block_until_ready(fwd(single_buffer=True))
    except (pltpu.LoweringException, NotImplementedError,
            ValueError, TypeError, RuntimeError):
        # pl.Buffered(1) single-buffering may be rejected on some JAX builds; the
        # fallback only changes buffering depth, and either path's result is
        # validated against the pure-JAX reference below.
        out = jax.block_until_ready(fwd(single_buffer=False))

    ref = reference_forward(x, enc, params, num_heads=H)
    assert out.shape == (B, T, D)
    max_err = float(jnp.max(jnp.abs(out - ref)))
    # bf16 activations + bf16 MXU matmuls (f32 accumulation) vs. pure-f32 reference.
    assert jnp.allclose(out, ref, atol=5e-2, rtol=5e-2), \
        f"mismatch vs. JAX reference (max abs err {max_err})"

    print("KERNEL_OK")
</pallas_src>

<mosaic_0001>
module attributes {stable_mosaic.version = 11 : i64} {
  func.func @decoder_layer_kernel(%arg0: i32, %arg1: i32, %arg2: memref<1x16x128xbf16, #tpu.memory_space<vmem>>, %arg3: memref<1x16x128xbf16, #tpu.memory_space<vmem>>, %arg4: memref<128x128xbf16, #tpu.memory_space<vmem>>, %arg5: memref<1x128xf32, #tpu.memory_space<vmem>>, %arg6: memref<128x256xbf16, #tpu.memory_space<vmem>>, %arg7: memref<1x256xf32, #tpu.memory_space<vmem>>, %arg8: memref<128x128xbf16, #tpu.memory_space<vmem>>, %arg9: memref<1x128xf32, #tpu.memory_space<vmem>>, %arg10: memref<128x128xbf16, #tpu.memory_space<vmem>>, %arg11: memref<1x128xf32, #tpu.memory_space<vmem>>, %arg12: memref<128x256xbf16, #tpu.memory_space<vmem>>, %arg13: memref<1x256xf32, #tpu.memory_space<vmem>>, %arg14: memref<128x128xbf16, #tpu.memory_space<vmem>>, %arg15: memref<1x128xf32, #tpu.memory_space<vmem>>, %arg16: memref<128x256xbf16, #tpu.memory_space<vmem>>, %arg17: memref<1x256xf32, #tpu.memory_space<vmem>>, %arg18: memref<256x128xbf16, #tpu.memory_space<vmem>>, %arg19: memref<1x128xf32, #tpu.memory_space<vmem>>, %arg20: memref<1x128xf32, #tpu.memory_space<vmem>>, %arg21: memref<1x128xf32, #tpu.memory_space<vmem>>, %arg22: memref<1x128xf32, #tpu.memory_space<vmem>>, %arg23: memref<1x128xf32, #tpu.memory_space<vmem>>, %arg24: memref<1x128xf32, #tpu.memory_space<vmem>>, %arg25: memref<1x128xf32, #tpu.memory_space<vmem>>, %arg26: memref<1x8x128xf32, #tpu.memory_space<vmem>>, %arg27: memref<4x16x32xbf16, #tpu.memory_space<vmem>>, %arg28: memref<4x16x32xbf16, #tpu.memory_space<vmem>>, %arg29: memref<4x16x32xbf16, #tpu.memory_space<vmem>>, %arg30: memref<4x16x32xbf16, #tpu.memory_space<vmem>>) attributes {dimension_semantics = [#tpu.dimension_semantics<parallel>, #tpu.dimension_semantics<arbitrary>], iteration_bounds = array<i64: 2, 2>, scalar_prefetch = 0 : i64, scratch_operands = 4 : i64, tpu.core_type = #tpu.core_type<tc>, window_params = [{pipeline_mode = #tpu.pipeline_mode<synchronous>, transform_indices = @transform_0, window_bounds = array<i64: 1, 16, 128>}, {pipeline_mode = #tpu.pipeline_mode<synchronous>, transform_indices = @transform_1, window_bounds = array<i64: 1, 16, 128>}, {pipeline_mode = #tpu.pipeline_mode<synchronous>, transform_indices = @transform_2, window_bounds = array<i64: 128, 128>}, {pipeline_mode = #tpu.pipeline_mode<synchronous>, transform_indices = @transform_3, window_bounds = array<i64: 1, 128>}, {pipeline_mode = #tpu.pipeline_mode<synchronous>, transform_indices = @transform_4, window_bounds = array<i64: 128, 256>}, {pipeline_mode = #tpu.pipeline_mode<synchronous>, transform_indices = @transform_5, window_bounds = array<i64: 1, 256>}, {pipeline_mode = #tpu.pipeline_mode<synchronous>, transform_indices = @transform_6, window_bounds = array<i64: 128, 128>}, {pipeline_mode = #tpu.pipeline_mode<synchronous>, transform_indices = @transform_7, window_bounds = array<i64: 1, 128>}, {pipeline_mode = #tpu.pipeline_mode<synchronous>, transform_indices = @transform_8, window_bounds = array<i64: 128, 128>}, {pipeline_mode = #tpu.pipeline_mode<synchronous>, transform_indices = @transform_9, window_bounds = array<i64: 1, 128>}, {pipeline_mode = #tpu.pipeline_mode<synchronous>, transform_indices = @transform_10, window_bounds = array<i64: 128, 256>}, {pipeline_mode = #tpu.pipeline_mode<synchronous>, transform_indices = @transform_11, window_bounds = array<i64: 1, 256>}, {pipeline_mode = #tpu.pipeline_mode<synchronous>, transform_indices = @transform_12, window_bounds = array<i64: 128, 128>}, {pipeline_mode = #tpu.pipeline_mode<synchronous>, transform_indices = @transform_13, window_bounds = array<i64: 1, 128>}, {pipeline_mode = #tpu.pipeline_mode<synchronous>, transform_indices = @transform_14, window_bounds = array<i64: 128, 256>}, {pipeline_mode = #tpu.pipeline_mode<synchronous>, transform_indices = @transform_15, window_bounds = array<i64: 1, 256>}, {pipeline_mode = #tpu.pipeline_mode<synchronous>, transform_indices = @transform_16, window_bounds = array<i64: 256, 128>}, {pipeline_mode = #tpu.pipeline_mode<synchronous>, transform_indices = @transform_17, window_bounds = array<i64: 1, 128>}, {pipeline_mode = #tpu.pipeline_mode<synchronous>, transform_indices = @transform_18, window_bounds = array<i64: 1, 128>}, {pipeline_mode = #tpu.pipeline_mode<synchronous>, transform_indices = @transform_19, window_bounds = array<i64: 1, 128>}, {pipeline_mode = #tpu.pipeline_mode<synchronous>, transform_indices = @transform_20, window_bounds = array<i64: 1, 128>}, {pipeline_mode = #tpu.pipeline_mode<synchronous>, transform_indices = @transform_21, window_bounds = array<i64: 1, 128>}, {pipeline_mode = #tpu.pipeline_mode<synchronous>, transform_indices = @transform_22, window_bounds = array<i64: 1, 128>}, {pipeline_mode = #tpu.pipeline_mode<synchronous>, transform_indices = @transform_23, window_bounds = array<i64: 1, 128>}, {transform_indices = @transform_24, window_bounds = array<i64: 1, 8, 128>}]} {
    %c0_i32 = arith.constant 0 : i32
    %0 = arith.cmpi eq, %arg1, %c0_i32 : i32
    %1 = arith.extui %0 : i1 to i32
    %c0_i32_0 = arith.constant 0 : i32
    %2 = arith.cmpi ne, %1, %c0_i32_0 : i32
    scf.if %2 {
      %c0_82 = arith.constant 0 : index
      %c0_83 = arith.constant 0 : index
      %c0_84 = arith.constant 0 : index
      %164 = vector.load %arg2[%c0_82, %c0_83, %c0_84] : memref<1x16x128xbf16, #tpu.memory_space<vmem>>, vector<1x16x128xbf16>
      %165 = vector.shape_cast %164 : vector<1x16x128xbf16> to vector<16x128xbf16>
      %c0_85 = arith.constant 0 : index
      %c0_86 = arith.constant 0 : index
      %166 = vector.load %arg6[%c0_85, %c0_86] : memref<128x256xbf16, #tpu.memory_space<vmem>>, vector<128x256xbf16>
      %cst_87 = arith.constant dense<0.000000e+00> : vector<16x256xf32>
      %167 = tpu.matmul %165, %166, %cst_87 {dimension_numbers = #tpu.dot_dimension_numbers<[1], [0], [0], [1], [0, 0, 1, 1], [], []>} : vector<16x128xbf16>, vector<128x256xbf16>, vector<16x256xf32> -> vector<16x256xf32>
      %c0_88 = arith.constant 0 : index
      %c0_89 = arith.constant 0 : index
      %168 = vector.load %arg7[%c0_88, %c0_89] : memref<1x256xf32, #tpu.memory_space<vmem>>, vector<1x256xf32>
      %169 = vector.broadcast %168 : vector<1x256xf32> to vector<16x256xf32>
      %170 = arith.addf %167, %169 : vector<16x256xf32>
      %171 = vector.extract_strided_slice %170 {offsets = [0, 0], sizes = [16, 128], strides = [1, 1]} : vector<16x256xf32> to vector<16x128xf32>
      %172 = arith.truncf %171 : vector<16x128xf32> to vector<16x128xbf16>
      %173 = vector.shape_cast %172 : vector<16x128xbf16> to vector<16x4x32xbf16>
      %174 = vector.extract_strided_slice %170 {offsets = [0, 128], sizes = [16, 128], strides = [1, 1]} : vector<16x256xf32> to vector<16x128xf32>
      %175 = arith.truncf %174 : vector<16x128xf32> to vector<16x128xbf16>
      %176 = vector.shape_cast %175 : vector<16x128xbf16> to vector<16x4x32xbf16>
      %177 = tpu.transpose %173, [1, 0, 2] : vector<16x4x32xbf16> -> vector<4x16x32xbf16>
      %c0_90 = arith.constant 0 : index
      %c0_91 = arith.constant 0 : index
      %c0_92 = arith.constant 0 : index
      %178 = vector.load %arg27[%c0_90, %c0_91, %c0_92] : memref<4x16x32xbf16, #tpu.memory_space<vmem>>, vector<4x16x32xbf16>
      tpu.vector_store %arg27[%c0_90, %c0_91, %c0_92], %177 {strides = array<i32>} : memref<4x16x32xbf16, #tpu.memory_space<vmem>>, vector<4x16x32xbf16>,
      %179 = tpu.transpose %176, [1, 0, 2] : vector<16x4x32xbf16> -> vector<4x16x32xbf16>
      %c0_93 = arith.constant 0 : index
      %c0_94 = arith.constant 0 : index
      %c0_95 = arith.constant 0 : index
      %180 = vector.load %arg28[%c0_93, %c0_94, %c0_95] : memref<4x16x32xbf16, #tpu.memory_space<vmem>>, vector<4x16x32xbf16>
      tpu.vector_store %arg28[%c0_93, %c0_94, %c0_95], %179 {strides = array<i32>} : memref<4x16x32xbf16, #tpu.memory_space<vmem>>, vector<4x16x32xbf16>,
      %c0_96 = arith.constant 0 : index
      %c0_97 = arith.constant 0 : index
      %c0_98 = arith.constant 0 : index
      %181 = vector.load %arg3[%c0_96, %c0_97, %c0_98] : memref<1x16x128xbf16, #tpu.memory_space<vmem>>, vector<1x16x128xbf16>
      %182 = vector.shape_cast %181 : vector<1x16x128xbf16> to vector<16x128xbf16>
      %c0_99 = arith.constant 0 : index
      %c0_100 = arith.constant 0 : index
      %183 = vector.load %arg12[%c0_99, %c0_100] : memref<128x256xbf16, #tpu.memory_space<vmem>>, vector<128x256xbf16>
      %cst_101 = arith.constant dense<0.000000e+00> : vector<16x256xf32>
      %184 = tpu.matmul %182, %183, %cst_101 {dimension_numbers = #tpu.dot_dimension_numbers<[1], [0], [0], [1], [0, 0, 1, 1], [], []>} : vector<16x128xbf16>, vector<128x256xbf16>, vector<16x256xf32> -> vector<16x256xf32>
      %c0_102 = arith.constant 0 : index
      %c0_103 = arith.constant 0 : index
      %185 = vector.load %arg13[%c0_102, %c0_103] : memref<1x256xf32, #tpu.memory_space<vmem>>, vector<1x256xf32>
      %186 = vector.broadcast %185 : vector<1x256xf32> to vector<16x256xf32>
      %187 = arith.addf %184, %186 : vector<16x256xf32>
      %188 = vector.extract_strided_slice %187 {offsets = [0, 0], sizes = [16, 128], strides = [1, 1]} : vector<16x256xf32> to vector<16x128xf32>
      %189 = arith.truncf %188 : vector<16x128xf32> to vector<16x128xbf16>
      %190 = vector.shape_cast %189 : vector<16x128xbf16> to vector<16x4x32xbf16>
      %191 = vector.extract_strided_slice %187 {offsets = [0, 128], sizes = [16, 128], strides = [1, 1]} : vector<16x256xf32> to vector<16x128xf32>
      %192 = arith.truncf %191 : vector<16x128xf32> to vector<16x128xbf16>
      %193 = vector.shape_cast %192 : vector<16x128xbf16> to vector<16x4x32xbf16>
      %194 = tpu.transpose %190, [1, 0, 2] : vector<16x4x32xbf16> -> vector<4x16x32xbf16>
      %c0_104 = arith.constant 0 : index
      %c0_105 = arith.constant 0 : index
      %c0_106 = arith.constant 0 : index
      %195 = vector.load %arg29[%c0_104, %c0_105, %c0_106] : memref<4x16x32xbf16, #tpu.memory_space<vmem>>, vector<4x16x32xbf16>
      tpu.vector_store %arg29[%c0_104, %c0_105, %c0_106], %194 {strides = array<i32>} : memref<4x16x32xbf16, #tpu.memory_space<vmem>>, vector<4x16x32xbf16>,
      %196 = tpu.transpose %193, [1, 0, 2] : vector<16x4x32xbf16> -> vector<4x16x32xbf16>
      %c0_107 = arith.constant 0 : index
      %c0_108 = arith.constant 0 : index
      %c0_109 = arith.constant 0 : index
      %197 = vector.load %arg30[%c0_107, %c0_108, %c0_109] : memref<4x16x32xbf16, #tpu.memory_space<vmem>>, vector<4x16x32xbf16>
      tpu.vector_store %arg30[%c0_107, %c0_108, %c0_109], %196 {strides = array<i32>} : memref<4x16x32xbf16, #tpu.memory_space<vmem>>, vector<4x16x32xbf16>,
    } else {
    }
    %c8_i32 = arith.constant 8 : i32
    %3 = arith.muli %arg1, %c8_i32 : i32
    %4 = tpu.assume_multiple %3, 8 : i32
    %c0 = arith.constant 0 : index
    %5 = arith.index_cast %4 : i32 to index
    %c0_1 = arith.constant 0 : index
    %6 = vector.load %arg2[%c0, %5, %c0_1] : memref<1x16x128xbf16, #tpu.memory_space<vmem>>, vector<1x8x128xbf16>
    %7 = vector.shape_cast %6 : vector<1x8x128xbf16> to vector<8x128xbf16>
    %c0_2 = arith.constant 0 : index
    %c0_3 = arith.constant 0 : index
    %8 = vector.load %arg4[%c0_2, %c0_3] : memref<128x128xbf16, #tpu.memory_space<vmem>>, vector<128x128xbf16>
    %cst = arith.constant dense<0.000000e+00> : vector<8x128xf32>
    %9 = tpu.matmul %7, %8, %cst {dimension_numbers = #tpu.dot_dimension_numbers<[1], [0], [0], [1], [0, 0, 1, 1], [], []>} : vector<8x128xbf16>, vector<128x128xbf16>, vector<8x128xf32> -> vector<8x128xf32>
    %c0_4 = arith.constant 0 : index
    %c0_5 = arith.constant 0 : index
    %10 = vector.load %arg5[%c0_4, %c0_5] : memref<1x128xf32, #tpu.memory_space<vmem>>, vector<1x128xf32>
    %11 = vector.broadcast %10 : vector<1x128xf32> to vector<8x128xf32>
    %12 = arith.addf %9, %11 : vector<8x128xf32>
    %13 = arith.truncf %12 : vector<8x128xf32> to vector<8x128xbf16>
    %14 = vector.shape_cast %13 : vector<8x128xbf16> to vector<8x4x32xbf16>
    %15 = tpu.transpose %14, [1, 0, 2] : vector<8x4x32xbf16> -> vector<4x8x32xbf16>
    %c0_6 = arith.constant 0 : index
    %c0_7 = arith.constant 0 : index
    %c0_8 = arith.constant 0 : index
    %16 = vector.load %arg27[%c0_6, %c0_7, %c0_8] : memref<4x16x32xbf16, #tpu.memory_space<vmem>>, vector<4x16x32xbf16>
    %c0_9 = arith.constant 0 : index
    %c0_10 = arith.constant 0 : index
    %c0_11 = arith.constant 0 : index
    %17 = vector.load %arg28[%c0_9, %c0_10, %c0_11] : memref<4x16x32xbf16, #tpu.memory_space<vmem>>, vector<4x16x32xbf16>
    "tpu.trace_start"() <{level = 10 : i32, message = "hqd,hkd->hqk"}> : () -> ()
    %cst_12 = arith.constant dense<0.000000e+00> : vector<4x8x16xf32>
    %18 = tpu.matmul %15, %16, %cst_12 {dimension_numbers = #tpu.dot_dimension_numbers<[2], [2], [1], [1], [0, 0, 0, 1, 1, 1], [0], [0]>} : vector<4x8x32xbf16>, vector<4x16x32xbf16>, vector<4x8x16xf32> -> vector<4x8x16xf32>
    "tpu.trace_stop"() : () -> ()
    %cst_13 = arith.constant dense<0xFF800000> : vector<4x8xf32>
    %19 = vector.multi_reduction <maximumf>, %18, %cst_13 [2] : vector<4x8x16xf32> to vector<4x8xf32>
    %20 = vector.shape_cast %19 : vector<4x8xf32> to vector<4x8x1xf32>
    %21 = vector.broadcast %20 : vector<4x8x1xf32> to vector<4x8x16xf32>
    %22 = arith.subf %18, %21 : vector<4x8x16xf32>
    %23 = math.exp %22 : vector<4x8x16xf32>
    %cst_14 = arith.constant dense<0.000000e+00> : vector<4x8xf32>
    %24 = vector.multi_reduction <add>, %23, %cst_14 [2] : vector<4x8x16xf32> to vector<4x8xf32>
    %25 = vector.shape_cast %24 : vector<4x8xf32> to vector<4x8x1xf32>
    %26 = tpu.reciprocal %25 {approx = true} : vector<4x8x1xf32> -> vector<4x8x1xf32>
    %27 = vector.broadcast %26 : vector<4x8x1xf32> to vector<4x8x16xf32>
    %28 = arith.mulf %23, %27 : vector<4x8x16xf32>
    %29 = arith.truncf %28 : vector<4x8x16xf32> to vector<4x8x16xbf16>
    "tpu.trace_start"() <{level = 10 : i32, message = "hqk,hkd->hqd"}> : () -> ()
    %cst_15 = arith.constant dense<0.000000e+00> : vector<4x8x32xf32>
    %30 = tpu.matmul %29, %17, %cst_15 {dimension_numbers = #tpu.dot_dimension_numbers<[2], [1], [1], [2], [0, 0, 0, 1, 1, 2], [0], [0]>} : vector<4x8x16xbf16>, vector<4x16x32xbf16>, vector<4x8x32xf32> -> vector<4x8x32xf32>
    "tpu.trace_stop"() : () -> ()
    %31 = arith.truncf %30 : vector<4x8x32xf32> to vector<4x8x32xbf16>
    %32 = tpu.transpose %31, [1, 0, 2] : vector<4x8x32xbf16> -> vector<8x4x32xbf16>
    %33 = vector.shape_cast %32 : vector<8x4x32xbf16> to vector<8x128xbf16>
    %c0_16 = arith.constant 0 : index
    %c0_17 = arith.constant 0 : index
    %34 = vector.load %arg8[%c0_16, %c0_17] : memref<128x128xbf16, #tpu.memory_space<vmem>>, vector<128x128xbf16>
    %cst_18 = arith.constant dense<0.000000e+00> : vector<8x128xf32>
    %35 = tpu.matmul %33, %34, %cst_18 {dimension_numbers = #tpu.dot_dimension_numbers<[1], [0], [0], [1], [0, 0, 1, 1], [], []>} : vector<8x128xbf16>, vector<128x128xbf16>, vector<8x128xf32> -> vector<8x128xf32>
    %c0_19 = arith.constant 0 : index
    %c0_20 = arith.constant 0 : index
    %36 = vector.load %arg9[%c0_19, %c0_20] : memref<1x128xf32, #tpu.memory_space<vmem>>, vector<1x128xf32>
    %37 = vector.broadcast %36 : vector<1x128xf32> to vector<8x128xf32>
    %38 = arith.addf %35, %37 : vector<8x128xf32>
    %39 = arith.extf %7 : vector<8x128xbf16> to vector<8x128xf32>
    %40 = arith.addf %39, %38 : vector<8x128xf32>
    %c0_21 = arith.constant 0 : index
    %c0_22 = arith.constant 0 : index
    %41 = vector.load %arg20[%c0_21, %c0_22] : memref<1x128xf32, #tpu.memory_space<vmem>>, vector<1x128xf32>
    %c0_23 = arith.constant 0 : index
    %c0_24 = arith.constant 0 : index
    %42 = vector.load %arg21[%c0_23, %c0_24] : memref<1x128xf32, #tpu.memory_space<vmem>>, vector<1x128xf32>
    %cst_25 = arith.constant dense<0.000000e+00> : vector<8xf32>
    %43 = vector.multi_reduction <add>, %40, %cst_25 [1] : vector<8x128xf32> to vector<8xf32>
    %44 = vector.shape_cast %43 : vector<8xf32> to vector<8x1xf32>
    %cst_26 = arith.constant 1.280000e+02 : f32
    %45 = vector.broadcast %cst_26 : f32 to vector<8x1xf32>
    %46 = arith.divf %44, %45 : vector<8x1xf32>
    %47 = vector.broadcast %46 : vector<8x1xf32> to vector<8x128xf32>
    %48 = arith.subf %40, %47 : vector<8x128xf32>
    %49 = arith.mulf %48, %48 : vector<8x128xf32>
    %cst_27 = arith.constant dense<0.000000e+00> : vector<8xf32>
    %50 = vector.multi_reduction <add>, %49, %cst_27 [1] : vector<8x128xf32> to vector<8xf32>
    %51 = vector.shape_cast %50 : vector<8xf32> to vector<8x1xf32>
    %cst_28 = arith.constant 1.280000e+02 : f32
    %52 = vector.broadcast %cst_28 : f32 to vector<8x1xf32>
    %53 = arith.divf %51, %52 : vector<8x1xf32>
    %54 = vector.broadcast %46 : vector<8x1xf32> to vector<8x128xf32>
    %55 = arith.subf %40, %54 : vector<8x128xf32>
    %cst_29 = arith.constant 9.99999974E-6 : f32
    %56 = vector.broadcast %cst_29 : f32 to vector<8x1xf32>
    %57 = arith.addf %53, %56 : vector<8x1xf32>
    %58 = math.rsqrt %57 : vector<8x1xf32>
    %59 = vector.broadcast %58 : vector<8x1xf32> to vector<8x128xf32>
    %60 = arith.mulf %55, %59 : vector<8x128xf32>
    %61 = vector.broadcast %41 : vector<1x128xf32> to vector<8x128xf32>
    %62 = arith.mulf %60, %61 : vector<8x128xf32>
    %63 = vector.broadcast %42 : vector<1x128xf32> to vector<8x128xf32>
    %64 = arith.addf %62, %63 : vector<8x128xf32>
    %65 = arith.truncf %64 : vector<8x128xf32> to vector<8x128xbf16>
    %c0_30 = arith.constant 0 : index
    %c0_31 = arith.constant 0 : index
    %66 = vector.load %arg10[%c0_30, %c0_31] : memref<128x128xbf16, #tpu.memory_space<vmem>>, vector<128x128xbf16>
    %cst_32 = arith.constant dense<0.000000e+00> : vector<8x128xf32>
    %67 = tpu.matmul %65, %66, %cst_32 {dimension_numbers = #tpu.dot_dimension_numbers<[1], [0], [0], [1], [0, 0, 1, 1], [], []>} : vector<8x128xbf16>, vector<128x128xbf16>, vector<8x128xf32> -> vector<8x128xf32>
    %c0_33 = arith.constant 0 : index
    %c0_34 = arith.constant 0 : index
    %68 = vector.load %arg11[%c0_33, %c0_34] : memref<1x128xf32, #tpu.memory_space<vmem>>, vector<1x128xf32>
    %69 = vector.broadcast %68 : vector<1x128xf32> to vector<8x128xf32>
    %70 = arith.addf %67, %69 : vector<8x128xf32>
    %71 = arith.truncf %70 : vector<8x128xf32> to vector<8x128xbf16>
    %72 = vector.shape_cast %71 : vector<8x128xbf16> to vector<8x4x32xbf16>
    %73 = tpu.transpose %72, [1, 0, 2] : vector<8x4x32xbf16> -> vector<4x8x32xbf16>
    %c0_35 = arith.constant 0 : index
    %c0_36 = arith.constant 0 : index
    %c0_37 = arith.constant 0 : index
    %74 = vector.load %arg29[%c0_35, %c0_36, %c0_37] : memref<4x16x32xbf16, #tpu.memory_space<vmem>>, vector<4x16x32xbf16>
    %c0_38 = arith.constant 0 : index
    %c0_39 = arith.constant 0 : index
    %c0_40 = arith.constant 0 : index
    %75 = vector.load %arg30[%c0_38, %c0_39, %c0_40] : memref<4x16x32xbf16, #tpu.memory_space<vmem>>, vector<4x16x32xbf16>
    "tpu.trace_start"() <{level = 10 : i32, message = "hqd,hkd->hqk"}> : () -> ()
    %cst_41 = arith.constant dense<0.000000e+00> : vector<4x8x16xf32>
    %76 = tpu.matmul %73, %74, %cst_41 {dimension_numbers = #tpu.dot_dimension_numbers<[2], [2], [1], [1], [0, 0, 0, 1, 1, 1], [0], [0]>} : vector<4x8x32xbf16>, vector<4x16x32xbf16>, vector<4x8x16xf32> -> vector<4x8x16xf32>
    "tpu.trace_stop"() : () -> ()
    %cst_42 = arith.constant dense<0xFF800000> : vector<4x8xf32>
    %77 = vector.multi_reduction <maximumf>, %76, %cst_42 [2] : vector<4x8x16xf32> to vector<4x8xf32>
    %78 = vector.shape_cast %77 : vector<4x8xf32> to vector<4x8x1xf32>
    %79 = vector.broadcast %78 : vector<4x8x1xf32> to vector<4x8x16xf32>
    %80 = arith.subf %76, %79 : vector<4x8x16xf32>
    %81 = math.exp %80 : vector<4x8x16xf32>
    %cst_43 = arith.constant dense<0.000000e+00> : vector<4x8xf32>
    %82 = vector.multi_reduction <add>, %81, %cst_43 [2] : vector<4x8x16xf32> to vector<4x8xf32>
    %83 = vector.shape_cast %82 : vector<4x8xf32> to vector<4x8x1xf32>
    %84 = tpu.reciprocal %83 {approx = true} : vector<4x8x1xf32> -> vector<4x8x1xf32>
    %85 = vector.broadcast %84 : vector<4x8x1xf32> to vector<4x8x16xf32>
    %86 = arith.mulf %81, %85 : vector<4x8x16xf32>
    %87 = arith.truncf %86 : vector<4x8x16xf32> to vector<4x8x16xbf16>
    "tpu.trace_start"() <{level = 10 : i32, message = "hqk,hkd->hqd"}> : () -> ()
    %cst_44 = arith.constant dense<0.000000e+00> : vector<4x8x32xf32>
    %88 = tpu.matmul %87, %75, %cst_44 {dimension_numbers = #tpu.dot_dimension_numbers<[2], [1], [1], [2], [0, 0, 0, 1, 1, 2], [0], [0]>} : vector<4x8x16xbf16>, vector<4x16x32xbf16>, vector<4x8x32xf32> -> vector<4x8x32xf32>
    "tpu.trace_stop"() : () -> ()
    %89 = arith.truncf %88 : vector<4x8x32xf32> to vector<4x8x32xbf16>
    %90 = tpu.transpose %89, [1, 0, 2] : vector<4x8x32xbf16> -> vector<8x4x32xbf16>
    %91 = vector.shape_cast %90 : vector<8x4x32xbf16> to vector<8x128xbf16>
    %c0_45 = arith.constant 0 : index
    %c0_46 = arith.constant 0 : index
    %92 = vector.load %arg14[%c0_45, %c0_46] : memref<128x128xbf16, #tpu.memory_space<vmem>>, vector<128x128xbf16>
    %cst_47 = arith.constant dense<0.000000e+00> : vector<8x128xf32>
    %93 = tpu.matmul %91, %92, %cst_47 {dimension_numbers = #tpu.dot_dimension_numbers<[1], [0], [0], [1], [0, 0, 1, 1], [], []>} : vector<8x128xbf16>, vector<128x128xbf16>, vector<8x128xf32> -> vector<8x128xf32>
    %c0_48 = arith.constant 0 : index
    %c0_49 = arith.constant 0 : index
    %94 = vector.load %arg15[%c0_48, %c0_49] : memref<1x128xf32, #tpu.memory_space<vmem>>, vector<1x128xf32>
    %95 = vector.broadcast %94 : vector<1x128xf32> to vector<8x128xf32>
    %96 = arith.addf %93, %95 : vector<8x128xf32>
    %97 = arith.addf %64, %96 : vector<8x128xf32>
    %c0_50 = arith.constant 0 : index
    %c0_51 = arith.constant 0 : index
    %98 = vector.load %arg22[%c0_50, %c0_51] : memref<1x128xf32, #tpu.memory_space<vmem>>, vector<1x128xf32>
    %c0_52 = arith.constant 0 : index
    %c0_53 = arith.constant 0 : index
    %99 = vector.load %arg23[%c0_52, %c0_53] : memref<1x128xf32, #tpu.memory_space<vmem>>, vector<1x128xf32>
    %cst_54 = arith.constant dense<0.000000e+00> : vector<8xf32>
    %100 = vector.multi_reduction <add>, %97, %cst_54 [1] : vector<8x128xf32> to vector<8xf32>
    %101 = vector.shape_cast %100 : vector<8xf32> to vector<8x1xf32>
    %cst_55 = arith.constant 1.280000e+02 : f32
    %102 = vector.broadcast %cst_55 : f32 to vector<8x1xf32>
    %103 = arith.divf %101, %102 : vector<8x1xf32>
    %104 = vector.broadcast %103 : vector<8x1xf32> to vector<8x128xf32>
    %105 = arith.subf %97, %104 : vector<8x128xf32>
    %106 = arith.mulf %105, %105 : vector<8x128xf32>
    %cst_56 = arith.constant dense<0.000000e+00> : vector<8xf32>
    %107 = vector.multi_reduction <add>, %106, %cst_56 [1] : vector<8x128xf32> to vector<8xf32>
    %108 = vector.shape_cast %107 : vector<8xf32> to vector<8x1xf32>
    %cst_57 = arith.constant 1.280000e+02 : f32
    %109 = vector.broadcast %cst_57 : f32 to vector<8x1xf32>
    %110 = arith.divf %108, %109 : vector<8x1xf32>
    %111 = vector.broadcast %103 : vector<8x1xf32> to vector<8x128xf32>
    %112 = arith.subf %97, %111 : vector<8x128xf32>
    %cst_58 = arith.constant 9.99999974E-6 : f32
    %113 = vector.broadcast %cst_58 : f32 to vector<8x1xf32>
    %114 = arith.addf %110, %113 : vector<8x1xf32>
    %115 = math.rsqrt %114 : vector<8x1xf32>
    %116 = vector.broadcast %115 : vector<8x1xf32> to vector<8x128xf32>
    %117 = arith.mulf %112, %116 : vector<8x128xf32>
    %118 = vector.broadcast %98 : vector<1x128xf32> to vector<8x128xf32>
    %119 = arith.mulf %117, %118 : vector<8x128xf32>
    %120 = vector.broadcast %99 : vector<1x128xf32> to vector<8x128xf32>
    %121 = arith.addf %119, %120 : vector<8x128xf32>
    %122 = arith.truncf %121 : vector<8x128xf32> to vector<8x128xbf16>
    %c0_59 = arith.constant 0 : index
    %c0_60 = arith.constant 0 : index
    %123 = vector.load %arg16[%c0_59, %c0_60] : memref<128x256xbf16, #tpu.memory_space<vmem>>, vector<128x256xbf16>
    %cst_61 = arith.constant dense<0.000000e+00> : vector<8x256xf32>
    %124 = tpu.matmul %122, %123, %cst_61 {dimension_numbers = #tpu.dot_dimension_numbers<[1], [0], [0], [1], [0, 0, 1, 1], [], []>} : vector<8x128xbf16>, vector<128x256xbf16>, vector<8x256xf32> -> vector<8x256xf32>
    %c0_62 = arith.constant 0 : index
    %c0_63 = arith.constant 0 : index
    %125 = vector.load %arg17[%c0_62, %c0_63] : memref<1x256xf32, #tpu.memory_space<vmem>>, vector<1x256xf32>
    %126 = vector.broadcast %125 : vector<1x256xf32> to vector<8x256xf32>
    %127 = arith.addf %124, %126 : vector<8x256xf32>
    %cst_64 = arith.constant 0.000000e+00 : f32
    %128 = vector.broadcast %cst_64 : f32 to vector<8x256xf32>
    %129 = arith.maximumf %127, %128 : vector<8x256xf32>
    %130 = arith.truncf %129 : vector<8x256xf32> to vector<8x256xbf16>
    %c0_65 = arith.constant 0 : index
    %c0_66 = arith.constant 0 : index
    %131 = vector.load %arg18[%c0_65, %c0_66] : memref<256x128xbf16, #tpu.memory_space<vmem>>, vector<256x128xbf16>
    %cst_67 = arith.constant dense<0.000000e+00> : vector<8x128xf32>
    %132 = tpu.matmul %130, %131, %cst_67 {dimension_numbers = #tpu.dot_dimension_numbers<[1], [0], [0], [1], [0, 0, 1, 1], [], []>} : vector<8x256xbf16>, vector<256x128xbf16>, vector<8x128xf32> -> vector<8x128xf32>
    %c0_68 = arith.constant 0 : index
    %c0_69 = arith.constant 0 : index
    %133 = vector.load %arg19[%c0_68, %c0_69] : memref<1x128xf32, #tpu.memory_space<vmem>>, vector<1x128xf32>
    %134 = vector.broadcast %133 : vector<1x128xf32> to vector<8x128xf32>
    %135 = arith.addf %132, %134 : vector<8x128xf32>
    %136 = arith.addf %121, %135 : vector<8x128xf32>
    %c0_70 = arith.constant 0 : index
    %c0_71 = arith.constant 0 : index
    %137 = vector.load %arg24[%c0_70, %c0_71] : memref<1x128xf32, #tpu.memory_space<vmem>>, vector<1x128xf32>
    %c0_72 = arith.constant 0 : index
    %c0_73 = arith.constant 0 : index
    %138 = vector.load %arg25[%c0_72, %c0_73] : memref<1x128xf32, #tpu.memory_space<vmem>>, vector<1x128xf32>
    %cst_74 = arith.constant dense<0.000000e+00> : vector<8xf32>
    %139 = vector.multi_reduction <add>, %136, %cst_74 [1] : vector<8x128xf32> to vector<8xf32>
    %140 = vector.shape_cast %139 : vector<8xf32> to vector<8x1xf32>
    %cst_75 = arith.constant 1.280000e+02 : f32
    %141 = vector.broadcast %cst_75 : f32 to vector<8x1xf32>
    %142 = arith.divf %140, %141 : vector<8x1xf32>
    %143 = vector.broadcast %142 : vector<8x1xf32> to vector<8x128xf32>
    %144 = arith.subf %136, %143 : vector<8x128xf32>
    %145 = arith.mulf %144, %144 : vector<8x128xf32>
    %cst_76 = arith.constant dense<0.000000e+00> : vector<8xf32>
    %146 = vector.multi_reduction <add>, %145, %cst_76 [1] : vector<8x128xf32> to vector<8xf32>
    %147 = vector.shape_cast %146 : vector<8xf32> to vector<8x1xf32>
    %cst_77 = arith.constant 1.280000e+02 : f32
    %148 = vector.broadcast %cst_77 : f32 to vector<8x1xf32>
    %149 = arith.divf %147, %148 : vector<8x1xf32>
    %150 = vector.broadcast %142 : vector<8x1xf32> to vector<8x128xf32>
    %151 = arith.subf %136, %150 : vector<8x128xf32>
    %cst_78 = arith.constant 9.99999974E-6 : f32
    %152 = vector.broadcast %cst_78 : f32 to vector<8x1xf32>
    %153 = arith.addf %149, %152 : vector<8x1xf32>
    %154 = math.rsqrt %153 : vector<8x1xf32>
    %155 = vector.broadcast %154 : vector<8x1xf32> to vector<8x128xf32>
    %156 = arith.mulf %151, %155 : vector<8x128xf32>
    %157 = vector.broadcast %137 : vector<1x128xf32> to vector<8x128xf32>
    %158 = arith.mulf %156, %157 : vector<8x128xf32>
    %159 = vector.broadcast %138 : vector<1x128xf32> to vector<8x128xf32>
    %160 = arith.addf %158, %159 : vector<8x128xf32>
    %c0_79 = arith.constant 0 : index
    %c0_80 = arith.constant 0 : index
    %c0_81 = arith.constant 0 : index
    %161 = vector.load %arg26[%c0_79, %c0_80, %c0_81] : memref<1x8x128xf32, #tpu.memory_space<vmem>>, vector<1x8x128xf32>
    %162 = vector.shape_cast %161 : vector<1x8x128xf32> to vector<8x128xf32>
    %163 = vector.shape_cast %160 : vector<8x128xf32> to vector<1x8x128xf32>
    tpu.vector_store %arg26[%c0_79, %c0_80, %c0_81], %163 {strides = array<i32>} : memref<1x8x128xf32, #tpu.memory_space<vmem>>, vector<1x8x128xf32>,
    return
  }
  func.func @transform_0(%arg0: i32, %arg1: i32) -> (i32, i32, i32) {
    %c0_i32 = arith.constant 0 : i32
    %c0_i32_0 = arith.constant 0 : i32
    %c0_i32_1 = arith.constant 0 : i32
    return %arg0, %c0_i32, %c0_i32_0 : i32, i32, i32
  }
  func.func @transform_1(%arg0: i32, %arg1: i32) -> (i32, i32, i32) {
    %c0_i32 = arith.constant 0 : i32
    %c0_i32_0 = arith.constant 0 : i32
    %c0_i32_1 = arith.constant 0 : i32
    return %arg0, %c0_i32, %c0_i32_0 : i32, i32, i32
  }
  func.func @transform_2(%arg0: i32, %arg1: i32) -> (i32, i32) {
    %c0_i32 = arith.constant 0 : i32
    %c0_i32_0 = arith.constant 0 : i32
    %c0_i32_1 = arith.constant 0 : i32
    return %c0_i32, %c0_i32_0 : i32, i32
  }
  func.func @transform_3(%arg0: i32, %arg1: i32) -> (i32, i32) {
    %c0_i32 = arith.constant 0 : i32
    %c0_i32_0 = arith.constant 0 : i32
    %c0_i32_1 = arith.constant 0 : i32
    return %c0_i32, %c0_i32_0 : i32, i32
  }
  func.func @transform_4(%arg0: i32, %arg1: i32) -> (i32, i32) {
    %c0_i32 = arith.constant 0 : i32
    %c0_i32_0 = arith.constant 0 : i32
    %c0_i32_1 = arith.constant 0 : i32
    return %c0_i32, %c0_i32_0 : i32, i32
  }
  func.func @transform_5(%arg0: i32, %arg1: i32) -> (i32, i32) {
    %c0_i32 = arith.constant 0 : i32
    %c0_i32_0 = arith.constant 0 : i32
    %c0_i32_1 = arith.constant 0 : i32
    return %c0_i32, %c0_i32_0 : i32, i32
  }
  func.func @transform_6(%arg0: i32, %arg1: i32) -> (i32, i32) {
    %c0_i32 = arith.constant 0 : i32
    %c0_i32_0 = arith.constant 0 : i32
    %c0_i32_1 = arith.constant 0 : i32
    return %c0_i32, %c0_i32_0 : i32, i32
  }
  func.func @transform_7(%arg0: i32, %arg1: i32) -> (i32, i32) {
    %c0_i32 = arith.constant 0 : i32
    %c0_i32_0 = arith.constant 0 : i32
    %c0_i32_1 = arith.constant 0 : i32
    return %c0_i32, %c0_i32_0 : i32, i32
  }
  func.func @transform_8(%arg0: i32, %arg1: i32) -> (i32, i32) {
    %c0_i32 = arith.constant 0 : i32
    %c0_i32_0 = arith.constant 0 : i32
    %c0_i32_1 = arith.constant 0 : i32
    return %c0_i32, %c0_i32_0 : i32, i32
  }
  func.func @transform_9(%arg0: i32, %arg1: i32) -> (i32, i32) {
    %c0_i32 = arith.constant 0 : i32
    %c0_i32_0 = arith.constant 0 : i32
    %c0_i32_1 = arith.constant 0 : i32
    return %c0_i32, %c0_i32_0 : i32, i32
  }
  func.func @transform_10(%arg0: i32, %arg1: i32) -> (i32, i32) {
    %c0_i32 = arith.constant 0 : i32
    %c0_i32_0 = arith.constant 0 : i32
    %c0_i32_1 = arith.constant 0 : i32
    return %c0_i32, %c0_i32_0 : i32, i32
  }
  func.func @transform_11(%arg0: i32, %arg1: i32) -> (i32, i32) {
    %c0_i32 = arith.constant 0 : i32
    %c0_i32_0 = arith.constant 0 : i32
    %c0_i32_1 = arith.constant 0 : i32
    return %c0_i32, %c0_i32_0 : i32, i32
  }
  func.func @transform_12(%arg0: i32, %arg1: i32) -> (i32, i32) {
    %c0_i32 = arith.constant 0 : i32
    %c0_i32_0 = arith.constant 0 : i32
    %c0_i32_1 = arith.constant 0 : i32
    return %c0_i32, %c0_i32_0 : i32, i32
  }
  func.func @transform_13(%arg0: i32, %arg1: i32) -> (i32, i32) {
    %c0_i32 = arith.constant 0 : i32
    %c0_i32_0 = arith.constant 0 : i32
    %c0_i32_1 = arith.constant 0 : i32
    return %c0_i32, %c0_i32_0 : i32, i32
  }
  func.func @transform_14(%arg0: i32, %arg1: i32) -> (i32, i32) {
    %c0_i32 = arith.constant 0 : i32
    %c0_i32_0 = arith.constant 0 : i32
    %c0_i32_1 = arith.constant 0 : i32
    return %c0_i32, %c0_i32_0 : i32, i32
  }
  func.func @transform_15(%arg0: i32, %arg1: i32) -> (i32, i32) {
    %c0_i32 = arith.constant 0 : i32
    %c0_i32_0 = arith.constant 0 : i32
    %c0_i32_1 = arith.constant 0 : i32
    return %c0_i32, %c0_i32_0 : i32, i32
  }
  func.func @transform_16(%arg0: i32, %arg1: i32) -> (i32, i32) {
    %c0_i32 = arith.constant 0 : i32
    %c0_i32_0 = arith.constant 0 : i32
    %c0_i32_1 = arith.constant 0 : i32
    return %c0_i32, %c0_i32_0 : i32, i32
  }
  func.func @transform_17(%arg0: i32, %arg1: i32) -> (i32, i32) {
    %c0_i32 = arith.constant 0 : i32
    %c0_i32_0 = arith.constant 0 : i32
    %c0_i32_1 = arith.constant 0 : i32
    return %c0_i32, %c0_i32_0 : i32, i32
  }
  func.func @transform_18(%arg0: i32, %arg1: i32) -> (i32, i32) {
    %c0_i32 = arith.constant 0 : i32
    %c0_i32_0 = arith.constant 0 : i32
    %c0_i32_1 = arith.constant 0 : i32
    return %c0_i32, %c0_i32_0 : i32, i32
  }
  func.func @transform_19(%arg0: i32, %arg1: i32) -> (i32, i32) {
    %c0_i32 = arith.constant 0 : i32
    %c0_i32_0 = arith.constant 0 : i32
    %c0_i32_1 = arith.constant 0 : i32
    return %c0_i32, %c0_i32_0 : i32, i32
  }
  func.func @transform_20(%arg0: i32, %arg1: i32) -> (i32, i32) {
    %c0_i32 = arith.constant 0 : i32
    %c0_i32_0 = arith.constant 0 : i32
    %c0_i32_1 = arith.constant 0 : i32
    return %c0_i32, %c0_i32_0 : i32, i32
  }
  func.func @transform_21(%arg0: i32, %arg1: i32) -> (i32, i32) {
    %c0_i32 = arith.constant 0 : i32
    %c0_i32_0 = arith.constant 0 : i32
    %c0_i32_1 = arith.constant 0 : i32
    return %c0_i32, %c0_i32_0 : i32, i32
  }
  func.func @transform_22(%arg0: i32, %arg1: i32) -> (i32, i32) {
    %c0_i32 = arith.constant 0 : i32
    %c0_i32_0 = arith.constant 0 : i32
    %c0_i32_1 = arith.constant 0 : i32
    return %c0_i32, %c0_i32_0 : i32, i32
  }
  func.func @transform_23(%arg0: i32, %arg1: i32) -> (i32, i32) {
    %c0_i32 = arith.constant 0 : i32
    %c0_i32_0 = arith.constant 0 : i32
    %c0_i32_1 = arith.constant 0 : i32
    return %c0_i32, %c0_i32_0 : i32, i32
  }
  func.func @transform_24(%arg0: i32, %arg1: i32) -> (i32, i32, i32) {
    %c0_i32 = arith.constant 0 : i32
    %c0_i32_0 = arith.constant 0 : i32
    return %arg0, %arg1, %c0_i32 : i32, i32, i32
  }
}

</mosaic_0001>

<bundles_post_ra>
// kernel: tpu_custom_call.1
= control target key start
LH: loop header
LB: loop body
LE: loop exit
PB: predicated region body
PF: predicated region fallthrough
CT: control target
= control target key end

     0   :  { %s7298_s0 = inlined_call_operand.hbm [shape: bf16[2,16,128], index: 0, kind: input, shape index: {}]   ;;  %s7299_s1 = inlined_call_operand.hbm [shape: bf16[2,16,128], index: 1, kind: input, shape index: {}]   ;;  %s7300_s2 = inlined_call_operand.hbm [shape: bf16[128,128], index: 2, kind: input, shape index: {}]   ;;  %s7301_s3 = inlined_call_operand.vmem [shape: f32[1,128], index: 3, kind: input, shape index: {}]   ;;  %s7302_s4 = inlined_call_operand.hbm [shape: bf16[128,256], index: 4, kind: input, shape index: {}]   ;;  %s7303_s5 = inlined_call_operand.vmem [shape: f32[1,256], index: 5, kind: input, shape index: {}]   ;;  %s7304_s6 = inlined_call_operand.hbm [shape: bf16[128,128], index: 6, kind: input, shape index: {}]   ;;  %s7305_s7 = inlined_call_operand.vmem [shape: f32[1,128], index: 7, kind: input, shape index: {}]   ;;  %s7306_s8 = inlined_call_operand.hbm [shape: bf16[128,128], index: 8, kind: input, shape index: {}]   ;;  %s7307_s9 = inlined_call_operand.vmem [shape: f32[1,128], index: 9, kind: input, shape index: {}]   ;;  %s7308_s10 = inlined_call_operand.hbm [shape: bf16[128,256], index: 10, kind: input, shape index: {}]   ;;  %s7309_s11 = inlined_call_operand.vmem [shape: f32[1,256], index: 11, kind: input, shape index: {}]   ;;  %s7310_s12 = inlined_call_operand.hbm [shape: bf16[128,128], index: 12, kind: input, shape index: {}]   ;;  %s7311_s13 = inlined_call_operand.vmem [shape: f32[1,128], index: 13, kind: input, shape index: {}]   ;;  %s7312_s14 = inlined_call_operand.hbm [shape: bf16[128,256], index: 14, kind: input, shape index: {}]   ;;  %s7313_s15 = inlined_call_operand.vmem [shape: f32[1,256], index: 15, kind: input, shape index: {}]   ;;  %s7314_s16 = inlined_call_operand.hbm [shape: bf16[256,128], index: 16, kind: input, shape index: {}]   ;;  %s7315_s17 = inlined_call_operand.vmem [shape: f32[1,128], index: 17, kind: input, shape index: {}]   ;;  %s7316_s18 = inlined_call_operand.vmem [shape: f32[1,128], index: 18, kind: input, shape index: {}]   ;;  %s7317_s19 = inlined_call_operand.vmem [shape: f32[1,128], index: 19, kind: input, shape index: {}]   ;;  %s7318_s20 = inlined_call_operand.vmem [shape: f32[1,128], index: 20, kind: input, shape index: {}]   ;;  %s7319_s21 = inlined_call_operand.vmem [shape: f32[1,128], index: 21, kind: input, shape index: {}]   ;;  %s7320_s22 = inlined_call_operand.vmem [shape: f32[1,128], index: 22, kind: input, shape index: {}]   ;;  %s7321_s23 = inlined_call_operand.vmem [shape: f32[1,128], index: 23, kind: input, shape index: {}]   ;;  %s7322_s24 = inlined_call_operand.hbm [shape: f32[2,16,128], index: 24, kind: output, shape index: {}]  }
   0x1   :  { %7366 = sst [smem:[#allocation46_spill]] %s7298_s0 }
   0x2   :  { %7367 = sst [smem:[#allocation47_spill]] %s7299_s1 }
   0x3   :  { %7368 = sst [smem:[#allocation48_spill]] %s7300_s2 }
   0x4   :  { %7369 = sst [smem:[#allocation49_spill]] %s7301_s3 }
   0x5   :  { %7370 = sst [smem:[#allocation50_spill]] %s7302_s4 }
   0x6   :  { %7371 = sst [smem:[#allocation51_spill]] %s7303_s5 }
   0x7   :  { %7372 = sst [smem:[#allocation52_spill]] %s7304_s6 }
   0x8   :  { %7373 = sst [smem:[#allocation53_spill]] %s7305_s7 }
   0x9   :  { %7374 = sst [smem:[#allocation54_spill]] %s7306_s8 }
   0xa   :  { %7375 = sst [smem:[#allocation55_spill]] %s7307_s9 }
   0xb   :  { %7376 = sst [smem:[#allocation56_spill]] %s7309_s11 }
   0xc   :  { %7377 = sst [smem:[#allocation57_spill]] %s7311_s13 }
   0xd   :  { %7378 = sst [smem:[#allocation58_spill]] %s7313_s15 }
   0xe   :  { %7379 = sst [smem:[#allocation59_spill]] %s7315_s17 }
   0xf   :  { %7380 = sst [smem:[#allocation60_spill]] %s7316_s18 }
  0x10   :  { %7381 = sst [smem:[#allocation61_spill]] %s7317_s19 }
  0x11   :  { %7382 = sst [smem:[#allocation62_spill]] %s7318_s20 }
  0x12   :  { %7383 = sst [smem:[#allocation63_spill]] %s7319_s21 }
  0x13   :  { %7384 = sst [smem:[#allocation64_spill]] %s7320_s22 }
  0x14   :  { %7385 = sst [smem:[#allocation65_spill]] %s7321_s23 }
  0x15   :  { %7386 = sst [smem:[#allocation66_spill]] %s7322_s24 }
  0x16   :  { %29 = vsyncpa [#allocation7], 0 }
  0x17   :  { %30 = vsyncpa [#allocation10], 0 }
  0x18   :  { %31 = vsyncpa [#allocation13], 0 }
  0x19   :  { %32 = vsyncpa [#allocation16], 0 }
  0x1a   :  { %33 = vsyncpa [#allocation19], 0 }
  0x1b   :  { %34 = vsyncpa [#allocation22], 0 }
  0x1c   :  { %35 = vsyncpa [#allocation8], 0 }
  0x1d   :  { %37 = vsyncpa [#allocation8 + $0x1], 0  ;;  %s6285_s5 = smov 0   ;;  %s6287_s26 = smov 0  }
  0x1e   :  { %s6289_s27 = smov 0   ;;  %s6291_s28 = smov 0  }
  0x1f   :  { %s6293_s6 = smov 0   ;;  %s6295_s2 = smov 0  }
  0x20   :  { %s6297_s29 = smov 0   ;;  %s6299_s0 = smov 0  }
  0x21   :  { %s6301_s7 = smov 0   ;;  %s6303_s30 = smov 0  }
  0x22   :  { %s6305_s3 = smov 0  }
  0x23 LB: > { %7387 = sst [smem:[#allocation32_spill]] %s6089_s5  ;;  %s4891_s25 = sadd.s32 4294967295, %s6129_s3   ;;  %s6129_s3 = sphi %s6305_s3, %s43_s3   ;;  %s6125_s30 = sphi %s6303_s30, %s7462_s30   ;;  %s6121_s7 = sphi %s6301_s7, %s7461_s7   ;;  %s6117_s0 = sphi %s6299_s0, %s7460_s0   ;;  %s6113_s29 = sphi %s6297_s29, %s7459_s29   ;;  %s6109_s2 = sphi %s6295_s2, %s7458_s2   ;;  %s6105_s6 = sphi %s6293_s6, %s7457_s6   ;;  %s6101_s28 = sphi %s6291_s28, %s7456_s28   ;;  %s6097_s27 = sphi %s6289_s27, %s7455_s27   ;;  %s6093_s26 = sphi %s6287_s26, %s7464_s26   ;;  %s6089_s5 = sphi %s6285_s5, %s7463_s5  }
  0x24   : > { %7388 = sst [smem:[#allocation33_spill]] %s6097_s27  ;;  %s4892_s8 = sadd.s32 4294967294, %s6129_s3  }
  0x25   : > { %7389 = sst [smem:[#allocation34_spill]] %s6105_s6  ;;  %s52_s4 = sadd.s32 1, %s6121_s7 }
  0x26   : > { %7390 = sst [smem:[#allocation35_spill]] %s6109_s2  ;;  %s55_s1 = sadd.s32 1, %s6125_s30 }
  0x27   : > { %7391 = sst [smem:[#allocation36_spill]] %s6113_s29  ;;  %p53_p0 = scmp.ge.s32.totalorder %s52_s4, 2 }
  0x28   : > { %7392 = sst [smem:[#allocation37_spill]] %s6121_s7  ;;  %s62_s24 = sadd.s32 1, %s6109_s2 }
  0x29   : > { %7393 = sst [smem:[#allocation38_spill]] %s6125_s30  ;;  %p75_p1 = scmp.ne.s32.totalorder %s6105_s6, %s6101_s28 }
  0x2a   : > { %7394 = sst [smem:[#allocation39_spill]] %s6129_s3  ;;  %p6344_p2 = scmp.eq.s32.totalorder %s4891_s25, 0 }
  0x2b   : > { %s7466_s4 = smov (%p53_p0, %s52_s4), 0  ;;  %s7468_s1 = smov (!%p53_p0, %s55_s1), %s6125_s30 }
  0x2c   : > { %s7395_s23 = scalar_select %p6344_p2, 1, 0 }
  0x2d   : > { %7396 = sst [smem:[#allocation40_spill]] %s7466_s4  ;;  %p6353_p3 = por %p6344_p2, %p75_p1 }
  0x2e   : > { %s574_s17 = ssub.s32 %s6121_s7, %s7466_s4  ;;  %p57_p4 = scmp.ge.s32.totalorder %s7468_s1, 2 }
  0x2f   : > { %s7397_s22 = scalar_select %p6353_p3, 1, 0 }
  0x30   : > { %s578_s28 = sadd.s32 1, %s6097_s27  ;;  %p588_p5 = scmp.ne.s32.totalorder %s6097_s27, %s6093_s26 }
  0x31   : > { %p589_p6 = scmp.eq.s32.totalorder %s4891_s25, 3  ;;  %s7470_s1 = smov (%p57_p4, %s7468_s1), 0 }
  0x32   : > { %7398 = sst [smem:[#allocation41_spill]] %s7470_s1  ;;  %p594_p8 = scmp.ne.s32.totalorder %s6093_s26, %s6089_s5 }
  0x33   : > { %p6364_p7 = por %p589_p6, %p588_p5  ;;  %s59_s15 = ssub.s32 %s6125_s30, %s7470_s1 }
  0x34   : > { %p595_p9 = scmp.eq.s32.totalorder %s4892_s8, 3  ;;  %p60_p10 = scmp.eq.s32.totalorder %s59_s15, 0 }
  0x35   : > { %s7399_s6 = scalar_select %p6364_p7, 1, 0 }
  0x36   : > { %s575_s4 = sor.u32 %s574_s17, %s59_s15  ;;  %p6372_p12 = por %p595_p9, %p594_p8 }
  0x37   : > { %7400 = sst [smem:[#allocation42_spill]] %s7399_s6  ;;  %p576_p11 = scmp.eq.s32.totalorder %s575_s4, 0 }
  0x38   : > { %s7401_s7 = scalar_select %p6372_p12, 1, 0 }
  0x39   : > { %s6377_s25 = scalar_select %p60_p10, %s6109_s2, %s62_s24  }
  0x3a   : > { %7402 = sst [smem:[#allocation43_spill]] %s7401_s7  ;;  %p4893_p13 = scmp.ge.s32.totalorder %s6129_s3, 1 }
  0x3b   : > { %7403 = sst [smem:[#allocation44_spill]] %s6377_s25  ;;  %p602_p0 = scmp.lt.s32.totalorder %s6129_s3, 5 }
  0x3c   : > { %s6380_s21 = scalar_select %p576_p11, %s6097_s27, %s578_s28  }
  0x3d   : > { %s7335_s20 = sshll.u32 %s6117_s0, 7  ;;  %p6385_p1 = pnand %p4893_p13, %p602_p0 }
  0x3e   : > { %7404 = sst [smem:[#allocation45_spill]] %s6380_s21  ;;  %s7406_s15 = sld [smem:[#allocation47_spill]] }
  0x3f   : > { %s7405_s5 = scalar_select %p6385_p1, 1, 0 }
  0x40   : > { %p5371_p4 = pneg %p6385_p1  ;;  %s6131_s24 = smov [#allocation9]  }
  0x41   : > { %s633_s4 = sshll.u32 %s6131_s24, 4  ;;  %s6398_s4 = int_to_ptr.vmem [resolvable:$true] %s633_s4 }
  0x42   : > { %p6402_p5 = pnand %p5371_p4, %p6353_p3  ;;  %p6408_p6 = pnand %p5371_p4, %p6344_p2 }
  0x44   : > { %s6394_s17 = scalar_lea.hbm %s7406_s15, %s7335_s20  ;;  %p7350_p9 = pneg %p6402_p5 }
  0x45   : > { %s7407_s28 = scalar_select %p6402_p5, 1, 0 }
  0x46   : > { %s7408_s1 = scalar_select %p6408_p6, 1, 0 }
  0x47   : > { %s5699_s8 = scalar_lea.hbm %s6394_s17, 128  ;;  %s5704_s30 = scalar_lea.hbm %s7406_s15, 256 }
  0x48   : > { %p5700_p8 = scmp.ne.s32.totalorder %s6394_s17, %s5699_s8  ;;  %p5705_p13 = scmp.lt.u32.totalorder %s6394_s17, %s7406_s15 }
  0x49   : > { %p5706_p0 = scmp.lt.u32.totalorder %s5704_s30, %s5699_s8  ;;  %p5708_p12 = scmp.lt.u32.totalorder %s5699_s8, %s6394_s17 }
  0x4a   : > { %p5702_p10 = pnand %p7350_p9, %p5700_p8 }
  0x4b   : > { %p5707_p4 = por %p5706_p0, %p5705_p13 }
  0x4c   : > { %p5703_p11 = pneg %p5702_p10 }
  0x4d   : > { %p5709_p7 = por %p5708_p12, %p5707_p4 }
  0x4f   : > { %p5710_p2 = pnand %p5709_p7, %p5703_p11 }
  0x51   : > { %5713 = shalt.err (!%p5710_p2)
}
  0x52   : > { %s5714_s21 = scalar_lea.vmem %s6398_s4, 128  ;;  %p5722_p1 = scmp.lt.s32.totalorder %s6398_s4, %s6398_s4 }
  0x53   : > { %p5715_p8 = scmp.ne.s32.totalorder %s6398_s4, %s5714_s21  ;;  %p5723_p6 = scmp.lt.s32.totalorder %s5714_s21, %s5714_s21 }
  0x55   : > { %p5717_p10 = pnand %p5715_p8, %p7350_p9  ;;  %p5724_p0 = por %p5723_p6, %p5722_p1 }
  0x57   : > { %p5718_p3 = pneg %p5717_p10 }
  0x59   : > { %p5725_p13 = pnand %p5724_p0, %p5718_p3 }
  0x5b   : > { %5728 = shalt.err (!%p5725_p13)
}
  0x5c   : > { %s7353_s20 = smov 64   ;;  %s7355_s2 = smov 4  }
  0x5d   : > { %5377 = dma.hbm_to_vmem [thread:$0]  (!%p6402_p5), %s6394_s17, 128, %s6398_s4, [#allocation10], %s7353_s20, %s7353_s20, %s7355_s2  }
  0x5e   : > { %s6134_s30 = smov [#allocation12]   ;;  %s7409_s21 = sld [smem:[#allocation50_spill]] }
  0x5f   : > { %s662_s25 = sshll.u32 %s6134_s30, 4  ;;  %p7410_p3 = scmp.ne.s32.totalorder %s7408_s1, 0  ;;  %s663_s25 = int_to_ptr.vmem [resolvable:$true] %s662_s25 }
  0x61   : > { %p6449_p7 = pneg %p7410_p3 }
  0x63   : > { %s7411_s3 = scalar_select %p6449_p7, 1, 0 }
  0x64   : > { %s5729_s15 = scalar_lea.hbm %s7409_s21, 2048 }
  0x65   : > { %p5730_p2 = scmp.ne.s32.totalorder %s7409_s21, %s5729_s15  ;;  %p5736_p6 = scmp.lt.u32.totalorder %s5729_s15, %s7409_s21 }
  0x67   : > { %p5732_p12 = pnand %p6449_p7, %p5730_p2 }
  0x69   : > { %p5733_p1 = pneg %p5732_p12 }
  0x6b   : > { %p5738_p11 = pnand %p5736_p6, %p5733_p1 }
  0x6d   : > { %5741 = shalt.err (!%p5738_p11)
}
  0x6e   : > { %s5742_s30 = scalar_lea.vmem %s663_s25, 2048  ;;  %p5750_p0 = scmp.lt.s32.totalorder %s663_s25, %s663_s25 }
  0x6f   : > { %p5743_p4 = scmp.ne.s32.totalorder %s663_s25, %s5742_s30  ;;  %p5751_p13 = scmp.lt.s32.totalorder %s5742_s30, %s5742_s30 }
  0x71   : > { %p5745_p8 = pnand %p5743_p4, %p6449_p7  ;;  %p5752_p9 = por %p5751_p13, %p5750_p0 }
  0x73   : > { %p5746_p10 = pneg %p5745_p8 }
  0x75   : > { %p5753_p5 = pnand %p5752_p9, %p5746_p10 }
  0x77   : > { %5756 = shalt.err (!%p5753_p5)
}
  0x78   : > { %s7363_s27 = smov 128   ;;  %s6136_s7 = smov 8  }
  0x79   : > { %5383 = dma.hbm_to_vmem [thread:$0]  (!%p7410_p3), %s7409_s21, 2048, %s663_s25, [#allocation13], %s7363_s27, %s7363_s27, %s6136_s7  }
  0x7a   : > { %s6137_s24 = smov [#allocation15]   ;;  %s6138_s4 = smov [#allocation18]  }
  0x7b   : > { %s694_s17 = sshll.u32 %s6137_s24, 4  ;;  %s726_s30 = sshll.u32 %s6138_s4, 4  ;;  %s695_s17 = int_to_ptr.vmem [resolvable:$true] %s694_s17  ;;  %s727_s30 = int_to_ptr.vmem [resolvable:$true] %s726_s30 }
  0x7c   : > { %s7412_s6 = sld [smem:[#allocation54_spill]] }
  0x82   : > { %s7413_s13 = smov %s7412_s6  ;;  %s5757_s9 = scalar_lea.hbm %s7412_s6, 1024 }
  0x83   : > { %p5758_p5 = scmp.ne.s32.totalorder %s7413_s13, %s5757_s9  ;;  %p5764_p12 = scmp.lt.u32.totalorder %s5757_s9, %s7413_s13 }
  0x85   : > { %p5760_p9 = pnand %p5758_p5, %p6449_p7 }
  0x87   : > { %p5761_p2 = pneg %p5760_p9 }
  0x89   : > { %p5766_p1 = pnand %p5764_p12, %p5761_p2 }
  0x8b   : > { %5769 = shalt.err (!%p5766_p1)
}
  0x8c   : > { %s5770_s25 = scalar_lea.vmem %s695_s17, 1024  ;;  %p5778_p8 = scmp.lt.s32.totalorder %s695_s17, %s695_s17 }
  0x8d   : > { %p5771_p6 = scmp.ne.s32.totalorder %s695_s17, %s5770_s25  ;;  %p5779_p10 = scmp.lt.s32.totalorder %s5770_s25, %s5770_s25 }
  0x8f   : > { %p5773_p11 = pnand %p5771_p6, %p6449_p7  ;;  %p5780_p0 = por %p5779_p10, %p5778_p8 }
  0x91   : > { %p5774_p4 = pneg %p5773_p11 }
  0x93   : > { %p5781_p13 = pnand %p5780_p0, %p5774_p4 }
  0x95   : > { %5784 = shalt.err (!%p5781_p13)
}
  0x96   : > { %s7414_s18 = smov 4   ;;  %s7415_s19 = smov 64  }
  0x97   : > { %5389 = dma.hbm_to_vmem [thread:$0]  (!%p7410_p3), %s7413_s13, 1024, %s695_s17, [#allocation16], %s7415_s19, %s7415_s19, %s7414_s18  }
  0x98   : > { %s5785_s20 = scalar_lea.hbm %s7310_s12, 1024 }
  0x99   : > { %p5786_p5 = scmp.ne.s32.totalorder %s7310_s12, %s5785_s20  ;;  %p5792_p12 = scmp.lt.u32.totalorder %s5785_s20, %s7310_s12 }
  0x9b   : > { %p5788_p9 = pnand %p5786_p5, %p6449_p7 }
  0x9d   : > { %p5789_p2 = pneg %p5788_p9 }
  0x9f   : > { %p5794_p1 = pnand %p5792_p12, %p5789_p2 }
  0xa1   : > { %5797 = shalt.err (!%p5794_p1)
}
  0xa2   : > { %s5798_s4 = scalar_lea.vmem %s727_s30, 1024  ;;  %p5806_p8 = scmp.lt.s32.totalorder %s727_s30, %s727_s30 }
  0xa3   : > { %p5799_p6 = scmp.ne.s32.totalorder %s727_s30, %s5798_s4  ;;  %p5807_p10 = scmp.lt.s32.totalorder %s5798_s4, %s5798_s4 }
  0xa5   : > { %p5801_p11 = pnand %p5799_p6, %p6449_p7  ;;  %p5808_p0 = por %p5807_p10, %p5806_p8 }
  0xa7   : > { %p5802_p4 = pneg %p5801_p11 }
  0xa9   : > { %p5809_p13 = pnand %p5808_p0, %p5802_p4 }
  0xab   : > { %5812 = shalt.err (!%p5809_p13)
}
  0xac   : > { %5395 = dma.hbm_to_vmem [thread:$0]  (!%p7410_p3), %s7310_s12, 1024, %s727_s30, [#allocation19], %s7415_s19, %s7415_s19, %s7414_s18  }
  0xad   : > { %s7416_s11 = sshll.u32 %s6117_s0, 7  ;;  %s7417_s29 = sld [smem:[#allocation46_spill]] }
  0xae   : > { %s6139_s15 = smov [#allocation6]   ;;  %s6140_s24 = smov [#allocation11]  }
  0xaf   : > { %s617_s8 = sshll.u32 %s6139_s15, 4  ;;  %s646_s4 = sshll.u32 %s6140_s24, 4  ;;  %s618_s8 = int_to_ptr.vmem [resolvable:$true] %s617_s8  ;;  %s6517_s4 = int_to_ptr.vmem [resolvable:$true] %s646_s4 }
  0xb0   : > { %p7419_p9 = scmp.ne.s32.totalorder %s7407_s28, 0 }
  0xb2   : > { %p7420_p2 = pneg %p7419_p9 }
  0xb3   : > { %s7418_s20 = smov %s7417_s29  ;;  %s6515_s2 = scalar_lea.hbm %s7417_s29, %s7416_s11 }
  0xb4   : > { %s5813_s17 = scalar_lea.hbm %s6515_s2, 128  ;;  %s5818_s11 = scalar_lea.hbm %s7418_s20, 256 }
  0xb5   : > { %p5814_p5 = scmp.ne.s32.totalorder %s6515_s2, %s5813_s17  ;;  %p5819_p6 = scmp.lt.u32.totalorder %s6515_s2, %s7418_s20 }
  0xb6   : > { %p5820_p11 = scmp.lt.u32.totalorder %s5818_s11, %s5813_s17  ;;  %p5822_p8 = scmp.lt.u32.totalorder %s5813_s17, %s6515_s2 }
  0xb7   : > { %p5816_p12 = pnand %p5814_p5, %p7420_p2 }
  0xb8   : > { %p5821_p4 = por %p5820_p11, %p5819_p6 }
  0xb9   : > { %p5817_p1 = pneg %p5816_p12 }
  0xba   : > { %p5823_p10 = por %p5822_p8, %p5821_p4 }
  0xbc   : > { %p5824_p0 = pnand %p5823_p10, %p5817_p1 }
  0xbe   : > { %5827 = shalt.err (!%p5824_p0)
}
  0xbf   : > { %s5828_s29 = scalar_lea.vmem %s618_s8, 128  ;;  %p7421_p5 = pmov %p7420_p2 }
  0xc0   : > { %p5829_p13 = scmp.ne.s32.totalorder %s618_s8, %s5828_s29  ;;  %p5836_p3 = scmp.lt.s32.totalorder %s618_s8, %s618_s8 }
  0xc1   : > { %p5837_p7 = scmp.lt.s32.totalorder %s5828_s29, %s5828_s29 }
  0xc2   : > { %p5831_p2 = pnand %p5829_p13, %p7421_p5 }
  0xc3   : > { %p5838_p6 = por %p5837_p7, %p5836_p3 }
  0xc4   : > { %p5832_p12 = pneg %p5831_p2 }
  0xc6   : > { %p5839_p11 = pnand %p5838_p6, %p5832_p12 }
  0xc8   : > { %5842 = shalt.err (!%p5839_p11)
}
  0xc9   : > { %5374 = dma.hbm_to_vmem [thread:$0]  (!%p7419_p9), %s6515_s2, 128, %s618_s8, [#allocation7], %s7415_s19, %s7415_s19, %s7414_s18  }
  0xca   : > { %s7422_s17 = sld [smem:[#allocation48_spill]]  ;;  %p7423_p4 = scmp.ne.s32.totalorder %s7411_s3, 0 }
  0xd0   : > { %s5843_s30 = scalar_lea.hbm %s7422_s17, 1024 }
  0xd1   : > { %p5844_p1 = scmp.ne.s32.totalorder %s7422_s17, %s5843_s30  ;;  %p5850_p8 = scmp.lt.u32.totalorder %s5843_s30, %s7422_s17 }
  0xd3   : > { %p5846_p3 = pnand %p5844_p1, %p7423_p4 }
  0xd5   : > { %p5847_p7 = pneg %p5846_p3 }
  0xd7   : > { %p5852_p10 = pnand %p5850_p8, %p5847_p7 }
  0xd9   : > { %5855 = shalt.err (!%p5852_p10)
}
  0xda   : > { %s5856_s28 = scalar_lea.vmem %s6517_s4, 1024  ;;  %p5864_p5 = scmp.lt.s32.totalorder %s6517_s4, %s6517_s4 }
  0xdb   : > { %p5857_p9 = scmp.ne.s32.totalorder %s6517_s4, %s5856_s28  ;;  %p5865_p2 = scmp.lt.s32.totalorder %s5856_s28, %s5856_s28 }
  0xdd   : > { %p5859_p0 = pnand %p5857_p9, %p7423_p4  ;;  %p5866_p12 = por %p5865_p2, %p5864_p5 }
  0xdf   : > { %p5860_p13 = pneg %p5859_p0 }
  0xe1   : > { %p5867_p6 = pnand %p5866_p12, %p5860_p13 }
  0xe3   : > { %5870 = shalt.err (!%p5867_p6)
}
  0xe4   : > { %p7424_p11 = scmp.ne.s32.totalorder %s7408_s1, 0  ;;  %s6141_s29 = smov [#allocation14]  }
  0xe5   : > { %s678_s15 = sshll.u32 %s6141_s29, 4  ;;  %s6142_s24 = smov [#allocation17]   ;;  %s679_s15 = int_to_ptr.vmem [resolvable:$true] %s678_s15 }
  0xe6   : > { %5380 = dma.hbm_to_vmem [thread:$0]  (!%p7424_p11), %s7422_s17, 1024, %s6517_s4, [#allocation10], %s7415_s19, %s7415_s19, %s7414_s18  }
  0xe7   : > { %s710_s30 = sshll.u32 %s6142_s24, 4  ;;  %s7425_s9 = sld [smem:[#allocation52_spill]]  ;;  %s6567_s30 = int_to_ptr.vmem [resolvable:$true] %s710_s30 }
  0xed   : > { %s5871_s6 = scalar_lea.hbm %s7425_s9, 1024 }
  0xee   : > { %p5872_p1 = scmp.ne.s32.totalorder %s7425_s9, %s5871_s6  ;;  %p5878_p8 = scmp.lt.u32.totalorder %s5871_s6, %s7425_s9 }
  0xf0   : > { %p5874_p3 = pnand %p5872_p1, %p7423_p4 }
  0xf2   : > { %p5875_p7 = pneg %p5874_p3 }
  0xf4   : > { %p5880_p10 = pnand %p5878_p8, %p5875_p7 }
  0xf6   : > { %5883 = shalt.err (!%p5880_p10)
}
  0xf7   : > { %s5884_s8 = scalar_lea.vmem %s679_s15, 1024  ;;  %p5892_p5 = scmp.lt.s32.totalorder %s679_s15, %s679_s15 }
  0xf8   : > { %p5885_p9 = scmp.ne.s32.totalorder %s679_s15, %s5884_s8  ;;  %p5893_p2 = scmp.lt.s32.totalorder %s5884_s8, %s5884_s8 }
  0xfa   : > { %p5887_p0 = pnand %p5885_p9, %p7423_p4  ;;  %p5894_p12 = por %p5893_p2, %p5892_p5 }
  0xfc   : > { %p5888_p13 = pneg %p5887_p0 }
  0xfe   : > { %p5895_p6 = pnand %p5894_p12, %p5888_p13 }
 0x100   : > { %5898 = shalt.err (!%p5895_p6)
}
 0x101   : > { %5386 = dma.hbm_to_vmem [thread:$0]  (!%p7424_p11), %s7425_s9, 1024, %s679_s15, [#allocation13], %s7415_s19, %s7415_s19, %s7414_s18  }
 0x102   : > { %s5899_s11 = scalar_lea.hbm %s7308_s10, 2048 }
 0x103   : > { %p5900_p1 = scmp.ne.s32.totalorder %s7308_s10, %s5899_s11  ;;  %p5906_p8 = scmp.lt.u32.totalorder %s5899_s11, %s7308_s10 }
 0x105   : > { %p5902_p3 = pnand %p5900_p1, %p7423_p4 }
 0x107   : > { %p5903_p7 = pneg %p5902_p3 }
 0x109   : > { %p5908_p10 = pnand %p5906_p8, %p5903_p7 }
 0x10b   : > { %5911 = shalt.err (!%p5908_p10)
}
 0x10c   : > { %s5912_s15 = scalar_lea.vmem %s6567_s30, 2048  ;;  %p5920_p5 = scmp.lt.s32.totalorder %s6567_s30, %s6567_s30 }
 0x10d   : > { %p5913_p9 = scmp.ne.s32.totalorder %s6567_s30, %s5912_s15  ;;  %p5921_p2 = scmp.lt.s32.totalorder %s5912_s15, %s5912_s15 }
 0x10f   : > { %p5915_p0 = pnand %p5913_p9, %p7423_p4  ;;  %p5922_p12 = por %p5921_p2, %p5920_p5 }
 0x111   : > { %p5916_p13 = pneg %p5915_p0 }
 0x113   : > { %p5923_p6 = pnand %p5922_p12, %p5916_p13 }
 0x115   : > { %5926 = shalt.err (!%p5923_p6)
}
 0x116   : > { %s7426_s8 = smov 128   ;;  %s6143_s24 = smov [#allocation20]  }
 0x117   : > { %5392 = dma.hbm_to_vmem [thread:$0]  (!%p7424_p11), %s7308_s10, 2048, %s6567_s30, [#allocation16], %s7426_s8, %s7426_s8, %s6136_s7  }
 0x118   : > { %s742_s25 = sshll.u32 %s6143_s24, 4  ;;  %s6144_s11 = smov [#allocation21]   ;;  %s743_s25 = int_to_ptr.vmem [resolvable:$true] %s742_s25 }
 0x119   : > { %s758_s6 = sshll.u32 %s6144_s11, 4  ;;  %s5927_s4 = scalar_lea.hbm %s7312_s14, 2048  ;;  %s6616_s6 = int_to_ptr.vmem [resolvable:$true] %s758_s6 }
 0x11a   : > { %p5928_p1 = scmp.ne.s32.totalorder %s7312_s14, %s5927_s4  ;;  %p5934_p8 = scmp.lt.u32.totalorder %s5927_s4, %s7312_s14 }
 0x11c   : > { %p5930_p3 = pnand %p5928_p1, %p7423_p4 }
 0x11e   : > { %p5931_p7 = pneg %p5930_p3 }
 0x120   : > { %p5936_p10 = pnand %p5934_p8, %p5931_p7 }
 0x122   : > { %5939 = shalt.err (!%p5936_p10)
}
 0x123   : > { %s5940_s29 = scalar_lea.vmem %s743_s25, 2048  ;;  %p5948_p5 = scmp.lt.s32.totalorder %s743_s25, %s743_s25 }
 0x124   : > { %p5941_p9 = scmp.ne.s32.totalorder %s743_s25, %s5940_s29  ;;  %p5949_p2 = scmp.lt.s32.totalorder %s5940_s29, %s5940_s29 }
 0x126   : > { %p5943_p0 = pnand %p5941_p9, %p7423_p4  ;;  %p5950_p12 = por %p5949_p2, %p5948_p5 }
 0x128   : > { %p5944_p13 = pneg %p5943_p0 }
 0x12a   : > { %p5951_p6 = pnand %p5950_p12, %p5944_p13 }
 0x12c   : > { %5954 = shalt.err (!%p5951_p6)
}
 0x12d   : > { %5398 = dma.hbm_to_vmem [thread:$0]  (!%p7424_p11), %s7312_s14, 2048, %s743_s25, [#allocation19], %s7426_s8, %s7426_s8, %s6136_s7  }
 0x12e   : > { %s5955_s2 = scalar_lea.hbm %s7314_s16, 2048 }
 0x12f   : > { %p5956_p1 = scmp.ne.s32.totalorder %s7314_s16, %s5955_s2  ;;  %p5962_p8 = scmp.lt.u32.totalorder %s5955_s2, %s7314_s16 }
 0x131   : > { %p5958_p3 = pnand %p5956_p1, %p7423_p4 }
 0x133   : > { %p5959_p7 = pneg %p5958_p3 }
 0x135   : > { %p5964_p10 = pnand %p5962_p8, %p5959_p7 }
 0x137   : > { %5967 = shalt.err (!%p5964_p10)
}
 0x138   : > { %s5968_s7 = scalar_lea.vmem %s6616_s6, 2048  ;;  %p5976_p5 = scmp.lt.s32.totalorder %s6616_s6, %s6616_s6 }
 0x139   : > { %p5969_p9 = scmp.ne.s32.totalorder %s6616_s6, %s5968_s7  ;;  %p5977_p2 = scmp.lt.s32.totalorder %s5968_s7, %s5968_s7 }
 0x13b   : > { %p5971_p0 = pnand %p5969_p9, %p7423_p4  ;;  %p5978_p12 = por %p5977_p2, %p5976_p5 }
 0x13d   : > { %p5972_p13 = pneg %p5971_p0 }
 0x13f   : > { %p5979_p6 = pnand %p5978_p12, %p5972_p13 }
 0x141   : > { %5982 = shalt.err (!%p5979_p6)
}
 0x142   : > { %5401 = dma.hbm_to_vmem [thread:$0]  (!%p7424_p11), %s7314_s16, 2048, %s6616_s6, [#allocation22], %s7415_s19, %s7415_s19, %s7414_s18  }
 0x143   : > { %p7427_p1 = scmp.ne.s32.totalorder %s7405_s5, 0 }
 0x144   : > { %p7428_p4 = scmp.ne.s32.totalorder (!%p7427_p1), %s7397_s22, 0 }
 0x145   : > { %795 = sbr.rel (%p7427_p1) target bundleno = 5183 (0x143f), region = 116 }
 0x14c   : > { %6056 = dma.done.wait (%p7428_p4), [#allocation7], 128  }
 0x14d   : > { %6058 = vsyncadd (%p7428_p4), [#allocation7], 4294967168 }
 0x14e   : > { %6060 = dma.done.wait (%p7428_p4), [#allocation10], 128  }
 0x14f   : > { %6062 = vsyncadd (%p7428_p4), [#allocation10], 4294967168  ;;  %p7429_p3 = scmp.ne.s32.totalorder %s7395_s23, 0 }
 0x151   : > { %6064 = dma.done.wait (%p7429_p3), [#allocation10], 1024  }
 0x152   : > { %6066 = vsyncadd (%p7429_p3), [#allocation10], 4294966272 }
 0x153   : > { %6068 = dma.done.wait (%p7429_p3), [#allocation13], 3072  }
 0x154   : > { %6070 = vsyncadd (%p7429_p3), [#allocation13], 4294964224 }
 0x155   : > { %6072 = dma.done.wait (%p7429_p3), [#allocation16], 3072  }
 0x156   : > { %6074 = vsyncadd (%p7429_p3), [#allocation16], 4294964224 }
 0x157   : > { %6076 = dma.done.wait (%p7429_p3), [#allocation19], 3072  }
 0x158   : > { %6078 = vsyncadd (%p7429_p3), [#allocation19], 4294964224 }
 0x159   : > { %6080 = dma.done.wait (%p7429_p3), [#allocation22], 2048  }
 0x15a   : > { %6082 = vsyncadd (%p7429_p3), [#allocation22], 4294965248  ;;  %s889_s22 = sand.u32 1, %s6093_s26   ;;  %s7430_s1 = sld [smem:[#allocation36_spill]] }
 0x15b   : > { %s6698_s5 = sshll.u32 %s889_s22, 3 }
 0x15c   : > { %s891_s3 = scalar_lea.vmem [#allocation23], %s6698_s5 }
 0x160   : > { %p4916_p11 = scmp.ne.s32.totalorder %s7430_s1, 0 }
 0x161   : > { %v5539_v0 = vld [vmem:[#allocation12 + $0x4] ss:$8 sps:$4 sm:$0xff] (!%p4916_p11)   ;;  %v5541_v1 = vld [vmem:[#allocation12] ss:$8 sps:$4 sm:$0xff] (!%p4916_p11)   ;;  %v6145_v2 = vmov (!%p4916_p11), 0   ;;  %v5587_v33 = vld [vmem:[#allocation6] sm:$0xff] (!%p4916_p11)   ;;  %v917_v35 = vlaneseq (!%p4916_p11) }
 0x162   : > { %896 = sbr.rel (%p4916_p11) target bundleno = 804 (0x324), region = 160  ;;  %1045 = vmatprep.mubr.bf16.mxu0 (!%p4916_p11), %v6145_v2  ;;  %1763 = vmatprep.mubr.bf16.mxu1 (!%p4916_p11), %v6145_v2  ;;  %v5542_v3 = vld [vmem:[#allocation17 + $0x4] ss:$8 sps:$4 sm:$0xff] (!%p4916_p11)   ;;  %v5544_v4 = vld [vmem:[#allocation17] ss:$8 sps:$4 sm:$0xff] (!%p4916_p11)   ;;  %v5588_v34 = vld [vmem:[#allocation9] sm:$0xff] (!%p4916_p11)  }
 0x163   : > { %1013 = vmatprep.subr.bf16.mxu0 (!%p4916_p11), %v5539_v0  ;;  %v5545_v5 = vld [vmem:[#allocation12 + $0x14] ss:$8 sps:$4 sm:$0xff] (!%p4916_p11)   ;;  %v5547_v6 = vld [vmem:[#allocation12 + $0x10] ss:$8 sps:$4 sm:$0xff] (!%p4916_p11)   ;;  %1731 = vmatprep.subr.bf16.mxu1 (!%p4916_p11), %v5542_v3  ;;  %v5551_v9 = vld [vmem:[#allocation12 + $0x24] ss:$8 sps:$4 sm:$0xff] (!%p4916_p11)  }
 0x164   : > { %1014 = vmatpush1.bf16.msra.mxu0 (!%p4916_p11), %v5541_v1  ;;  %v5548_v7 = vld [vmem:[#allocation17 + $0x14] ss:$8 sps:$4 sm:$0xff] (!%p4916_p11)   ;;  %1732 = vmatpush1.bf16.msra.mxu1 (!%p4916_p11), %v5544_v4  ;;  %v5550_v8 = vld [vmem:[#allocation17 + $0x10] ss:$8 sps:$4 sm:$0xff] (!%p4916_p11)   ;;  %v5553_v10 = vld [vmem:[#allocation12 + $0x20] ss:$8 sps:$4 sm:$0xff] (!%p4916_p11)  }
 0x165   : > { %1015 = vmatprep.subr.bf16.mxu0 (!%p4916_p11), %v5545_v5  ;;  %1733 = vmatprep.subr.bf16.mxu1 (!%p4916_p11), %v5548_v7  ;;  %v5554_v11 = vld [vmem:[#allocation17 + $0x24] ss:$8 sps:$4 sm:$0xff] (!%p4916_p11)   ;;  %v5557_v12 = vld [vmem:[#allocation12 + $0x34] ss:$8 sps:$4 sm:$0xff] (!%p4916_p11)   ;;  %v5556_v13 = vld [vmem:[#allocation17 + $0x20] ss:$8 sps:$4 sm:$0xff] (!%p4916_p11)  }
 0x166   : > { %v5560_v14 = vld [vmem:[#allocation17 + $0x34] ss:$8 sps:$4 sm:$0xff] (!%p4916_p11)   ;;  %v5559_v15 = vld [vmem:[#allocation12 + $0x30] ss:$8 sps:$4 sm:$0xff] (!%p4916_p11)   ;;  %v5563_v16 = vld [vmem:[#allocation12 + $0x44] ss:$8 sps:$4 sm:$0xff] (!%p4916_p11)  }
 0x167   : > { %v5562_v17 = vld [vmem:[#allocation17 + $0x30] ss:$8 sps:$4 sm:$0xff] (!%p4916_p11)   ;;  %v5566_v18 = vld [vmem:[#allocation17 + $0x44] ss:$8 sps:$4 sm:$0xff] (!%p4916_p11)   ;;  %v5565_v19 = vld [vmem:[#allocation12 + $0x40] ss:$8 sps:$4 sm:$0xff] (!%p4916_p11)  }
 0x168   : > { %1016 = vmatpush1.bf16.msra.mxu0 (!%p4916_p11), %v5547_v6  ;;  %1734 = vmatpush1.bf16.msra.mxu1 (!%p4916_p11), %v5550_v8  ;;  %v5569_v20 = vld [vmem:[#allocation12 + $0x54] ss:$8 sps:$4 sm:$0xff] (!%p4916_p11)   ;;  %v5568_v21 = vld [vmem:[#allocation17 + $0x40] ss:$8 sps:$4 sm:$0xff] (!%p4916_p11)   ;;  %v5571_v23 = vld [vmem:[#allocation12 + $0x50] ss:$8 sps:$4 sm:$0xff] (!%p4916_p11)   ;;  %v6727_v6 = vpack.i.b16 (!%p4916_p11), %v6145_v2, %v6145_v2 }
 0x169   : > { %1017 = vmatprep.subr.bf16.mxu0 %v5551_v9  ;;  %1735 = vmatprep.subr.bf16.mxu1 %v5554_v11  ;;  %v5572_v22 = vld [vmem:[#allocation17 + $0x54] ss:$8 sps:$4 sm:$0xff]   ;;  %v5575_v24 = vld [vmem:[#allocation12 + $0x64] ss:$8 sps:$4 sm:$0xff]   ;;  %v5574_v25 = vld [vmem:[#allocation17 + $0x50] ss:$8 sps:$4 sm:$0xff]  }
 0x16a   : > { %v5578_v26 = vld [vmem:[#allocation17 + $0x64] ss:$8 sps:$4 sm:$0xff]   ;;  %v5577_v27 = vld [vmem:[#allocation12 + $0x60] ss:$8 sps:$4 sm:$0xff]   ;;  %v5581_v28 = vld [vmem:[#allocation12 + $0x74] ss:$8 sps:$4 sm:$0xff]  }
 0x16b   : > { %v5580_v29 = vld [vmem:[#allocation17 + $0x60] ss:$8 sps:$4 sm:$0xff]   ;;  %v5584_v30 = vld [vmem:[#allocation17 + $0x74] ss:$8 sps:$4 sm:$0xff]   ;;  %v5583_v31 = vld [vmem:[#allocation12 + $0x70] ss:$8 sps:$4 sm:$0xff]  }
 0x16c   : > { %1018 = vmatpush1.bf16.msra.mxu0 %v5553_v10  ;;  %1736 = vmatpush1.bf16.msra.mxu1 %v5556_v13  ;;  %v5586_v32 = vld [vmem:[#allocation17 + $0x70] ss:$8 sps:$4 sm:$0xff]   ;;  %v918_v36 = vshrl.u32 %v917_v35, 7  ;;  %s7431_s19 = sld [smem:[#allocation51_spill]]  ;;  %s7432_s9 = sld [smem:[#allocation56_spill]]  ;;  %vm1490_vm0 = vcmask 261120  }
 0x16d   : > { %1019 = vmatprep.subr.bf16.mxu0 %v5557_v12  ;;  %1737 = vmatprep.subr.bf16.mxu1 %v5560_v14  ;;  %s6146_s24 = smov 32   ;;  %s6147_s11 = smov 96   ;;  %v6149_v1 = vmov 1983009808   ;;  %v6150_v4 = vmov 1934713408  }
 0x16e   : > { %v919_v37 = vsub.s32 0, %v918_v36  ;;  %v923_v39 = vsub.s32 1, %v918_v36  ;;  %s6148_s28 = smov 64   ;;  %v1088_v3 = vunpack.c.l.s4 %v6149_v1  ;;  %v1119_v5 = vunpack.c.l.s4 %v6150_v4 }
 0x170   : > { %1020 = vmatpush1.bf16.msra.mxu0 %v5559_v15  ;;  %1738 = vmatpush1.bf16.msra.mxu1 %v5562_v17  ;;  %v1089_v7 = vunpack.c.0.s8 %v1088_v3  ;;  %v1120_v10 = vunpack.c.0.s8 %v1119_v5 }
 0x171   : > { %1021 = vmatprep.subr.bf16.mxu0 %v5563_v16  ;;  %1739 = vmatprep.subr.bf16.mxu1 %v5566_v18 }
 0x172   : > { %v915_v38 = vld [vmem:[%s7431_s19] sm:$0x3]  ;;  %v6729_v14 = vsub.s32 %v1089_v7, %v918_v36 }
 0x173   : > { %v1633_v40 = vld [vmem:[%s7432_s9] sm:$0x3]  ;;  %v920_v41 = vrot.slane %v915_v38, %v919_v37  ;;  %v924_v44 = vrot.slane %v915_v38, %v923_v39 }
 0x174   : > { %1022 = vmatpush1.bf16.msra.mxu0 %v5565_v19  ;;  %1740 = vmatpush1.bf16.msra.mxu1 %v5568_v21  ;;  %v1638_v42 = vrot.slane %v1633_v40, %v919_v37  ;;  %v1642_v45 = vrot.slane %v1633_v40, %v923_v39  ;;  %v6734_v19 = vsub.s32 %v1120_v10, %v918_v36 }
 0x175   : > { %1023 = vmatprep.subr.bf16.mxu0 %v5569_v20  ;;  %1741 = vmatprep.subr.bf16.mxu1 %v5572_v22 }
 0x178   : > { %1024 = vmatpush1.bf16.msra.mxu0 %v5571_v23  ;;  %1742 = vmatpush1.bf16.msra.mxu1 %v5574_v25 }
 0x179   : > { %1025 = vmatprep.subr.bf16.mxu0 %v5575_v24  ;;  %1743 = vmatprep.subr.bf16.mxu1 %v5578_v26 }
 0x17c   : > { %1026 = vmatpush1.bf16.msra.mxu0 %v5577_v27  ;;  %1744 = vmatpush1.bf16.msra.mxu1 %v5580_v29 }
 0x17d   : > { %1027 = vmatprep.subr.bf16.mxu0 %v5581_v28  ;;  %1745 = vmatprep.subr.bf16.mxu1 %v5584_v30 }
 0x180   : > { %1028 = vmatpush1.bf16.msra.mxu0 %v5583_v31  ;;  %1746 = vmatpush1.bf16.msra.mxu1 %v5586_v32 }
 0x183   : > { %1046 = vmatmul.mubr.bf16.vlgmr.msra.gmra.mrb[0].mxu0 %v5587_v33  ;;  %1764 = vmatmul.mubr.bf16.vlgmr.msra.gmra.mrb[0].mxu1 %v5588_v34 }
 0x256   : > { %v1047_v43 = vpop.f32.mrb[0].mxu0  ;;  %v1765_v47 = vpop.f32.mrb[0].mxu1 }
 0x257   : > { %v1049_v46 = vpop.f32.mrb[1].mxu0  ;;  %v1048_v49 = vadd.f32 %v1047_v43, %v920_v41  ;;  %v1766_v50 = vadd.f32 %v1765_v47, %v1638_v42  ;;  %v1767_v52 = vpop.f32.mrb[1].mxu1 }
 0x258   : > { %v1051_v48 = vpop.f32.mrb[2].mxu0  ;;  %v1050_v54 = vadd.f32 %v1049_v46, %v924_v44  ;;  %v1768_v55 = vadd.f32 %v1767_v52, %v1642_v45  ;;  %v1769_v57 = vpop.f32.mrb[2].mxu1 }
 0x259   : > { %v1052_v51 = vadd.f32 %v1051_v48, %v920_v41  ;;  %v1053_v53 = vpop.f32.mrb[3].mxu0  ;;  %v1770_v59 = vadd.f32 %v1769_v57, %v1638_v42  ;;  %v1771_v60 = vpop.f32.mrb[3].mxu1 }
 0x25a   : > { %v1054_v56 = vadd.f32 %v1053_v53, %v924_v44  ;;  %v1772_v62 = vadd.f32 %v1771_v60, %v1642_v45 }
 0x25b   : > { %v1056_v58 = vpack.c.bf16 %v1052_v51, %v1048_v49  ;;  %v6712_v63 = vpack.c.bf16 %v1770_v59, %v1766_v50 }
 0x25c   : > { %v6710_v61 = vpack.c.bf16 %v1054_v56, %v1050_v54  ;;  %v6714_v0 = vpack.c.bf16 %v1772_v62, %v1768_v55 }
 0x25d   : > { %1062 = vrot.lane.b32.xlu1 %v1056_v58, %s6146_s24  ;;  %1058 = vrot.lane.b32.xlu0 %v1056_v58, %s6147_s11  ;;  %v1068_v12 = vshrl.u32 %v1056_v58, 16  ;;  %v1786_v24 = vshrl.u32 %v6712_v63, 16 }
 0x25e   : > { %v1230_v20 = vshrl.u32 %v6710_v61, 16  ;;  %v1942_v28 = vshrl.u32 %v6714_v0, 16 }
 0x261   : > { %1778 = vrot.lane.b32.xlu1 %v6712_v63, %s6148_s28  ;;  %1060 = vrot.lane.b32.xlu0 %v1056_v58, %s6148_s28 }
 0x265   : > { %1220 = vrot.lane.b32.xlu1 %v6710_v61, %s6147_s11  ;;  %1776 = vrot.lane.b32.xlu0 %v6712_v63, %s6147_s11 }
 0x269   : > { %1224 = vrot.lane.b32.xlu1 %v6710_v61, %s6146_s24  ;;  %1780 = vrot.lane.b32.xlu0 %v6712_v63, %s6146_s24 }
 0x26d   : > { %1932 = vrot.lane.b32.xlu1 %v6714_v0, %s6147_s11  ;;  %1222 = vrot.lane.b32.xlu0 %v6710_v61, %s6148_s28 }
 0x271   : > { %1936 = vrot.lane.b32.xlu1 %v6714_v0, %s6146_s24  ;;  %1934 = vrot.lane.b32.xlu0 %v6714_v0, %s6148_s28 }
 0x2cf   : > { %v1063_v8 = vpop.permute.xlu1 %1062  ;;  %v1059_v9 = vpop.permute.xlu0 %1058 }
 0x2d0   : > { %v1066_v11 = vpack.i.b16 %v1059_v9, %v1056_v58  ;;  %v1069_v13 = vshrl.u32 %v1059_v9, 16  ;;  %v1077_v21 = vshrl.u32 %v1063_v8, 16 }
 0x2d2   : > { %v1070_v15 = vpack.i.b16 %v1069_v13, %v1068_v12  ;;  %v1086_v16 = vcombine.high %v1066_v11, %v6727_v6  ;;  %v1093_v25 = vrot.slane %v1066_v11, %v6729_v14 }
 0x2d3   : > { %v6732_v17 = vpop.permute.xlu1 %1778  ;;  %v1061_v18 = vpop.permute.xlu0 %1060 }
 0x2d4   : > { %v1152_v2 = vcombine.high %v1070_v15, %v6727_v6  ;;  %v1074_v22 = vpack.i.b16 %v1063_v8, %v1061_v18  ;;  %v1076_v23 = vshrl.u32 %v1061_v18, 16  ;;  %v1100_v26 = vrot.slane %v1086_v16, %v6729_v14 }
 0x2d5   : > { %v1159_v27 = vrot.slane %v1070_v15, %v6729_v14  ;;  %v1794_v29 = vshrl.u32 %v6732_v17, 16 }
 0x2d6   : > { %v1078_v30 = vpack.i.b16 %v1077_v21, %v1076_v23  ;;  %v1101_v31 = vcombine.high %v1074_v22, %v6727_v6  ;;  %v1108_v32 = vrot.slane %v1074_v22, %v6729_v14  ;;  %v1166_v35 = vrot.slane %v1152_v2, %v6729_v14 }
 0x2d7   : > { %v1221_v33 = vpop.permute.xlu1 %1220  ;;  %v1777_v34 = vpop.permute.xlu0 %1776 }
 0x2d8   : > { %v1228_v36 = vpack.i.b16 %v1221_v33, %v6710_v61  ;;  %v1231_v37 = vshrl.u32 %v1221_v33, 16  ;;  %v6749_v38 = vpack.i.b16 %v1777_v34, %v6712_v63  ;;  %v1115_v39 = vrot.slane %v1101_v31, %v6729_v14 }
 0x2d9   : > { %v1116_v40 = vcombine.low %v1093_v25, %v1108_v32  ;;  %v1117_v41 = vcombine.high %v1093_v25, %v1108_v32  ;;  %v1167_v42 = vcombine.high %v1078_v30, %v6727_v6  ;;  %v1174_v43 = vrot.slane %v1078_v30, %v6729_v14 }
 0x2da   : > { %v1232_v44 = vpack.i.b16 %v1231_v37, %v1230_v20  ;;  %v1242_v45 = vcombine.high %v1228_v36, %v6727_v6  ;;  %v1787_v46 = vshrl.u32 %v1777_v34, 16  ;;  %v1132_v49 = vcombine.low %v1100_v26, %v1115_v39 }
 0x2db   : > { %v1124_v47 = vrot.slane %v1116_v40, %v6734_v19  ;;  %v1131_v48 = vrot.slane %v1117_v41, %v6734_v19  ;;  %v1133_v50 = vcombine.high %v1100_v26, %v1115_v39  ;;  %v1181_v51 = vrot.slane %v1167_v42, %v6729_v14  ;;  %v6769_v11 = vpop.permute.xlu1 %1224  ;;  %v1781_v33 = vpop.permute.xlu0 %1780 }
 0x2dc   : > { %v1182_v52 = vcombine.low %v1159_v27, %v1174_v43  ;;  %v1183_v53 = vcombine.high %v1159_v27, %v1174_v43  ;;  %v6759_v54 = vrot.slane %v1228_v36, %v6729_v14  ;;  %v1140_v55 = vrot.slane %v1132_v49, %v6734_v19 }
 0x2dd   : > { %v1147_v56 = vrot.slane %v1133_v50, %v6734_v19  ;;  %v1374_v57 = vcombine.low %v1124_v47, %v1131_v48  ;;  %v4934_v58 = vcombine.high %v1124_v47, %v1131_v48  ;;  %v1198_v61 = vcombine.low %v1166_v35, %v1181_v51 }
 0x2de   : > { %v1190_v59 = vrot.slane %v1182_v52, %v6734_v19  ;;  %v1197_v60 = vrot.slane %v1183_v53, %v6734_v19  ;;  %v1199_v62 = vcombine.high %v1166_v35, %v1181_v51  ;;  %v1308_v16 = vcombine.high %v1232_v44, %v6727_v6 }
 0x2df   : > { %v1381_v1 = vrot.slane %v1374_v57, %v6729_v14  ;;  %v1389_v3 = vrot.slane %v4934_v58, %v6729_v14  ;;  %v1390_v4 = vcombine.low %v1140_v55, %v1147_v56  ;;  %v4935_v5 = vcombine.high %v1140_v55, %v1147_v56 }
 0x2e0   : > { %v1206_v7 = vrot.slane %v1198_v61, %v6734_v19  ;;  %v1213_v8 = vrot.slane %v1199_v62, %v6734_v19  ;;  %v1424_v9 = vcombine.low %v1190_v59, %v1197_v60  ;;  %v4936_v10 = vcombine.high %v1190_v59, %v1197_v60 }
 0x2e1   : > { %v1397_v12 = vrot.slane %v1390_v4, %v6729_v14  ;;  %v1405_v13 = vrot.slane %v4935_v5, %v6729_v14  ;;  %v1406_v15 = vcombine.low %v1381_v1, %v1389_v3  ;;  %v6778_v25 = vrot.slane %v1242_v45, %v6729_v14 }
 0x2e2   : > { %v1431_v18 = vrot.slane %v1424_v9, %v6729_v14  ;;  %v1439_v2 = vrot.slane %v4936_v10, %v6729_v14  ;;  %v1440_v20 = vcombine.low %v1206_v7, %v1213_v8  ;;  %v4937_v21 = vcombine.high %v1206_v7, %v1213_v8 }
 0x2e3   : > { %v1413_v22 = vrot.slane %v1406_v15, %v6734_v19  ;;  %v1414_v23 = vcombine.low %v1397_v12, %v1405_v13  ;;  %v6781_v26 = vrot.slane %v1232_v44, %v6729_v14  ;;  %v1788_v32 = vpack.i.b16 %v1787_v46, %v1786_v24  ;;  %v1933_v24 = vpop.permute.xlu1 %1932 }
 0x2e4   : > { %v1447_v27 = vrot.slane %v1440_v20, %v6729_v14  ;;  %v1455_v30 = vrot.slane %v4937_v21, %v6729_v14  ;;  %v1456_v31 = vcombine.low %v1431_v18, %v1439_v2  ;;  %v6789_v35 = vrot.slane %v1308_v16, %v6729_v14 }
 0x2e5   : > { %v1421_v34 = vrot.slane %v1414_v23, %v6734_v19  ;;  %v1798_v36 = vcombine.high %v6749_v38, %v6727_v6  ;;  %v1805_v37 = vrot.slane %v6749_v38, %v6729_v14  ;;  %v1864_v41 = vcombine.high %v1788_v32, %v6727_v6 }
 0x2e6   : > { %v1463_v39 = vrot.slane %v1456_v31, %v6734_v19  ;;  %v1464_v40 = vcombine.low %v1447_v27, %v1455_v30  ;;  %v1239_v63 = vshrl.u32 %v6769_v11, 16  ;;  %v1871_v44 = vrot.slane %v1788_v32, %v6729_v14 }
 0x2e7   : > { %v1422_v42 = vcombine.low %v1413_v22, %v1421_v34  ;;  %v1423_v43 = vcombine.high %v1413_v22, %v1421_v34  ;;  %v1792_v45 = vpack.i.b16 %v1781_v33, %v6732_v17  ;;  %v1812_v47 = vrot.slane %v1798_v36, %v6729_v14 }
 0x2e8   : > { %v1471_v46 = vrot.slane %v1464_v40, %v6734_v19  ;;  %v1878_v38 = vrot.slane %v1864_v41, %v6729_v14  ;;  %v1795_v48 = vshrl.u32 %v1781_v33, 16  ;;  %v1940_v52 = vpack.i.b16 %v1933_v24, %v6714_v0 }
 0x2e9   : > { %v1478_v49 = vshrl.u32 %v1422_v42, 16  ;;  %v1813_v50 = vcombine.high %v1792_v45, %v6727_v6  ;;  %v1820_v51 = vrot.slane %v1792_v45, %v6729_v14  ;;  %v1486_v56 = vshrl.u32 %v1423_v43, 16  ;;  %v1223_v45 = vpop.permute.xlu0 %1222 }
 0x2ea   : > { %v1472_v53 = vcombine.low %v1463_v39, %v1471_v46  ;;  %v1473_v55 = vcombine.high %v1463_v39, %v1471_v46  ;;  %v1796_v57 = vpack.i.b16 %v1795_v48, %v1794_v29  ;;  %v1943_v61 = vshrl.u32 %v1933_v24, 16 }
 0x2eb   : > { %v1827_v58 = vrot.slane %v1813_v50, %v6729_v14  ;;  %v1828_v59 = vcombine.low %v1805_v37, %v1820_v51  ;;  %v1829_v60 = vcombine.high %v1805_v37, %v1820_v51  ;;  %v1954_v22 = vcombine.high %v1940_v52, %v6727_v6 }
 0x2ec   : > { %v1476_v62 = vpack.i.b16 %v1472_v53, %v1422_v42  ;;  %v1479_v1 = vshrl.u32 %v1472_v53, 16  ;;  %v1484_v3 = vpack.i.b16 %v1473_v55, %v1423_v43  ;;  %v1487_v4 = vshrl.u32 %v1473_v55, 16 }
 0x2ed   : > { %v1836_v5 = vrot.slane %v1828_v59, %v6734_v19  ;;  %v1843_v7 = vrot.slane %v1829_v60, %v6734_v19  ;;  %v1844_v8 = vcombine.low %v1812_v47, %v1827_v58  ;;  %v1845_v9 = vcombine.high %v1812_v47, %v1827_v58 }
 0x2ee   : > { %v1480_v10 = vpack.i.b16 %v1479_v1, %v1478_v49  ;;  %v1488_v12 = vpack.i.b16 %v1487_v4, %v1486_v56  ;;  %1491 = vst.msk [vmem:[#allocation2] sm:$0xff] %vm1490_vm0, %v1476_v62  ;;  %1493 = vst.msk [vmem:[#allocation2 + $0x10] sm:$0xff] %vm1490_vm0, %v1484_v3  ;;  %v1879_v17 = vcombine.high %v1796_v57, %v6727_v6  ;;  %v6850_v56 = vpop.permute.xlu1 %1936  ;;  %v1238_v60 = vshrl.u32 %v1223_v45, 16 }
 0x2ef   : > { %v1886_v29 = vrot.slane %v1796_v57, %v6729_v14  ;;  %v1852_v13 = vrot.slane %v1844_v8, %v6734_v19  ;;  %v1859_v15 = vrot.slane %v1845_v9, %v6734_v19  ;;  %v2086_v16 = vcombine.low %v1836_v5, %v1843_v7  ;;  %v1935_v9 = vpop.permute.xlu0 %1934 }
 0x2f0   : > { %v4959_v18 = vcombine.high %v1836_v5, %v1843_v7  ;;  %1492 = vst.msk [vmem:[#allocation2 + $0x8] sm:$0xff] %vm1490_vm0, %v1480_v10  ;;  %1494 = vst.msk [vmem:[#allocation2 + $0x18] sm:$0xff] %vm1490_vm0, %v1488_v12  ;;  %v1893_v2 = vrot.slane %v1879_v17, %v6729_v14  ;;  %v6829_v41 = vpack.i.b16 %v1943_v61, %v1942_v28  ;;  %v1951_v8 = vshrl.u32 %v6850_v56, 16 }
 0x2f1   : > { %v1894_v20 = vcombine.low %v1871_v44, %v1886_v29  ;;  %v1895_v21 = vcombine.high %v1871_v44, %v1886_v29  ;;  %v2093_v23 = vrot.slane %v2086_v16, %v6729_v14  ;;  %v2102_v30 = vcombine.low %v1852_v13, %v1859_v15 }
 0x2f2   : > { %v2101_v27 = vrot.slane %v4959_v18, %v6729_v14  ;;  %v4960_v31 = vcombine.high %v1852_v13, %v1859_v15  ;;  %v1910_v34 = vcombine.low %v1878_v38, %v1893_v2  ;;  %v1911_v36 = vcombine.high %v1878_v38, %v1893_v2 }
 0x2f3   : > { %v1902_v32 = vrot.slane %v1894_v20, %v6734_v19  ;;  %v1909_v33 = vrot.slane %v1895_v21, %v6734_v19  ;;  %v2109_v37 = vrot.slane %v2102_v30, %v6729_v14  ;;  %v6835_v38 = vrot.slane %v1940_v52, %v6729_v14 }
 0x2f4   : > { %v2117_v39 = vrot.slane %v4960_v31, %v6729_v14  ;;  %v2118_v40 = vcombine.low %v2093_v23, %v2101_v27  ;;  %v1918_v24 = vrot.slane %v1910_v34, %v6734_v19  ;;  %v1925_v42 = vrot.slane %v1911_v36, %v6734_v19 }
 0x2f5   : > { %v2136_v43 = vcombine.low %v1902_v32, %v1909_v33  ;;  %v4961_v44 = vcombine.high %v1902_v32, %v1909_v33  ;;  %v6838_v48 = vrot.slane %v1954_v22, %v6729_v14  ;;  %v2020_v53 = vcombine.high %v6829_v41, %v6727_v6 }
 0x2f6   : > { %v2125_v46 = vrot.slane %v2118_v40, %v6734_v19  ;;  %v2126_v47 = vcombine.low %v2109_v37, %v2117_v39  ;;  %v2152_v49 = vcombine.low %v1918_v24, %v1925_v42  ;;  %v4962_v50 = vcombine.high %v1918_v24, %v1925_v42 }
 0x2f7   : > { %v2143_v0 = vrot.slane %v2136_v43, %v6729_v14  ;;  %v2151_v28 = vrot.slane %v4961_v44, %v6729_v14  ;;  %v6847_v55 = vrot.slane %v6829_v41, %v6729_v14  ;;  %v1236_v52 = vpack.i.b16 %v6769_v11, %v1223_v45 }
 0x2f8   : > { %v2133_v51 = vrot.slane %v2126_v47, %v6734_v19  ;;  %v2159_v57 = vrot.slane %v2152_v49, %v6729_v14  ;;  %v2167_v58 = vrot.slane %v4962_v50, %v6729_v14  ;;  %v1240_v7 = vpack.i.b16 %v1239_v63, %v1238_v60 }
 0x2f9   : > { %v2168_v59 = vcombine.low %v2143_v0, %v2151_v28  ;;  %v1257_v1 = vcombine.high %v1236_v52, %v6727_v6  ;;  %v1264_v3 = vrot.slane %v1236_v52, %v6729_v14  ;;  %v1948_v20 = vpack.i.b16 %v6850_v56, %v1935_v9 }
 0x2fa   : > { %v2134_v61 = vcombine.low %v2125_v46, %v2133_v51  ;;  %v2135_v62 = vcombine.high %v2125_v46, %v2133_v51  ;;  %v2176_v5 = vcombine.low %v2159_v57, %v2167_v58  ;;  %v1323_v16 = vcombine.high %v1240_v7, %v6727_v6 }
 0x2fb   : > { %v2175_v4 = vrot.slane %v2168_v59, %v6734_v19  ;;  %v1271_v17 = vrot.slane %v1257_v1, %v6729_v14  ;;  %v1272_v29 = vcombine.low %v6759_v54, %v1264_v3  ;;  %v1273_v15 = vcombine.high %v6759_v54, %v1264_v3 }
 0x2fc   : > { %v2190_v10 = vshrl.u32 %v2134_v61, 16  ;;  %v2198_v12 = vshrl.u32 %v2135_v62, 16  ;;  %v2183_v13 = vrot.slane %v2176_v5, %v6734_v19  ;;  %v1330_v18 = vrot.slane %v1240_v7, %v6729_v14 }
 0x2fd   : > { %v1280_v11 = vrot.slane %v1272_v29, %v6734_v19  ;;  %v1288_v63 = vcombine.low %v6778_v25, %v1271_v17  ;;  %v1289_v2 = vcombine.high %v6778_v25, %v1271_v17  ;;  %v1287_v23 = vrot.slane %v1273_v15, %v6734_v19 }
 0x2fe   : > { %v2184_v21 = vcombine.low %v2175_v4, %v2183_v13  ;;  %v2185_v22 = vcombine.high %v2175_v4, %v2183_v13  ;;  %v1337_v27 = vrot.slane %v1323_v16, %v6729_v14  ;;  %v1338_v31 = vcombine.low %v6781_v26, %v1330_v18 }
 0x2ff   : > { %v1296_v54 = vrot.slane %v1288_v63, %v6734_v19  ;;  %v1303_v30 = vrot.slane %v1289_v2, %v6734_v19  ;;  %v1339_v32 = vcombine.high %v6781_v26, %v1330_v18  ;;  %v1495_v44 = vcombine.low %v1280_v11, %v1287_v23 }
 0x300   : > { %v2188_v33 = vpack.i.b16 %v2184_v21, %v2134_v61  ;;  %v2191_v34 = vshrl.u32 %v2184_v21, 16  ;;  %v2196_v36 = vpack.i.b16 %v2185_v22, %v2135_v62  ;;  %v2199_v25 = vshrl.u32 %v2185_v22, 16 }
 0x301   : > { %v1346_v37 = vrot.slane %v1338_v31, %v6734_v19  ;;  %v1353_v39 = vrot.slane %v1339_v32, %v6734_v19  ;;  %v1354_v40 = vcombine.low %v6789_v35, %v1337_v27  ;;  %v1355_v24 = vcombine.high %v6789_v35, %v1337_v27 }
 0x302   : > { %v2192_v42 = vpack.i.b16 %v2191_v34, %v2190_v10  ;;  %v2200_v43 = vpack.i.b16 %v2199_v25, %v2198_v12  ;;  %2202 = vst.msk [vmem:[#allocation4] sm:$0xff] %vm1490_vm0, %v2188_v33  ;;  %2204 = vst.msk [vmem:[#allocation4 + $0x10] sm:$0xff] %vm1490_vm0, %v2196_v36  ;;  %v4938_v26 = vcombine.high %v1280_v11, %v1287_v23  ;;  %v1950_v61 = vshrl.u32 %v1935_v9, 16 }
 0x303   : > { %v1362_v45 = vrot.slane %v1354_v40, %v6734_v19  ;;  %v1369_v46 = vrot.slane %v1355_v24, %v6734_v19  ;;  %v1511_v47 = vcombine.low %v1296_v54, %v1303_v30  ;;  %v4939_v0 = vcombine.high %v1296_v54, %v1303_v30 }
 0x304   : > { %2203 = vst.msk [vmem:[#allocation4 + $0x8] sm:$0xff] %vm1490_vm0, %v2192_v42  ;;  %2205 = vst.msk [vmem:[#allocation4 + $0x18] sm:$0xff] %vm1490_vm0, %v2200_v43  ;;  %v1502_v35 = vrot.slane %v1495_v44, %v6729_v14  ;;  %v1510_v28 = vrot.slane %v4938_v26, %v6729_v14  ;;  %v1545_v49 = vcombine.low %v1346_v37, %v1353_v39 }
 0x305   : > { %v4940_v50 = vcombine.high %v1346_v37, %v1353_v39  ;;  %v1518_v51 = vrot.slane %v1511_v47, %v6729_v14  ;;  %v1526_v52 = vrot.slane %v4939_v0, %v6729_v14  ;;  %v1561_v56 = vcombine.low %v1362_v45, %v1369_v46 }
 0x306   : > { %v4941_v57 = vcombine.high %v1362_v45, %v1369_v46  ;;  %v1527_v58 = vcombine.low %v1502_v35, %v1510_v28  ;;  %v1552_v59 = vrot.slane %v1545_v49, %v6729_v14  ;;  %v1969_v4 = vcombine.high %v1948_v20, %v6727_v6 }
 0x307   : > { %v1560_v60 = vrot.slane %v4940_v50, %v6729_v14  ;;  %v1535_v62 = vcombine.low %v1518_v51, %v1526_v52  ;;  %v1568_v1 = vrot.slane %v1561_v56, %v6729_v14  ;;  %v2034_v5 = vrot.slane %v2020_v53, %v6729_v14 }
 0x308   : > { %v1576_v3 = vrot.slane %v4941_v57, %v6729_v14  ;;  %v1952_v10 = vpack.i.b16 %v1951_v8, %v1950_v61  ;;  %v1976_v12 = vrot.slane %v1948_v20, %v6729_v14  ;;  %v1534_v17 = vrot.slane %v1527_v58, %v6734_v19 }
 0x309   : > { %v1577_v7 = vcombine.low %v1552_v59, %v1560_v60  ;;  %v1542_v9 = vrot.slane %v1535_v62, %v6734_v19  ;;  %v1983_v13 = vrot.slane %v1969_v4, %v6729_v14 }
 0x30a   : > { %v1585_v29 = vcombine.low %v1568_v1, %v1576_v3  ;;  %v1984_v16 = vcombine.low %v6835_v38, %v1976_v12  ;;  %v1985_v18 = vcombine.high %v6835_v38, %v1976_v12  ;;  %v2035_v41 = vcombine.high %v1952_v10, %v6727_v6 }
 0x30b   : > { %v1584_v15 = vrot.slane %v1577_v7, %v6734_v19  ;;  %v1543_v53 = vcombine.low %v1534_v17, %v1542_v9  ;;  %v1544_v11 = vcombine.high %v1534_v17, %v1542_v9  ;;  %v2000_v63 = vcombine.low %v6838_v48, %v1983_v13 }
 0x30c   : > { %v1592_v8 = vrot.slane %v1585_v29, %v6734_v19  ;;  %v1992_v2 = vrot.slane %v1984_v16, %v6734_v19  ;;  %v1999_v20 = vrot.slane %v1985_v18, %v6734_v19  ;;  %v2001_v21 = vcombine.high %v6838_v48, %v1983_v13 }
 0x30d   : > { %v2042_v22 = vrot.slane %v1952_v10, %v6729_v14  ;;  %v1599_v54 = vshrl.u32 %v1543_v53, 16  ;;  %v1607_v38 = vshrl.u32 %v1544_v11, 16  ;;  %v2008_v6 = vrot.slane %v2000_v63, %v6734_v19 }
 0x30e   : > { %v1593_v23 = vcombine.low %v1584_v15, %v1592_v8  ;;  %v1594_v27 = vcombine.high %v1584_v15, %v1592_v8  ;;  %v2015_v30 = vrot.slane %v2001_v21, %v6734_v19  ;;  %v2049_v31 = vrot.slane %v2035_v41, %v6729_v14 }
 0x30f   : > { %v2050_v32 = vcombine.low %v6847_v55, %v2042_v22  ;;  %v2051_v48 = vcombine.high %v6847_v55, %v2042_v22  ;;  %v2206_v43 = vcombine.low %v1992_v2, %v1999_v20  ;;  %v4963_v44 = vcombine.high %v1992_v2, %v1999_v20 }
 0x310   : > { %v1597_v33 = vpack.i.b16 %v1593_v23, %v1543_v53  ;;  %v1600_v34 = vshrl.u32 %v1593_v23, 16  ;;  %v1605_v36 = vpack.i.b16 %v1594_v27, %v1544_v11  ;;  %v1608_v25 = vshrl.u32 %v1594_v27, 16 }
 0x311   : > { %v2058_v37 = vrot.slane %v2050_v32, %v6734_v19  ;;  %v2066_v39 = vcombine.low %v2034_v5, %v2049_v31  ;;  %v2067_v40 = vcombine.high %v2034_v5, %v2049_v31  ;;  %v2065_v26 = vrot.slane %v2051_v48, %v6734_v19 }
 0x312   : > { %v1601_v24 = vpack.i.b16 %v1600_v34, %v1599_v54  ;;  %v1609_v42 = vpack.i.b16 %v1608_v25, %v1607_v38  ;;  %1611 = vst.msk [vmem:[#allocation3] sm:$0xff] %vm1490_vm0, %v1597_v33  ;;  %1613 = vst.msk [vmem:[#allocation3 + $0x10] sm:$0xff] %vm1490_vm0, %v1605_v36  ;;  %v2222_v47 = vcombine.low %v2008_v6, %v2015_v30 }
 0x313   : > { %v2074_v45 = vrot.slane %v2066_v39, %v6734_v19  ;;  %v2081_v46 = vrot.slane %v2067_v40, %v6734_v19  ;;  %v2213_v55 = vrot.slane %v2206_v43, %v6729_v14  ;;  %v2221_v0 = vrot.slane %v4963_v44, %v6729_v14 }
 0x314   : > { %1612 = vst.msk [vmem:[#allocation3 + $0x8] sm:$0xff] %vm1490_vm0, %v1601_v24  ;;  %1614 = vst.msk [vmem:[#allocation3 + $0x18] sm:$0xff] %vm1490_vm0, %v1609_v42  ;;  %v4964_v35 = vcombine.high %v2008_v6, %v2015_v30  ;;  %v2229_v28 = vrot.slane %v2222_v47, %v6729_v14  ;;  %v2256_v49 = vcombine.low %v2058_v37, %v2065_v26 }
 0x315   : > { %v4965_v50 = vcombine.high %v2058_v37, %v2065_v26  ;;  %v2272_v51 = vcombine.low %v2074_v45, %v2081_v46  ;;  %v2238_v56 = vcombine.low %v2213_v55, %v2221_v0  ;;  %v4966_v57 = vcombine.high %v2074_v45, %v2081_v46 }
 0x316   : > { %v2237_v52 = vrot.slane %v4964_v35, %v6729_v14  ;;  %v2263_v58 = vrot.slane %v2256_v49, %v6729_v14 }
 0x317   : > { %v2271_v59 = vrot.slane %v4965_v50, %v6729_v14  ;;  %v2279_v60 = vrot.slane %v2272_v51, %v6729_v14  ;;  %v2287_v62 = vrot.slane %v4966_v57, %v6729_v14  ;;  %v2245_v3 = vrot.slane %v2238_v56, %v6734_v19 }
 0x318   : > { %v2246_v61 = vcombine.low %v2229_v28, %v2237_v52 }
 0x319   : > { %v2288_v1 = vcombine.low %v2263_v58, %v2271_v59  ;;  %v2296_v5 = vcombine.low %v2279_v60, %v2287_v62 }
 0x31a   : > { %v2253_v4 = vrot.slane %v2246_v61, %v6734_v19 }
 0x31b   : > { %v2295_v12 = vrot.slane %v2288_v1, %v6734_v19  ;;  %v2303_v17 = vrot.slane %v2296_v5, %v6734_v19 }
 0x31c   : > { %v2254_v7 = vcombine.low %v2245_v3, %v2253_v4  ;;  %v2255_v10 = vcombine.high %v2245_v3, %v2253_v4 }
 0x31d   : > { %v2304_v9 = vcombine.low %v2295_v12, %v2303_v17  ;;  %v2305_v29 = vcombine.high %v2295_v12, %v2303_v17 }
 0x31e   : > { %v2310_v13 = vshrl.u32 %v2254_v7, 16  ;;  %v2318_v15 = vshrl.u32 %v2255_v10, 16 }
 0x31f   : > { %v2308_v16 = vpack.i.b16 %v2304_v9, %v2254_v7  ;;  %v2311_v18 = vshrl.u32 %v2304_v9, 16  ;;  %v2316_v41 = vpack.i.b16 %v2305_v29, %v2255_v10  ;;  %v2319_v14 = vshrl.u32 %v2305_v29, 16 }
 0x321   : > { %v2312_v53 = vpack.i.b16 %v2311_v18, %v2310_v13  ;;  %v2320_v11 = vpack.i.b16 %v2319_v14, %v2318_v15  ;;  %2322 = vst.msk [vmem:[#allocation5] sm:$0xff] %vm1490_vm0, %v2308_v16  ;;  %2324 = vst.msk [vmem:[#allocation5 + $0x10] sm:$0xff] %vm1490_vm0, %v2316_v41 }
 0x323   : > { %2323 = vst.msk [vmem:[#allocation5 + $0x8] sm:$0xff] %vm1490_vm0, %v2312_v53  ;;  %2325 = vst.msk [vmem:[#allocation5 + $0x18] sm:$0xff] %vm1490_vm0, %v2320_v11 }
 0x324 PF: > { %v5589_v19 = vld [vmem:[#allocation11] sm:$0xff]   ;;  %s7433_s2 = sld [smem:[#allocation36_spill]]  ;;  %v6151_v8 = vmov 0.0   ;;  %v5590_v63 = vld [vmem:[#allocation11 + $0x8] sm:$0xff]   ;;  %vm6152_vm1 = vmmov 0   ;;  %v5591_v2 = vld [vmem:[#allocation11 + $0x10] sm:$0xff]   ;;  %v2454_v39 = vlaneseq }
 0x325   : > { %5157 = vmatprep.subr.bf16.mxu0 %v6151_v8  ;;  %5177 = vmatprep.subr.bf16.mxu1 %v6151_v8  ;;  %v5592_v20 = vld [vmem:[#allocation11 + $0x18] sm:$0xff]   ;;  %v5593_v21 = vld [vmem:[#allocation11 + $0x20] sm:$0xff]   ;;  %v5594_v22 = vld [vmem:[#allocation11 + $0x28] sm:$0xff]   ;;  %s7434_s25 = sld [smem:[#allocation49_spill]]  ;;  %s6153_s1 = smov 32   ;;  %vm2620_vm2 = vcmask 261120  }
 0x326   : > { %5158 = vmatpush3.bf16.msra.mxu0 %v5589_v19  ;;  %5173 = vmatprep.mubr.msk.bf16.mxu0 %vm6152_vm1, %v6151_v8  ;;  %v5595_v23 = vld [vmem:[#allocation11 + $0x30] sm:$0xff]   ;;  %v5596_v27 = vld [vmem:[#allocation11 + $0x38] sm:$0xff]   ;;  %s6154_s23 = smov 96   ;;  %s6155_s18 = smov 64   ;;  %v6156_v48 = vmov 1983009808  }
 0x327   : > { %5159 = vmatprep.subr.bf16.mxu0 %v6151_v8  ;;  %5179 = vmatprep.mubr.msk.bf16.mxu1 %vm6152_vm1, %v6151_v8  ;;  %v2612_v36 = vld [vmem:[#allocation2] sm:$0xff]  ;;  %v2452_v37 = vunpack.c.l.s4 %v6156_v48  ;;  %v6157_v40 = vmov 1934713408   ;;  %v6970_v43 = vshrl.u32 %v2454_v39, 7  ;;  %v6158_v59 = vmov 0   ;;  %v2614_v48 = vld [vmem:[#allocation2 + $0x10] sm:$0xff] }
 0x328   : > { %v2625_v25 = vsel %vm2620_vm2, %v2612_v36, 0  ;;  %v2469_v24 = vunpack.c.l.s4 %v6157_v40  ;;  %v2717_v40 = vsel %vm2620_vm2, %v2614_v48, 0  ;;  %vm2805_vm3 = vcmask 130048   ;;  %v2617_v48 = vld [vmem:[#allocation3 + $0x8] sm:$0xff]  ;;  %s7435_s29 = sld [smem:[#allocation53_spill]]  ;;  %s7436_s11 = sld [smem:[#allocation60_spill]] }
 0x329   : > { %5178 = vmatpush3.bf16.xpose.msra.mxu1 %v2625_v25  ;;  %v2453_v42 = vunpack.c.0.s8 %v2452_v37  ;;  %vm3197_vm4 = vcmask 523264   ;;  %vm3200_vm5 = vcmask 785408   ;;  %s7438_s7 = sld [smem:[#allocation55_spill]]  ;;  %s7439_s19 = sld [smem:[#allocation57_spill]] }
 0x32a   : > { %s4967_s4 = sshll.u32 %s7433_s2, 3  ;;  %5160 = vmatpush3.bf16.msra.mxu0 %v5590_v63  ;;  %5183 = vmatprep.subr.bf16.mxu1 %v6151_v8  ;;  %v2470_v44 = vunpack.c.0.s8 %v2469_v24  ;;  %s7441_s9 = sld [smem:[#allocation63_spill]] }
 0x32b   : > { %s2327_s15 = sshra.s32 %s4967_s4, 3  ;;  %5161 = vmatprep.subr.bf16.mxu0 %v6151_v8  ;;  %v4969_v38 = vld [vmem:[%s7434_s25] ss:$0 sm:$0xff]  ;;  %v6973_v26 = vsub.s32 %v2453_v42, %v6970_v43  ;;  %v2615_v42 = vld [vmem:[#allocation2 + $0x18] sm:$0xff]  ;;  %s7442_s28 = sld [smem:[#allocation58_spill]] }
 0x32c   : > { %s4968_s27 = sshll.u32 %s2327_s15, 2  ;;  %v6977_v55 = vsub.s32 %v2470_v44, %v6970_v43  ;;  %s7437_s15 = sld [smem:[#allocation61_spill]] }
 0x32d   : > { %s2330_s30 = scalar_lea.vmem [#allocation6], %s4968_s27  ;;  %s7443_s27 = sld [smem:[#allocation59_spill]] }
 0x32e   : > { %5162 = vmatpush3.bf16.msra.mxu0 %v5591_v2  ;;  %v6956_v54 = vld [vmem:[%s2330_s30] sm:$0xf]  ;;  %s5061_s30 = sshll.u32 %s6117_s0, 1  ;;  %s7446_s6 = sld [smem:[#allocation65_spill]] }
 0x32f   : > { %5163 = vmatprep.subr.bf16.mxu0 %v6151_v8  ;;  %s4723_s8 = sadd.s32 %s7433_s2, %s5061_s30  ;;  %s7447_s0 = sld [smem:[#allocation66_spill]] }
 0x330   : > { %s4712_s2 = scalar_lea.sflag [#allocation8], %s889_s22 }
 0x332   : > { %5164 = vmatpush3.bf16.msra.mxu0 %v5592_v20 }
 0x333   : > { %5165 = vmatprep.subr.bf16.mxu0 %v6151_v8 }
 0x335   : > { %s7448_s4 = smov %s7447_s0 }
 0x336   : > { %5166 = vmatpush3.bf16.msra.mxu0 %v5593_v21 }
 0x337   : > { %5167 = vmatprep.subr.bf16.mxu0 %v6151_v8 }
 0x33a   : > { %5168 = vmatpush3.bf16.msra.mxu0 %v5594_v22 }
 0x33b   : > { %5169 = vmatprep.subr.bf16.mxu0 %v6151_v8 }
 0x33e   : > { %5170 = vmatpush3.bf16.msra.mxu0 %v5595_v23 }
 0x33f   : > { %5171 = vmatprep.subr.bf16.mxu0 %v6151_v8 }
 0x342   : > { %5172 = vmatpush3.bf16.msra.mxu0 %v5596_v27 }
 0x343   : > { %5225 = vmatprep.subr.bf16.mxu0 %v6151_v8 }
 0x345   : > { %5174 = vmatmul.mubr.bf16.vlgmr.msra.gmra.mrb[0].mxu0 %v6956_v54 }
 0x346   : > { %5241 = vmatprep.mubr.msk.bf16.mxu0 %vm6152_vm1, %v6151_v8 }
 0x418   : > { %v2437_v6 = vpop.f32.mrb[0].mxu0 }
 0x419   : > { %v2438_v30 = vadd.f32 %v4969_v38, %v2437_v6  ;;  %v5175_v31 = vpop.f32.mrb[1].mxu0 }
 0x41a   : > { %v2440_v32 = vpop.f32.mrb[2].mxu0  ;;  %v2613_v31 = vld [vmem:[#allocation2 + $0x8] sm:$0xff] }
 0x41b   : > { %v2443_v33 = vpack.c.bf16 %v2438_v30, %v2438_v30  ;;  %v5176_v34 = vpop.f32.mrb[3].mxu0  ;;  %v2671_v36 = vsel %vm2620_vm2, %v2613_v31, 0  ;;  %v2616_v31 = vld [vmem:[#allocation3] sm:$0xff] }
 0x41d   : > { %2449 = vrot.lane.b32.xlu1 %v2443_v33, %s6153_s1  ;;  %2445 = vrot.lane.b32.xlu0 %v2443_v33, %s6154_s23  ;;  %v2457_v52 = vrot.slane %v2443_v33, %v6973_v26 }
 0x421   : > { %2447 = vrot.lane.b32.xlu0 %v2443_v33, %s6155_s18 }
 0x48f   : > { %v2450_v45 = vpop.permute.xlu1 %2449  ;;  %v2446_v46 = vpop.permute.xlu0 %2445 }
 0x490   : > { %v2499_v47 = vrot.slane %v2450_v45, %v6973_v26  ;;  %v2491_v0 = vrot.slane %v2446_v46, %v6973_v26  ;;  %v2763_v46 = vsel %vm2620_vm2, %v2615_v42, 0  ;;  %v2618_v42 = vld [vmem:[#allocation3 + $0x10] sm:$0xff] }
 0x492   : > { %v2500_v35 = vcombine.low %v2491_v0, %v2499_v47  ;;  %v2501_v28 = vcombine.high %v2491_v0, %v2499_v47 }
 0x493   : > { %v2448_v49 = vpop.permute.xlu0 %2447 }
 0x494   : > { %v2508_v50 = vrot.slane %v2500_v35, %v6977_v55  ;;  %v2465_v51 = vrot.slane %v2448_v49, %v6973_v26  ;;  %v2515_v56 = vrot.slane %v2501_v28, %v6977_v55 }
 0x496   : > { %v2466_v57 = vcombine.low %v2457_v52, %v2465_v51  ;;  %v2467_v58 = vcombine.high %v2457_v52, %v2465_v51  ;;  %v2516_v60 = vcombine.high %v2508_v50, %v6158_v59  ;;  %v2517_v1 = vcombine.high %v2515_v56, %v6158_v59 }
 0x497   : > { %v2523_v3 = vshrl.u32 %v2508_v50, 16  ;;  %v2539_v17 = vshrl.u32 %v2515_v56, 16 }
 0x498   : > { %v2474_v61 = vrot.slane %v2466_v57, %v6977_v55  ;;  %v2481_v62 = vrot.slane %v2467_v58, %v6977_v55  ;;  %v2531_v12 = vshrl.u32 %v2516_v60, 16  ;;  %v2547_v41 = vshrl.u32 %v2517_v1, 16 }
 0x49a   : > { %v2482_v4 = vcombine.high %v2474_v61, %v6158_v59  ;;  %v2483_v5 = vcombine.high %v2481_v62, %v6158_v59  ;;  %v2520_v7 = vpack.i.b16 %v2508_v50, %v2474_v61  ;;  %v2522_v10 = vshrl.u32 %v2474_v61, 16 }
 0x49b   : > { %v2536_v9 = vpack.i.b16 %v2515_v56, %v2481_v62  ;;  %v2538_v29 = vshrl.u32 %v2481_v62, 16 }
 0x49c   : > { %v2524_v13 = vpack.i.b16 %v2523_v3, %v2522_v10  ;;  %v2528_v15 = vpack.i.b16 %v2516_v60, %v2482_v4  ;;  %v2530_v16 = vshrl.u32 %v2482_v4, 16  ;;  %v2544_v18 = vpack.i.b16 %v2517_v1, %v2483_v5 }
 0x49d   : > { %v2540_v14 = vpack.i.b16 %v2539_v17, %v2538_v29  ;;  %v2546_v53 = vshrl.u32 %v2483_v5, 16  ;;  %v2550_v11 = vcombine.low %v2520_v7, %v2536_v9 }
 0x49e   : > { %v2532_v19 = vpack.i.b16 %v2531_v12, %v2530_v16  ;;  %v2558_v63 = vcombine.low %v2528_v15, %v2544_v18 }
 0x49f   : > { %v2548_v2 = vpack.i.b16 %v2547_v41, %v2546_v53  ;;  %v2575_v20 = vcombine.low %v2524_v13, %v2540_v14  ;;  %v2557_v22 = vrot.slane %v2550_v11, %v6973_v26 }
 0x4a0   : > { %v2565_v21 = vrot.slane %v2558_v63, %v6973_v26 }
 0x4a1   : > { %v2583_v23 = vcombine.low %v2532_v19, %v2548_v2  ;;  %v2582_v27 = vrot.slane %v2575_v20, %v6973_v26 }
 0x4a2   : > { %v2566_v38 = vcombine.low %v2557_v22, %v2565_v21 }
 0x4a3   : > { %v2590_v6 = vrot.slane %v2583_v23, %v6973_v26 }
 0x4a4   : > { %v2573_v32 = vrot.slane %v2566_v38, %v6977_v55 }
 0x4a5   : > { %v2591_v30 = vcombine.low %v2582_v27, %v2590_v6 }
 0x4a6   : > { %v2603_v37 = vshrl.u32 %v2573_v32, 16  ;;  %v2574_v44 = vcombine.high %v2573_v32, %v6158_v59 }
 0x4a7   : > { %v2598_v33 = vrot.slane %v2591_v30, %v6977_v55 }
 0x4a8   : > { %v2609_v0 = vshrl.u32 %v2574_v44, 16 }
 0x4a9   : > { %v2602_v34 = vpack.i.b16 %v2598_v33, %v2573_v32  ;;  %v2604_v25 = vshrl.u32 %v2598_v33, 16  ;;  %v2599_v24 = vcombine.high %v2598_v33, %v6158_v59 }
 0x4ab   : > { %5180 = vmatmul.mubr.msk.bf16.vlgmr.msra.gmra.mrb[0].mxu1 %vm2620_vm2, %v2602_v34  ;;  %v2605_v39 = vpack.i.b16 %v2604_v25, %v2603_v37  ;;  %v2608_v45 = vpack.i.b16 %v2599_v24, %v2574_v44  ;;  %v2610_v47 = vshrl.u32 %v2599_v24, 16 }
 0x4ac   : > { %5184 = vmatpush3.bf16.xpose.msra.mxu1 %v2671_v36  ;;  %5185 = vmatprep.mubr.msk.bf16.mxu1 %vm6152_vm1, %v6151_v8 }
 0x4ad   : > { %5189 = vmatprep.subr.bf16.mxu1 %v6151_v8  ;;  %v2611_v35 = vpack.i.b16 %v2610_v47, %v2609_v0  ;;  %v2619_v0 = vld [vmem:[#allocation3 + $0x18] sm:$0xff] }
 0x4b3   : > { %5186 = vmatmul.mubr.msk.bf16.vlgmr.msra.gmra.mrb[4].mxu1 %vm2620_vm2, %v2605_v39 }
 0x4b4   : > { %5190 = vmatpush3.bf16.xpose.msra.mxu1 %v2717_v40  ;;  %5191 = vmatprep.mubr.msk.bf16.mxu1 %vm6152_vm1, %v6151_v8 }
 0x4b5   : > { %5195 = vmatprep.subr.bf16.mxu1 %v6151_v8 }
 0x4bb   : > { %5192 = vmatmul.mubr.msk.bf16.vlgmr.msra.gmra.mrb[8].mxu1 %vm2620_vm2, %v2608_v45 }
 0x4bc   : > { %5196 = vmatpush3.bf16.xpose.msra.mxu1 %v2763_v46  ;;  %5197 = vmatprep.mubr.msk.bf16.mxu1 %vm6152_vm1, %v6151_v8 }
 0x4bd   : > { %5201 = vmatprep.subr.bf16.mxu1 %v6151_v8 }
 0x4c3   : > { %5198 = vmatmul.mubr.msk.bf16.vlgmr.msra.gmra.mrb[12].mxu1 %vm2620_vm2, %v2611_v35 }
 0x4c4   : > { %5203 = vmatprep.mubr.msk.bf16.mxu1 %vm6152_vm1, %v6151_v8  ;;  %5202 = vmatpush3.bf16.msra.mxu1 %v2616_v31 }
 0x4c5   : > { %5207 = vmatprep.subr.bf16.mxu1 %v6151_v8 }
 0x57e   : > { %v2661_v28 = vpop.f32.mrb[0].mxu1 }
 0x57f   : > { %v5181_v49 = vpop.f32.mrb[1].mxu1  ;;  %v2806_v50 = vsel %vm2805_vm3, %v2661_v28, -inf }
 0x580   : > { %2807 = vmax.xlane.f32.xlu1 %v2806_v50  ;;  %v2664_v51 = vpop.f32.mrb[2].mxu1  ;;  %v5597_v50 = vld [vmem:[#allocation14] sm:$0xff]  }
 0x581   : > { %v5182_v52 = vpop.f32.mrb[3].mxu1  ;;  %5226 = vmatpush3.bf16.msra.mxu0 %v5597_v50  ;;  %v5598_v51 = vld [vmem:[#allocation14 + $0x8] sm:$0xff]  }
 0x582   : > { %5227 = vmatprep.subr.bf16.mxu0 %v6151_v8  ;;  %v5599_v52 = vld [vmem:[#allocation14 + $0x10] sm:$0xff]  }
 0x585   : > { %5228 = vmatpush3.bf16.msra.mxu0 %v5598_v51 }
 0x586   : > { %v2707_v56 = vpop.f32.mrb[4].mxu1  ;;  %5229 = vmatprep.subr.bf16.mxu0 %v6151_v8 }
 0x587   : > { %v5187_v57 = vpop.f32.mrb[5].mxu1  ;;  %v2809_v58 = vsel %vm2805_vm3, %v2707_v56, -inf }
 0x588   : > { %2810 = vmax.xlane.f32.xlu0 %v2809_v58  ;;  %v2710_v60 = vpop.f32.mrb[6].mxu1  ;;  %v5601_v57 = vld [vmem:[#allocation14 + $0x20] sm:$0xff]   ;;  %v5602_v58 = vld [vmem:[#allocation14 + $0x28] sm:$0xff]  }
 0x589   : > { %v5188_v61 = vpop.f32.mrb[7].mxu1  ;;  %5230 = vmatpush3.bf16.msra.mxu0 %v5599_v52  ;;  %v5603_v60 = vld [vmem:[#allocation14 + $0x30] sm:$0xff]  }
 0x58a   : > { %5231 = vmatprep.subr.bf16.mxu0 %v6151_v8 }
 0x58e   : > { %v2753_v62 = vpop.f32.mrb[8].mxu1 }
 0x58f   : > { %v5193_v1 = vpop.f32.mrb[9].mxu1  ;;  %v2812_v3 = vsel %vm2805_vm3, %v2753_v62, -inf }
 0x590   : > { %2813 = vmax.xlane.f32.xlu0 %v2812_v3  ;;  %v2756_v4 = vpop.f32.mrb[10].mxu1 }
 0x591   : > { %v5194_v5 = vpop.f32.mrb[11].mxu1 }
 0x596   : > { %v2799_v7 = vpop.f32.mrb[12].mxu1 }
 0x597   : > { %v5199_v10 = vpop.f32.mrb[13].mxu1  ;;  %v2815_v12 = vsel %vm2805_vm3, %v2799_v7, -inf }
 0x598   : > { %2816 = vmax.xlane.f32.xlu1 %v2815_v12  ;;  %v2802_v17 = vpop.f32.mrb[14].mxu1 }
 0x599   : > { %v5200_v9 = vpop.f32.mrb[15].mxu1 }
 0x60d   : > { %v2808_v29 = vpop.xlane.xlu1 %2807 }
 0x60e   : > { %v2818_v13 = vsub.f32 %v2661_v28, %v2808_v29 }
 0x610   : > { %v2822_v15 = vmul.f32 1.442695, %v2818_v13 }
 0x612   : > { %5661 = vpow2.f32 %v2822_v15 }
 0x615   : > { %v2811_v16 = vpop.xlane.xlu0 %2810 }
 0x616   : > { %v2819_v18 = vsub.f32 %v2707_v56, %v2811_v16  ;;  %v5600_v56 = vld [vmem:[#allocation14 + $0x18] sm:$0xff]  }
 0x617   : > { %5232 = vmatpush3.bf16.msra.mxu0 %v5600_v56 }
 0x618   : > { %v2824_v41 = vmul.f32 1.442695, %v2819_v18  ;;  %5233 = vmatprep.subr.bf16.mxu0 %v6151_v8 }
 0x61a   : > { %5663 = vpow2.f32 %v2824_v41 }
 0x61b   : > { %5234 = vmatpush3.bf16.msra.mxu0 %v5601_v57 }
 0x61c   : > { %v5662_v14 = vpop.eup %5661  ;;  %5235 = vmatprep.subr.bf16.mxu0 %v6151_v8 }
 0x61d   : > { %v2814_v53 = vpop.xlane.xlu0 %2813  ;;  %v2830_v11 = vsel %vm2805_vm3, %v5662_v14, 0.0 }
 0x61e   : > { %v2820_v19 = vsub.f32 %v2753_v62, %v2814_v53  ;;  %2831 = vadd.xlane.f32.xlu0 %v2830_v11 }
 0x61f   : > { %5236 = vmatpush3.bf16.msra.mxu0 %v5602_v58 }
 0x620   : > { %v2826_v63 = vmul.f32 1.442695, %v2820_v19  ;;  %5237 = vmatprep.subr.bf16.mxu0 %v6151_v8 }
 0x622   : > { %5665 = vpow2.f32 %v2826_v63 }
 0x623   : > { %5238 = vmatpush3.bf16.msra.mxu0 %v5603_v60  ;;  %v5604_v60 = vld [vmem:[#allocation14 + $0x38] sm:$0xff]  }
 0x624   : > { %v5664_v2 = vpop.eup %5663  ;;  %5239 = vmatprep.subr.bf16.mxu0 %v6151_v8 }
 0x625   : > { %v2817_v20 = vpop.xlane.xlu1 %2816  ;;  %v2833_v21 = vsel %vm2805_vm3, %v5664_v2, 0.0 }
 0x626   : > { %v2821_v22 = vsub.f32 %v2799_v7, %v2817_v20  ;;  %2834 = vadd.xlane.f32.xlu1 %v2833_v21 }
 0x627   : > { %5240 = vmatpush3.bf16.msra.mxu0 %v5604_v60 }
 0x628   : > { %v2828_v23 = vmul.f32 1.442695, %v2821_v22  ;;  %5265 = vmatprep.subr.bf16.mxu0 %v6151_v8 }
 0x62a   : > { %5667 = vpow2.f32 %v2828_v23 }
 0x62c   : > { %v5666_v27 = vpop.eup %5665 }
 0x62d   : > { %v2836_v38 = vsel %vm2805_vm3, %v5666_v27, 0.0 }
 0x62e   : > { %2837 = vadd.xlane.f32.xlu0 %v2836_v38 }
 0x634   : > { %v5668_v6 = vpop.eup %5667 }
 0x635   : > { %v2839_v30 = vsel %vm2805_vm3, %v5668_v6, 0.0 }
 0x636   : > { %2840 = vadd.xlane.f32.xlu1 %v2839_v30 }
 0x6ab   : > { %v2832_v32 = vpop.xlane.xlu0 %2831 }
 0x6ac   : > { %5669 = vrcp.f32 %v2832_v32 }
 0x6b3   : > { %v2835_v33 = vpop.xlane.xlu1 %2834 }
 0x6b4   : > { %5671 = vrcp.f32 %v2835_v33 }
 0x6b6   : > { %v5670_v34 = vpop.eup %5669 }
 0x6b7   : > { %v2846_v36 = vmul.f32 %v5670_v34, %v5662_v14 }
 0x6b9   : > { %v2850_v25 = vpack.c.bf16 %v2846_v36, %v2846_v36 }
 0x6bb   : > { %5204 = vmatmul.mubr.msk.bf16.vlgmr.msra.gmra.mrb[16].mxu1 %vm2805_vm3, %v2850_v25  ;;  %v2838_v37 = vpop.xlane.xlu0 %2837 }
 0x6bc   : > { %5208 = vmatpush3.bf16.msra.mxu1 %v2617_v48  ;;  %5673 = vrcp.f32 %v2838_v37  ;;  %5209 = vmatprep.mubr.msk.bf16.mxu1 %vm6152_vm1, %v6151_v8 }
 0x6bd   : > { %5213 = vmatprep.subr.bf16.mxu1 %v6151_v8 }
 0x6be   : > { %v5672_v39 = vpop.eup %5671 }
 0x6bf   : > { %v2847_v40 = vmul.f32 %v5672_v39, %v5664_v2 }
 0x6c1   : > { %v2851_v24 = vpack.c.bf16 %v2847_v40, %v2847_v40 }
 0x6c3   : > { %5210 = vmatmul.mubr.msk.bf16.vlgmr.msra.gmra.mrb[20].mxu1 %vm2805_vm3, %v2851_v24  ;;  %v2841_v44 = vpop.xlane.xlu1 %2840 }
 0x6c4   : > { %5214 = vmatpush3.bf16.msra.mxu1 %v2618_v42  ;;  %5675 = vrcp.f32 %v2841_v44  ;;  %5215 = vmatprep.mubr.msk.bf16.mxu1 %vm6152_vm1, %v6151_v8 }
 0x6c5   : > { %5219 = vmatprep.subr.bf16.mxu1 %v6151_v8 }
 0x6c6   : > { %v5674_v45 = vpop.eup %5673 }
 0x6c7   : > { %v2848_v46 = vmul.f32 %v5674_v45, %v5666_v27 }
 0x6c9   : > { %v2852_v47 = vpack.c.bf16 %v2848_v46, %v2848_v46 }
 0x6cb   : > { %5216 = vmatmul.mubr.msk.bf16.vlgmr.msra.gmra.mrb[24].mxu1 %vm2805_vm3, %v2852_v47 }
 0x6cc   : > { %5220 = vmatpush3.bf16.msra.mxu1 %v2619_v0  ;;  %5221 = vmatprep.mubr.msk.bf16.mxu1 %vm6152_vm1, %v6151_v8 }
 0x6cd   : > { %5245 = vmatprep.subr.bf16.mxu1 %v6151_v8 }
 0x6ce   : > { %v5676_v35 = vpop.eup %5675 }
 0x6cf   : > { %v2849_v28 = vmul.f32 %v5676_v35, %v5668_v6 }
 0x6d1   : > { %v2853_v49 = vpack.c.bf16 %v2849_v28, %v2849_v28 }
 0x6d3   : > { %5222 = vmatmul.mubr.msk.bf16.vlgmr.msra.gmra.mrb[28].mxu1 %vm2805_vm3, %v2853_v49 }
 0x6d4   : > { %5261 = vmatprep.mubr.msk.bf16.mxu1 %vm6152_vm1, %v6151_v8 }
 0x78e   : > { %v2891_v61 = vpop.f32.mrb[16].mxu1 }
 0x78f   : > { %v5205_v62 = vpop.f32.mrb[17].mxu1  ;;  %v3026_v12 = vpack.c.bf16 %v2891_v61, %v2891_v61 }
 0x790   : > { %v2894_v1 = vpop.f32.mrb[18].mxu1 }
 0x791   : > { %v5206_v3 = vpop.f32.mrb[19].mxu1  ;;  %v3033_v15 = vrot.slane %v3026_v12, %v6973_v26 }
 0x796   : > { %v2934_v4 = vpop.f32.mrb[20].mxu1 }
 0x797   : > { %v5211_v5 = vpop.f32.mrb[21].mxu1  ;;  %v3060_v53 = vpack.c.bf16 %v2934_v4, %v2934_v4 }
 0x798   : > { %v2937_v7 = vpop.f32.mrb[22].mxu1 }
 0x799   : > { %v5212_v10 = vpop.f32.mrb[23].mxu1  ;;  %v3067_v22 = vrot.slane %v3060_v53, %v6973_v26 }
 0x79e   : > { %v2977_v17 = vpop.f32.mrb[24].mxu1 }
 0x79f   : > { %v3034_v9 = vpack.c.bf16 %v2977_v17, %v2977_v17  ;;  %v5217_v29 = vpop.f32.mrb[25].mxu1 }
 0x7a0   : > { %v2980_v13 = vpop.f32.mrb[26].mxu1 }
 0x7a1   : > { %v3041_v16 = vrot.slane %v3034_v9, %v6973_v26  ;;  %v5218_v18 = vpop.f32.mrb[27].mxu1 }
 0x7a3   : > { %v3042_v41 = vcombine.low %v3033_v15, %v3041_v16  ;;  %v3043_v14 = vcombine.high %v3033_v15, %v3041_v16 }
 0x7a5   : > { %v3050_v20 = vrot.slane %v3042_v41, %v6977_v55  ;;  %v3057_v27 = vrot.slane %v3043_v14, %v6977_v55 }
 0x7a6   : > { %v3020_v11 = vpop.f32.mrb[28].mxu1 }
 0x7a7   : > { %v5223_v19 = vpop.f32.mrb[29].mxu1  ;;  %v3068_v63 = vpack.c.bf16 %v3020_v11, %v3020_v11  ;;  %v3058_v30 = vcombine.high %v3050_v20, %v6158_v59  ;;  %v3059_v33 = vcombine.high %v3057_v27, %v6158_v59  ;;  %v3098_v34 = vshrl.u32 %v3050_v20, 16 }
 0x7a8   : > { %v3023_v2 = vpop.f32.mrb[30].mxu1  ;;  %v3114_v40 = vshrl.u32 %v3057_v27, 16 }
 0x7a9   : > { %v5224_v21 = vpop.f32.mrb[31].mxu1  ;;  %v3075_v23 = vrot.slane %v3068_v63, %v6973_v26  ;;  %v3106_v39 = vshrl.u32 %v3058_v30, 16  ;;  %v3122_v0 = vshrl.u32 %v3059_v33, 16 }
 0x7aa   : > { %v3315_v21 = vunpack.c.l.bf16 %v6956_v54  ;;  %v5607_v54 = vld [vmem:[#allocation15 + $0x10] sm:$0xff]  }
 0x7ab   : > { %v3076_v38 = vcombine.low %v3067_v22, %v3075_v23  ;;  %v3077_v6 = vcombine.high %v3067_v22, %v3075_v23 }
 0x7ad   : > { %v3084_v31 = vrot.slane %v3076_v38, %v6977_v55  ;;  %v3091_v32 = vrot.slane %v3077_v6, %v6977_v55 }
 0x7af   : > { %v3092_v36 = vcombine.high %v3084_v31, %v6158_v59  ;;  %v3093_v25 = vcombine.high %v3091_v32, %v6158_v59  ;;  %v3096_v48 = vpack.i.b16 %v3084_v31, %v3050_v20  ;;  %v3099_v37 = vshrl.u32 %v3084_v31, 16  ;;  %v4986_v20 = vld [vmem:[%s7435_s29] ss:$0 sm:$0xff]  ;;  %v5605_v31 = vld [vmem:[#allocation15] sm:$0xff]   ;;  %s5062_s29 = sshll.u32 %s4723_s8, 7 }
 0x7b0   : > { %v3112_v24 = vpack.i.b16 %v3091_v32, %v3057_v27  ;;  %v3115_v42 = vshrl.u32 %v3091_v32, 16  ;;  %5246 = vmatpush3.bf16.msra.mxu1 %v5605_v31  ;;  %v5606_v32 = vld [vmem:[#allocation15 + $0x8] sm:$0xff]  }
 0x7b1   : > { %v3100_v44 = vpack.i.b16 %v3099_v37, %v3098_v34  ;;  %v3104_v45 = vpack.i.b16 %v3092_v36, %v3058_v30  ;;  %v3107_v46 = vshrl.u32 %v3092_v36, 16  ;;  %v3120_v47 = vpack.i.b16 %v3093_v25, %v3059_v33  ;;  %5247 = vmatprep.subr.bf16.mxu1 %v6151_v8  ;;  %v5609_v37 = vld [vmem:[#allocation15 + $0x20] sm:$0xff]  }
 0x7b2   : > { %v3116_v35 = vpack.i.b16 %v3115_v42, %v3114_v40  ;;  %v3123_v28 = vshrl.u32 %v3093_v25, 16  ;;  %v3126_v49 = vcombine.low %v3096_v48, %v3112_v24  ;;  %v5608_v48 = vld [vmem:[#allocation15 + $0x18] sm:$0xff]   ;;  %v5611_v40 = vld [vmem:[#allocation15 + $0x30] sm:$0xff]  }
 0x7b3   : > { %v3108_v50 = vpack.i.b16 %v3107_v46, %v3106_v39  ;;  %v3134_v51 = vcombine.low %v3104_v45, %v3120_v47  ;;  %v5610_v39 = vld [vmem:[#allocation15 + $0x28] sm:$0xff]   ;;  %v5612_v24 = vld [vmem:[#allocation15 + $0x38] sm:$0xff]   ;;  %v4995_v47 = vld [vmem:[%s7436_s11] ss:$0 sm:$0xff] }
 0x7b4   : > { %v3124_v52 = vpack.i.b16 %v3123_v28, %v3122_v0  ;;  %v3151_v56 = vcombine.low %v3100_v44, %v3116_v35  ;;  %v3133_v57 = vrot.slane %v3126_v49, %v6973_v26  ;;  %5248 = vmatpush3.bf16.msra.mxu1 %v5606_v32  ;;  %v4996_v35 = vld [vmem:[%s7437_s15] ss:$0 sm:$0xff] }
 0x7b5   : > { %v3141_v58 = vrot.slane %v3134_v51, %v6973_v26  ;;  %5249 = vmatprep.subr.bf16.mxu1 %v6151_v8  ;;  %v4997_v51 = vld [vmem:[%s7438_s7] ss:$0 sm:$0xff]  ;;  %s7444_s7 = sld [smem:[#allocation42_spill]] }
 0x7b6   : > { %v3159_v61 = vcombine.low %v3108_v50, %v3124_v52  ;;  %v3158_v1 = vrot.slane %v3151_v56, %v6973_v26 }
 0x7b7   : > { %v3142_v62 = vcombine.low %v3133_v57, %v3141_v58 }
 0x7b8   : > { %v3166_v3 = vrot.slane %v3159_v61, %v6973_v26  ;;  %5250 = vmatpush3.bf16.msra.mxu1 %v5607_v54 }
 0x7b9   : > { %v3149_v4 = vrot.slane %v3142_v62, %v6977_v55  ;;  %5251 = vmatprep.subr.bf16.mxu1 %v6151_v8  ;;  %v3626_v62 = vld [vmem:[#allocation4] sm:$0xff] }
 0x7ba   : > { %v3167_v5 = vcombine.low %v3158_v1, %v3166_v3  ;;  %v3638_v1 = vsel %vm2620_vm2, %v3626_v62, 0  ;;  %v3627_v3 = vld [vmem:[#allocation4 + $0x8] sm:$0xff] }
 0x7bb   : > { %v3150_v10 = vcombine.high %v3149_v4, %v6158_v59  ;;  %v3179_v12 = vshrl.u32 %v3149_v4, 16  ;;  %p7449_p8 = scmp.ne.s32.totalorder %s7444_s7, 0 }
 0x7bc   : > { %v3174_v7 = vrot.slane %v3167_v5, %v6977_v55  ;;  %5252 = vmatpush3.bf16.msra.mxu1 %v5608_v48 }
 0x7bd   : > { %v3185_v16 = vshrl.u32 %v3150_v10, 16  ;;  %5253 = vmatprep.subr.bf16.mxu1 %v6151_v8 }
 0x7be   : > { %v3180_v17 = vshrl.u32 %v3174_v7, 16  ;;  %v3175_v9 = vcombine.high %v3174_v7, %v6158_v59  ;;  %v3178_v29 = vpack.i.b16 %v3174_v7, %v3149_v4  ;;  %v3684_v4 = vsel %vm2620_vm2, %v3627_v3, 0 }
 0x7c0   : > { %v3181_v13 = vpack.i.b16 %v3180_v17, %v3179_v12  ;;  %v3184_v15 = vpack.i.b16 %v3175_v9, %v3150_v10  ;;  %v3186_v18 = vshrl.u32 %v3175_v9, 16  ;;  %5254 = vmatpush3.bf16.msra.mxu1 %v5609_v37 }
 0x7c1   : > { %5255 = vmatprep.subr.bf16.mxu1 %v6151_v8 }
 0x7c2   : > { %3188 = vrot.lane.b32.xlu0 %v3181_v13, %s6153_s1  ;;  %3190 = vrot.lane.b32.xlu1 %v3184_v15, %s6155_s18  ;;  %v3187_v41 = vpack.i.b16 %v3186_v18, %v3185_v16 }
 0x7c4   : > { %5256 = vmatpush3.bf16.msra.mxu1 %v5610_v39 }
 0x7c5   : > { %5257 = vmatprep.subr.bf16.mxu1 %v6151_v8 }
 0x7c6   : > { %3192 = vrot.lane.b32.xlu1 %v3187_v41, %s6154_s23 }
 0x7c8   : > { %5258 = vmatpush3.bf16.msra.mxu1 %v5611_v40 }
 0x7c9   : > { %5259 = vmatprep.subr.bf16.mxu1 %v6151_v8 }
 0x7cc   : > { %5260 = vmatpush3.bf16.msra.mxu1 %v5612_v24 }
 0x7cd   : > { %5271 = vmatprep.subr.bf16.mxu1 %v6151_v8 }
 0x834   : > { %v3189_v14 = vpop.permute.xlu0 %3188  ;;  %v3191_v53 = vpop.permute.xlu1 %3190 }
 0x835   : > { %v3196_v11 = vsel %vm2620_vm2, %v3178_v29, %v3189_v14 }
 0x836   : > { %v3199_v19 = vsel %vm3197_vm4, %v3196_v11, %v3191_v53 }
 0x838   : > { %v3193_v63 = vpop.permute.xlu1 %3192 }
 0x839   : > { %v3202_v2 = vsel %vm3200_vm5, %v3199_v19, %v3193_v63 }
 0x83a   : > { %5242 = vmatmul.mubr.bf16.vlgmr.msra.gmra.mrb[4].mxu0 %v3202_v2 }
 0x83b   : > { %5267 = vmatprep.mubr.msk.bf16.mxu0 %vm6152_vm1, %v6151_v8  ;;  %5266 = vmatpush3.bf16.xpose.msra.mxu0 %v3638_v1 }
 0x83c   : > { %5277 = vmatprep.subr.bf16.mxu0 %v6151_v8 }
 0x90d   : > { %v3309_v22 = vpop.f32.mrb[4].mxu0 }
 0x90e   : > { %v3310_v23 = vadd.f32 %v4986_v20, %v3309_v22  ;;  %v5243_v27 = vpop.f32.mrb[5].mxu0 }
 0x90f   : > { %v3312_v38 = vpop.f32.mrb[6].mxu0 }
 0x910   : > { %v5244_v6 = vpop.f32.mrb[7].mxu0  ;;  %v3316_v30 = vadd.f32 %v3315_v21, %v3310_v23 }
 0x912   : > { %3319 = vadd.xlane.f32.xlu0 %v3316_v30 }
 0x99f   : > { %v3320_v33 = vpop.xlane.xlu0 %3319 }
 0x9a0   : > { %v3322_v34 = vmul.f32 0.0078125, %v3320_v33 }
 0x9a2   : > { %v3323_v36 = vsub.f32 %v3316_v30, %v3322_v34 }
 0x9a4   : > { %v3324_v25 = vmul.f32 %v3323_v36, %v3323_v36 }
 0x9a6   : > { %3325 = vadd.xlane.f32.xlu1 %v3324_v25 }
 0xa33   : > { %v3326_v42 = vpop.xlane.xlu1 %3325 }
 0xa34   : > { %v3327_v44 = vmul.f32 0.0078125, %v3326_v42 }
 0xa36   : > { %v3328_v45 = vadd.f32 1e-05, %v3327_v44 }
 0xa38   : > { %5677 = vrsqrt.f32 %v3328_v45 }
 0xa42   : > { %v5678_v46 = vpop.eup %5677 }
 0xa43   : > { %v3330_v0 = vmul.f32 %v5678_v46, %v3323_v36 }
 0xa45   : > { %v3337_v28 = vmul.f32 %v4995_v47, %v3330_v0 }
 0xa47   : > { %v7094_v49 = vadd.f32 %v4996_v35, %v3337_v28 }
 0xa49   : > { %v3345_v50 = vpack.c.bf16 %v7094_v49, %v7094_v49 }
 0xa4b   : > { %5262 = vmatmul.mubr.bf16.vlgmr.msra.gmra.mrb[32].mxu1 %v3345_v50  ;;  %v3628_v50 = vld [vmem:[#allocation4 + $0x10] sm:$0xff] }
 0xa4c   : > { %5273 = vmatprep.mubr.msk.bf16.mxu1 %vm6152_vm1, %v6151_v8  ;;  %5272 = vmatpush3.bf16.xpose.msra.mxu1 %v3684_v4 }
 0xa4d   : > { %5283 = vmatprep.subr.bf16.mxu1 %v6151_v8 }
 0xb1e   : > { %v3451_v52 = vpop.f32.mrb[32].mxu1 }
 0xb1f   : > { %v3452_v56 = vadd.f32 %v4997_v51, %v3451_v52  ;;  %v5263_v57 = vpop.f32.mrb[33].mxu1  ;;  %v3629_v52 = vld [vmem:[#allocation4 + $0x18] sm:$0xff] }
 0xb20   : > { %v3454_v58 = vpop.f32.mrb[34].mxu1  ;;  %v3730_v57 = vsel %vm2620_vm2, %v3628_v50, 0  ;;  %v3776_v62 = vsel %vm2620_vm2, %v3629_v52, 0 }
 0xb21   : > { %v3457_v60 = vpack.c.bf16 %v3452_v56, %v3452_v56  ;;  %v5264_v61 = vpop.f32.mrb[35].mxu1 }
 0xb23   : > { %3461 = vrot.lane.b32.xlu1 %v3457_v60, %s6155_s18  ;;  %3459 = vrot.lane.b32.xlu0 %v3457_v60, %s6154_s23  ;;  %v3471_v10 = vrot.slane %v3457_v60, %v6973_v26 }
 0xb27   : > { %3463 = vrot.lane.b32.xlu0 %v3457_v60, %s6153_s1 }
 0xb95   : > { %v3462_v5 = vpop.permute.xlu1 %3461  ;;  %v3460_v7 = vpop.permute.xlu0 %3459 }
 0xb96   : > { %v3479_v12 = vrot.slane %v3462_v5, %v6973_v26  ;;  %v3505_v16 = vrot.slane %v3460_v7, %v6973_v26 }
 0xb98   : > { %v3480_v17 = vcombine.low %v3471_v10, %v3479_v12  ;;  %v3481_v9 = vcombine.high %v3471_v10, %v3479_v12 }
 0xb99   : > { %v3464_v29 = vpop.permute.xlu0 %3463 }
 0xb9a   : > { %v3488_v13 = vrot.slane %v3480_v17, %v6977_v55  ;;  %v3513_v15 = vrot.slane %v3464_v29, %v6973_v26  ;;  %v3495_v18 = vrot.slane %v3481_v9, %v6977_v55 }
 0xb9c   : > { %v3514_v41 = vcombine.low %v3505_v16, %v3513_v15  ;;  %v3515_v14 = vcombine.high %v3505_v16, %v3513_v15  ;;  %v3496_v53 = vcombine.high %v3488_v13, %v6158_v59  ;;  %v3497_v63 = vcombine.high %v3495_v18, %v6158_v59 }
 0xb9d   : > { %v3536_v2 = vshrl.u32 %v3488_v13, 16  ;;  %v3552_v38 = vshrl.u32 %v3495_v18, 16 }
 0xb9e   : > { %v3522_v11 = vrot.slane %v3514_v41, %v6977_v55  ;;  %v3529_v19 = vrot.slane %v3515_v14, %v6977_v55  ;;  %v3544_v27 = vshrl.u32 %v3496_v53, 16  ;;  %v3560_v36 = vshrl.u32 %v3497_v63, 16 }
 0xba0   : > { %v3530_v20 = vcombine.high %v3522_v11, %v6158_v59  ;;  %v3531_v21 = vcombine.high %v3529_v19, %v6158_v59  ;;  %v3534_v22 = vpack.i.b16 %v3522_v11, %v3488_v13  ;;  %v3537_v23 = vshrl.u32 %v3522_v11, 16 }
 0xba1   : > { %v3550_v6 = vpack.i.b16 %v3529_v19, %v3495_v18  ;;  %v3553_v30 = vshrl.u32 %v3529_v19, 16 }
 0xba2   : > { %v3538_v31 = vpack.i.b16 %v3537_v23, %v3536_v2  ;;  %v3542_v32 = vpack.i.b16 %v3530_v20, %v3496_v53  ;;  %v3545_v33 = vshrl.u32 %v3530_v20, 16  ;;  %v3558_v34 = vpack.i.b16 %v3531_v21, %v3497_v63 }
 0xba3   : > { %v3554_v25 = vpack.i.b16 %v3553_v30, %v3552_v38  ;;  %v3561_v54 = vshrl.u32 %v3531_v21, 16  ;;  %v3564_v48 = vcombine.low %v3534_v22, %v3550_v6 }
 0xba4   : > { %v3546_v37 = vpack.i.b16 %v3545_v33, %v3544_v27  ;;  %v3572_v39 = vcombine.low %v3542_v32, %v3558_v34 }
 0xba5   : > { %v3562_v40 = vpack.i.b16 %v3561_v54, %v3560_v36  ;;  %v3589_v24 = vcombine.low %v3538_v31, %v3554_v25  ;;  %v3571_v42 = vrot.slane %v3564_v48, %v6973_v26 }
 0xba6   : > { %v3579_v44 = vrot.slane %v3572_v39, %v6973_v26 }
 0xba7   : > { %v3597_v45 = vcombine.low %v3546_v37, %v3562_v40  ;;  %v3596_v47 = vrot.slane %v3589_v24, %v6973_v26 }
 0xba8   : > { %v3580_v46 = vcombine.low %v3571_v42, %v3579_v44 }
 0xba9   : > { %v3604_v0 = vrot.slane %v3597_v45, %v6973_v26 }
 0xbaa   : > { %v3587_v28 = vrot.slane %v3580_v46, %v6977_v55 }
 0xbab   : > { %v3605_v35 = vcombine.low %v3596_v47, %v3604_v0  ;;  %v3630_v0 = vld [vmem:[#allocation5] sm:$0xff] }
 0xbac   : > { %v3617_v58 = vshrl.u32 %v3587_v28, 16  ;;  %v3588_v3 = vcombine.high %v3587_v28, %v6158_v59 }
 0xbad   : > { %v3612_v51 = vrot.slane %v3605_v35, %v6977_v55  ;;  %v3631_v35 = vld [vmem:[#allocation5 + $0x8] sm:$0xff] }
 0xbae   : > { %v3623_v7 = vshrl.u32 %v3588_v3, 16 }
 0xbaf   : > { %v3616_v56 = vpack.i.b16 %v3612_v51, %v3587_v28  ;;  %v3618_v60 = vshrl.u32 %v3612_v51, 16  ;;  %v3613_v1 = vcombine.high %v3612_v51, %v6158_v59 }
 0xbb1   : > { %5268 = vmatmul.mubr.msk.bf16.vlgmr.msra.gmra.mrb[8].mxu0 %vm2620_vm2, %v3616_v56  ;;  %v3619_v61 = vpack.i.b16 %v3618_v60, %v3617_v58  ;;  %v3624_v4 = vshrl.u32 %v3613_v1, 16  ;;  %v3622_v5 = vpack.i.b16 %v3613_v1, %v3588_v3  ;;  %v3633_v3 = vld [vmem:[#allocation5 + $0x18] sm:$0xff] }
 0xbb2   : > { %5278 = vmatpush3.bf16.xpose.msra.mxu0 %v3730_v57  ;;  %5279 = vmatprep.mubr.msk.bf16.mxu0 %vm6152_vm1, %v6151_v8 }
 0xbb3   : > { %5274 = vmatmul.mubr.msk.bf16.vlgmr.msra.gmra.mrb[36].mxu1 %vm2620_vm2, %v3619_v61  ;;  %5289 = vmatprep.subr.bf16.mxu0 %v6151_v8  ;;  %v3625_v10 = vpack.i.b16 %v3624_v4, %v3623_v7 }
 0xbb4   : > { %5284 = vmatpush3.bf16.xpose.msra.mxu1 %v3776_v62  ;;  %5285 = vmatprep.mubr.msk.bf16.mxu1 %vm6152_vm1, %v6151_v8  ;;  %v3632_v62 = vld [vmem:[#allocation5 + $0x10] sm:$0xff] }
 0xbb5   : > { %5295 = vmatprep.subr.bf16.mxu1 %v6151_v8 }
 0xbb9   : > { %5280 = vmatmul.mubr.msk.bf16.vlgmr.msra.gmra.mrb[12].mxu0 %vm2620_vm2, %v3622_v5 }
 0xbba   : > { %5291 = vmatprep.mubr.msk.bf16.mxu0 %vm6152_vm1, %v6151_v8  ;;  %5290 = vmatpush3.bf16.msra.mxu0 %v3630_v0 }
 0xbbb   : > { %5286 = vmatmul.mubr.msk.bf16.vlgmr.msra.gmra.mrb[40].mxu1 %vm2620_vm2, %v3625_v10  ;;  %5301 = vmatprep.subr.bf16.mxu0 %v6151_v8 }
 0xbbc   : > { %5297 = vmatprep.mubr.msk.bf16.mxu1 %vm6152_vm1, %v6151_v8  ;;  %5296 = vmatpush3.bf16.msra.mxu1 %v3631_v35 }
 0xbbd   : > { %5307 = vmatprep.subr.bf16.mxu1 %v6151_v8 }
 0xc84   : > { %v3674_v12 = vpop.f32.mrb[8].mxu0 }
 0xc85   : > { %v5269_v17 = vpop.f32.mrb[9].mxu0  ;;  %v3818_v9 = vsel %vm2805_vm3, %v3674_v12, -inf }
 0xc86   : > { %v3720_v29 = vpop.f32.mrb[36].mxu1  ;;  %3819 = vmax.xlane.f32.xlu1 %v3818_v9  ;;  %v3677_v13 = vpop.f32.mrb[10].mxu0  ;;  %v5613_v9 = vld [vmem:[#allocation18] sm:$0xff]  }
 0xc87   : > { %v5270_v15 = vpop.f32.mrb[11].mxu0  ;;  %v5275_v16 = vpop.f32.mrb[37].mxu1  ;;  %v3821_v18 = vsel %vm2805_vm3, %v3720_v29, -inf  ;;  %v5615_v13 = vld [vmem:[#allocation18 + $0x10] sm:$0xff]  }
 0xc88   : > { %3822 = vmax.xlane.f32.xlu0 %v3821_v18  ;;  %v3723_v41 = vpop.f32.mrb[38].mxu1  ;;  %v5616_v15 = vld [vmem:[#allocation18 + $0x18] sm:$0xff]   ;;  %v5617_v16 = vld [vmem:[#allocation18 + $0x20] sm:$0xff]   ;;  %v5618_v18 = vld [vmem:[#allocation18 + $0x28] sm:$0xff]  }
 0xc89   : > { %v5276_v14 = vpop.f32.mrb[39].mxu1  ;;  %v5619_v41 = vld [vmem:[#allocation18 + $0x30] sm:$0xff]  }
 0xc8c   : > { %v3766_v53 = vpop.f32.mrb[12].mxu0 }
 0xc8d   : > { %v5281_v11 = vpop.f32.mrb[13].mxu0  ;;  %v3824_v19 = vsel %vm2805_vm3, %v3766_v53, -inf }
 0xc8e   : > { %v3812_v63 = vpop.f32.mrb[40].mxu1  ;;  %3825 = vmax.xlane.f32.xlu0 %v3824_v19  ;;  %v3769_v2 = vpop.f32.mrb[14].mxu0 }
 0xc8f   : > { %v5282_v20 = vpop.f32.mrb[15].mxu0  ;;  %v5287_v21 = vpop.f32.mrb[41].mxu1  ;;  %v3827_v22 = vsel %vm2805_vm3, %v3812_v63, -inf }
 0xc90   : > { %v3815_v23 = vpop.f32.mrb[42].mxu1  ;;  %3828 = vmax.xlane.f32.xlu1 %v3827_v22 }
 0xc91   : > { %v5288_v27 = vpop.f32.mrb[43].mxu1 }
 0xd13   : > { %v3820_v38 = vpop.xlane.xlu1 %3819 }
 0xd14   : > { %v3830_v6 = vsub.f32 %v3674_v12, %v3820_v38 }
 0xd15   : > { %v3823_v30 = vpop.xlane.xlu0 %3822 }
 0xd16   : > { %v3834_v31 = vmul.f32 1.442695, %v3830_v6  ;;  %v3831_v32 = vsub.f32 %v3720_v29, %v3823_v30  ;;  %v5614_v29 = vld [vmem:[#allocation18 + $0x8] sm:$0xff]  }
 0xd18   : > { %5679 = vpow2.f32 %v3834_v31  ;;  %v3836_v33 = vmul.f32 1.442695, %v3831_v32 }
 0xd1a   : > { %5681 = vpow2.f32 %v3836_v33 }
 0xd1b   : > { %v3826_v34 = vpop.xlane.xlu0 %3825 }
 0xd1c   : > { %v3832_v36 = vsub.f32 %v3766_v53, %v3826_v34 }
 0xd1d   : > { %v3829_v25 = vpop.xlane.xlu1 %3828 }
 0xd1e   : > { %v3838_v54 = vmul.f32 1.442695, %v3832_v36  ;;  %v3833_v48 = vsub.f32 %v3812_v63, %v3829_v25 }
 0xd20   : > { %5683 = vpow2.f32 %v3838_v54  ;;  %v3840_v37 = vmul.f32 1.442695, %v3833_v48 }
 0xd22   : > { %v5680_v39 = vpop.eup %5679  ;;  %5685 = vpow2.f32 %v3840_v37 }
 0xd23   : > { %v3842_v40 = vsel %vm2805_vm3, %v5680_v39, 0.0 }
 0xd24   : > { %v5682_v24 = vpop.eup %5681  ;;  %3843 = vadd.xlane.f32.xlu0 %v3842_v40 }
 0xd25   : > { %v3845_v42 = vsel %vm2805_vm3, %v5682_v24, 0.0 }
 0xd26   : > { %3846 = vadd.xlane.f32.xlu1 %v3845_v42 }
 0xd2a   : > { %v5684_v44 = vpop.eup %5683 }
 0xd2b   : > { %v3848_v45 = vsel %vm2805_vm3, %v5684_v44, 0.0 }
 0xd2c   : > { %v5686_v46 = vpop.eup %5685  ;;  %3849 = vadd.xlane.f32.xlu0 %v3848_v45 }
 0xd2d   : > { %v3851_v47 = vsel %vm2805_vm3, %v5686_v46, 0.0 }
 0xd2e   : > { %3852 = vadd.xlane.f32.xlu1 %v3851_v47 }
 0xdb1   : > { %v3844_v28 = vpop.xlane.xlu0 %3843 }
 0xdb2   : > { %5687 = vrcp.f32 %v3844_v28 }
 0xdb3   : > { %v3847_v50 = vpop.xlane.xlu1 %3846 }
 0xdb4   : > { %5689 = vrcp.f32 %v3847_v50 }
 0xdb9   : > { %v3850_v51 = vpop.xlane.xlu0 %3849 }
 0xdba   : > { %5691 = vrcp.f32 %v3850_v51 }
 0xdbb   : > { %v3853_v52 = vpop.xlane.xlu1 %3852 }
 0xdbc   : > { %v5688_v56 = vpop.eup %5687  ;;  %5693 = vrcp.f32 %v3853_v52 }
 0xdbd   : > { %v3858_v57 = vmul.f32 %v5688_v56, %v5680_v39 }
 0xdbe   : > { %v5690_v58 = vpop.eup %5689 }
 0xdbf   : > { %v3859_v60 = vmul.f32 %v5690_v58, %v5682_v24  ;;  %v3862_v61 = vpack.c.bf16 %v3858_v57, %v3858_v57 }
 0xdc1   : > { %5292 = vmatmul.mubr.msk.bf16.vlgmr.msra.gmra.mrb[16].mxu0 %vm2805_vm3, %v3862_v61  ;;  %v3863_v1 = vpack.c.bf16 %v3859_v60, %v3859_v60 }
 0xdc2   : > { %5302 = vmatpush3.bf16.msra.mxu0 %v3632_v62  ;;  %5303 = vmatprep.mubr.msk.bf16.mxu0 %vm6152_vm1, %v6151_v8 }
 0xdc3   : > { %5298 = vmatmul.mubr.msk.bf16.vlgmr.msra.gmra.mrb[44].mxu1 %vm2805_vm3, %v3863_v1  ;;  %5313 = vmatprep.subr.bf16.mxu0 %v6151_v8 }
 0xdc4   : > { %v5692_v4 = vpop.eup %5691  ;;  %5308 = vmatpush3.bf16.msra.mxu1 %v3633_v3  ;;  %5309 = vmatprep.mubr.msk.bf16.mxu1 %vm6152_vm1, %v6151_v8 }
 0xdc5   : > { %v3860_v5 = vmul.f32 %v5692_v4, %v5684_v44 }
 0xdc6   : > { %v5694_v7 = vpop.eup %5693 }
 0xdc7   : > { %v3861_v10 = vmul.f32 %v5694_v7, %v5686_v46  ;;  %v3864_v12 = vpack.c.bf16 %v3860_v5, %v3860_v5 }
 0xdc9   : > { %5304 = vmatmul.mubr.msk.bf16.vlgmr.msra.gmra.mrb[20].mxu0 %vm2805_vm3, %v3864_v12  ;;  %v3865_v17 = vpack.c.bf16 %v3861_v10, %v3861_v10 }
 0xdca   : > { %5329 = vmatprep.mubr.msk.bf16.mxu0 %vm6152_vm1, %v6151_v8  ;;  %5314 = vmatpush3.bf16.msra.mxu0 %v5613_v9 }
 0xdcb   : > { %5310 = vmatmul.mubr.msk.bf16.vlgmr.msra.gmra.mrb[48].mxu1 %vm2805_vm3, %v3865_v17  ;;  %5315 = vmatprep.subr.bf16.mxu0 %v6151_v8 }
 0xdcc   : > { %4494 = vmatprep.mubr.bf16.mxu1 %v6158_v59 }
 0xdce   : > { %5316 = vmatpush3.bf16.msra.mxu0 %v5614_v29 }
 0xdcf   : > { %5317 = vmatprep.subr.bf16.mxu0 %v6151_v8 }
 0xdd2   : > { %5318 = vmatpush3.bf16.msra.mxu0 %v5615_v13 }
 0xdd3   : > { %5319 = vmatprep.subr.bf16.mxu0 %v6151_v8 }
 0xdd6   : > { %5320 = vmatpush3.bf16.msra.mxu0 %v5616_v15 }
 0xdd7   : > { %5321 = vmatprep.subr.bf16.mxu0 %v6151_v8 }
 0xdda   : > { %5322 = vmatpush3.bf16.msra.mxu0 %v5617_v16 }
 0xddb   : > { %5323 = vmatprep.subr.bf16.mxu0 %v6151_v8 }
 0xdde   : > { %5324 = vmatpush3.bf16.msra.mxu0 %v5618_v18  ;;  %v5620_v18 = vld [vmem:[#allocation18 + $0x38] sm:$0xff]  }
 0xddf   : > { %5325 = vmatprep.subr.bf16.mxu0 %v6151_v8 }
 0xde2   : > { %5326 = vmatpush3.bf16.msra.mxu0 %v5619_v41 }
 0xde3   : > { %5327 = vmatprep.subr.bf16.mxu0 %v6151_v8 }
 0xde6   : > { %5328 = vmatpush3.bf16.msra.mxu0 %v5620_v18 }
 0xe94   : > { %v3903_v14 = vpop.f32.mrb[16].mxu0 }
 0xe95   : > { %v5293_v53 = vpop.f32.mrb[17].mxu0  ;;  %v4038_v22 = vpack.c.bf16 %v3903_v14, %v3903_v14 }
 0xe96   : > { %v3906_v11 = vpop.f32.mrb[18].mxu0  ;;  %v3946_v19 = vpop.f32.mrb[44].mxu1 }
 0xe97   : > { %v5294_v63 = vpop.f32.mrb[19].mxu0  ;;  %v5299_v2 = vpop.f32.mrb[45].mxu1  ;;  %v4072_v27 = vpack.c.bf16 %v3946_v19, %v3946_v19  ;;  %v4045_v32 = vrot.slane %v4038_v22, %v6973_v26 }
 0xe98   : > { %v3949_v20 = vpop.f32.mrb[46].mxu1 }
 0xe99   : > { %v5300_v21 = vpop.f32.mrb[47].mxu1  ;;  %v4079_v54 = vrot.slane %v4072_v27, %v6973_v26 }
 0xe9c   : > { %v3989_v23 = vpop.f32.mrb[20].mxu0 }
 0xe9d   : > { %v4046_v38 = vpack.c.bf16 %v3989_v23, %v3989_v23  ;;  %v5305_v6 = vpop.f32.mrb[21].mxu0 }
 0xe9e   : > { %v3992_v30 = vpop.f32.mrb[22].mxu0  ;;  %v4032_v31 = vpop.f32.mrb[48].mxu1 }
 0xe9f   : > { %v4053_v33 = vrot.slane %v4046_v38, %v6973_v26  ;;  %v4080_v8 = vpack.c.bf16 %v4032_v31, %v4032_v31  ;;  %v5306_v34 = vpop.f32.mrb[23].mxu0  ;;  %v5311_v36 = vpop.f32.mrb[49].mxu1 }
 0xea0   : > { %v4035_v25 = vpop.f32.mrb[50].mxu1  ;;  %v5014_v36 = vld [vmem:[%s7439_s19] ss:$0 sm:$0xff] }
 0xea1   : > { %v4054_v48 = vcombine.low %v4045_v32, %v4053_v33  ;;  %v4055_v37 = vcombine.high %v4045_v32, %v4053_v33  ;;  %v4087_v39 = vrot.slane %v4080_v8, %v6973_v26  ;;  %v5312_v40 = vpop.f32.mrb[51].mxu1 }
 0xea3   : > { %v4062_v24 = vrot.slane %v4054_v48, %v6977_v55  ;;  %v4069_v42 = vrot.slane %v4055_v37, %v6977_v55  ;;  %v4088_v44 = vcombine.low %v4079_v54, %v4087_v39  ;;  %v4089_v45 = vcombine.high %v4079_v54, %v4087_v39 }
 0xea5   : > { %v4070_v46 = vcombine.high %v4062_v24, %v6158_v59  ;;  %v4096_v47 = vrot.slane %v4088_v44, %v6977_v55  ;;  %v4103_v0 = vrot.slane %v4089_v45, %v6977_v55  ;;  %v4071_v35 = vcombine.high %v4069_v42, %v6158_v59  ;;  %v5626_v44 = vld [vmem:[#allocation20 + $0x14] ss:$8 sps:$4 sm:$0xff]   ;;  %v5624_v45 = vld [vmem:[#allocation20 + $0x10] ss:$8 sps:$4 sm:$0xff]  }
 0xea6   : > { %v4110_v28 = vshrl.u32 %v4062_v24, 16  ;;  %v4126_v58 = vshrl.u32 %v4069_v42, 16 }
 0xea7   : > { %v4104_v50 = vcombine.high %v4096_v47, %v6158_v59  ;;  %v4105_v51 = vcombine.high %v4103_v0, %v6158_v59  ;;  %v4108_v52 = vpack.i.b16 %v4096_v47, %v4062_v24  ;;  %v4111_v56 = vshrl.u32 %v4096_v47, 16  ;;  %v5621_v24 = vld [vmem:[#allocation20] ss:$8 sps:$4 sm:$0xff]  }
 0xea8   : > { %v4118_v57 = vshrl.u32 %v4070_v46, 16  ;;  %v4124_v60 = vpack.i.b16 %v4103_v0, %v4069_v42  ;;  %v4127_v61 = vshrl.u32 %v4103_v0, 16  ;;  %v4134_v5 = vshrl.u32 %v4071_v35, 16  ;;  %v5623_v42 = vld [vmem:[#allocation20 + $0x4] ss:$8 sps:$4 sm:$0xff]  }
 0xea9   : > { %v4112_v62 = vpack.i.b16 %v4111_v56, %v4110_v28  ;;  %v4116_v1 = vpack.i.b16 %v4104_v50, %v4070_v46  ;;  %v4119_v3 = vshrl.u32 %v4104_v50, 16  ;;  %v4132_v4 = vpack.i.b16 %v4105_v51, %v4071_v35  ;;  %4462 = vmatprep.subr.bf16.mxu1 %v5623_v42  ;;  %v5629_v46 = vld [vmem:[#allocation20 + $0x24] ss:$8 sps:$4 sm:$0xff]   ;;  %v5627_v47 = vld [vmem:[#allocation20 + $0x20] ss:$8 sps:$4 sm:$0xff]  }
 0xeaa   : > { %v4128_v7 = vpack.i.b16 %v4127_v61, %v4126_v58  ;;  %v4135_v10 = vshrl.u32 %v4105_v51, 16  ;;  %v4138_v12 = vcombine.low %v4108_v52, %v4124_v60  ;;  %4463 = vmatpush1.bf16.msra.mxu1 %v5621_v24  ;;  %v5632_v51 = vld [vmem:[#allocation20 + $0x34] ss:$8 sps:$4 sm:$0xff]   ;;  %v5635_v52 = vld [vmem:[#allocation20 + $0x44] ss:$8 sps:$4 sm:$0xff]  }
 0xeab   : > { %v4120_v17 = vpack.i.b16 %v4119_v3, %v4118_v57  ;;  %v4146_v9 = vcombine.low %v4116_v1, %v4132_v4  ;;  %4464 = vmatprep.subr.bf16.mxu1 %v5626_v44  ;;  %v5633_v56 = vld [vmem:[#allocation20 + $0x40] ss:$8 sps:$4 sm:$0xff]   ;;  %v5638_v57 = vld [vmem:[#allocation20 + $0x54] ss:$8 sps:$4 sm:$0xff]   ;;  %v5636_v58 = vld [vmem:[#allocation20 + $0x50] ss:$8 sps:$4 sm:$0xff]  }
 0xeac   : > { %v4136_v29 = vpack.i.b16 %v4135_v10, %v4134_v5  ;;  %v4163_v13 = vcombine.low %v4112_v62, %v4128_v7  ;;  %v4145_v15 = vrot.slane %v4138_v12, %v6973_v26  ;;  %v5641_v60 = vld [vmem:[#allocation20 + $0x64] ss:$8 sps:$4 sm:$0xff]   ;;  %v5639_v61 = vld [vmem:[#allocation20 + $0x60] ss:$8 sps:$4 sm:$0xff]   ;;  %v5644_v62 = vld [vmem:[#allocation20 + $0x74] ss:$8 sps:$4 sm:$0xff]  }
 0xead   : > { %v4153_v16 = vrot.slane %v4146_v9, %v6973_v26  ;;  %v5642_v1 = vld [vmem:[#allocation20 + $0x70] ss:$8 sps:$4 sm:$0xff]   ;;  %v5645_v3 = vld [vmem:[#allocation21 + $0x40] sm:$0xff]   ;;  %v5647_v5 = vld [vmem:[#allocation21 + $0x48] sm:$0xff]  }
 0xeae   : > { %v4171_v41 = vcombine.low %v4120_v17, %v4136_v29  ;;  %v4170_v53 = vrot.slane %v4163_v13, %v6973_v26  ;;  %4465 = vmatpush1.bf16.msra.mxu1 %v5624_v45  ;;  %v5646_v4 = vld [vmem:[#allocation21] sm:$0xff]   ;;  %5135 = vmatprep.subr.bf16.mxu0 %v5645_v3  ;;  %v5648_v7 = vld [vmem:[#allocation21 + $0x8] sm:$0xff]   ;;  %v5649_v10 = vld [vmem:[#allocation21 + $0x50] sm:$0xff]  }
 0xeaf   : > { %v4154_v14 = vcombine.low %v4145_v15, %v4153_v16  ;;  %4466 = vmatprep.subr.bf16.mxu1 %v5629_v46  ;;  %v5650_v12 = vld [vmem:[#allocation21 + $0x10] sm:$0xff]   ;;  %v5651_v17 = vld [vmem:[#allocation21 + $0x58] sm:$0xff]   ;;  %v5653_v29 = vld [vmem:[#allocation21 + $0x60] sm:$0xff]  }
 0xeb0   : > { %v4178_v11 = vrot.slane %v4171_v41, %v6973_v26  ;;  %v5652_v9 = vld [vmem:[#allocation21 + $0x18] sm:$0xff]   ;;  %v5654_v13 = vld [vmem:[#allocation21 + $0x20] sm:$0xff]   ;;  %v5655_v15 = vld [vmem:[#allocation21 + $0x68] sm:$0xff]  }
 0xeb1   : > { %v4161_v19 = vrot.slane %v4154_v14, %v6977_v55  ;;  %v5656_v16 = vld [vmem:[#allocation21 + $0x28] sm:$0xff]  }
 0xeb2   : > { %v4179_v63 = vcombine.low %v4170_v53, %v4178_v11  ;;  %4467 = vmatpush1.bf16.msra.mxu1 %v5627_v47 }
 0xeb3   : > { %v4162_v20 = vcombine.high %v4161_v19, %v6158_v59  ;;  %v4191_v21 = vshrl.u32 %v4161_v19, 16  ;;  %4468 = vmatprep.subr.bf16.mxu1 %v5632_v51 }
 0xeb4   : > { %v4186_v2 = vrot.slane %v4179_v63, %v6977_v55  ;;  %v5024_v63 = vld [vmem:[%s7441_s9] ss:$0 sm:$0xff]  ;;  %s4727_s9 = sshll.u32 %s891_s3, 4  ;;  %s7234_s9 = int_to_ptr.vmem [resolvable:$true] %s4727_s9 }
 0xeb5   : > { %v4197_v30 = vshrl.u32 %v4162_v20, 16  ;;  %s5983_s15 = scalar_lea.vmem %s7234_s9, 128 }
 0xeb6   : > { %v4192_v22 = vshrl.u32 %v4186_v2, 16  ;;  %v4187_v23 = vcombine.high %v4186_v2, %v6158_v59  ;;  %v4190_v27 = vpack.i.b16 %v4186_v2, %v4161_v19  ;;  %p5984_p7 = scmp.ne.s32.totalorder %s7234_s9, %s5983_s15 }
 0xeb8   : > { %v4193_v38 = vpack.i.b16 %v4192_v22, %v4191_v21  ;;  %v4196_v6 = vpack.i.b16 %v4187_v23, %v4162_v20  ;;  %v4198_v31 = vshrl.u32 %v4187_v23, 16  ;;  %v5657_v22 = vld [vmem:[#allocation21 + $0x70] sm:$0xff]   ;;  %p5985_p10 = pnand %p5984_p7, %p7449_p8 }
 0xeb9   : > { %v5658_v23 = vld [vmem:[#allocation21 + $0x30] sm:$0xff]  }
 0xeba   : > { %4200 = vrot.lane.b32.xlu0 %v4193_v38, %s6153_s1  ;;  %4202 = vrot.lane.b32.xlu1 %v4196_v6, %s6155_s18  ;;  %v4199_v26 = vpack.i.b16 %v4198_v31, %v4197_v30  ;;  %s7440_s18 = sld [smem:[#allocation62_spill]]  ;;  %v5660_v38 = vld [vmem:[#allocation21 + $0x38] sm:$0xff]   ;;  %v4374_v6 = vsub.s32 0, %v6970_v43  ;;  %v4370_v30 = vld [vmem:[%s7442_s28] sm:$0x3]  ;;  %v4378_v31 = vsub.s32 1, %v6970_v43  ;;  %s7232_s28 = scalar_lea.hbm %s7447_s0, %s5062_s29 }
 0xebb   : > { %s7445_s1 = sld [smem:[#allocation64_spill]]  ;;  %p5986_p9 = pneg %p5985_p10 }
 0xebe   : > { %4204 = vrot.lane.b32.xlu1 %v4199_v26, %s6154_s23  ;;  %v4375_v26 = vrot.slane %v4370_v30, %v4374_v6 }
 0xec0   : > { %v5023_v11 = vld [vmem:[%s7440_s18] ss:$0 sm:$0xff] }
 0xf2c   : > { %v4201_v32 = vpop.permute.xlu0 %4200  ;;  %v4203_v55 = vpop.permute.xlu1 %4202 }
 0xf2d   : > { %v4208_v33 = vsel %vm2620_vm2, %v4190_v27, %v4201_v32  ;;  %v5659_v27 = vld [vmem:[#allocation21 + $0x78] sm:$0xff]   ;;  %v4379_v32 = vrot.slane %v4370_v30, %v4378_v31 }
 0xf2e   : > { %v4210_v8 = vsel %vm3197_vm4, %v4208_v33, %v4203_v55 }
 0xf30   : > { %v4205_v34 = vpop.permute.xlu1 %4204 }
 0xf31   : > { %v4212_v59 = vsel %vm3200_vm5, %v4210_v8, %v4205_v34 }
 0xf32   : > { %5330 = vmatmul.mubr.bf16.vlgmr.msra.gmra.mrb[24].mxu0 %v4212_v59 }
 0xf33   : > { %5136 = vmatpush3.bf16.msra.mxu0 %v5646_v4 }
 0xf34   : > { %5137 = vmatprep.subr.bf16.mxu0 %v5647_v5 }
 0xf37   : > { %5138 = vmatpush3.bf16.msra.mxu0 %v5648_v7 }
 0xf38   : > { %5139 = vmatprep.subr.bf16.mxu0 %v5649_v10 }
 0xf3b   : > { %5140 = vmatpush3.bf16.msra.mxu0 %v5650_v12 }
 0xf3c   : > { %5141 = vmatprep.subr.bf16.mxu0 %v5651_v17 }
 0xf3f   : > { %5142 = vmatpush3.bf16.msra.mxu0 %v5652_v9 }
 0xf40   : > { %5143 = vmatprep.subr.bf16.mxu0 %v5653_v29 }
 0xf43   : > { %5144 = vmatpush3.bf16.msra.mxu0 %v5654_v13 }
 0xf44   : > { %5145 = vmatprep.subr.bf16.mxu0 %v5655_v15 }
 0xf47   : > { %5146 = vmatpush3.bf16.msra.mxu0 %v5656_v16 }
 0xf48   : > { %5147 = vmatprep.subr.bf16.mxu0 %v5657_v22 }
 0xf4b   : > { %5148 = vmatpush3.bf16.msra.mxu0 %v5658_v23 }
 0xf4c   : > { %5149 = vmatprep.subr.bf16.mxu0 %v5659_v27 }
 0xf4f   : > { %5150 = vmatpush3.bf16.msra.mxu0 %v5660_v38 }
0x1005   : > { %v4319_v25 = vpop.f32.mrb[24].mxu0 }
0x1006   : > { %v4320_v54 = vadd.f32 %v5014_v36, %v4319_v25  ;;  %v5331_v48 = vpop.f32.mrb[25].mxu0 }
0x1007   : > { %v4322_v37 = vpop.f32.mrb[26].mxu0 }
0x1008   : > { %v5332_v39 = vpop.f32.mrb[27].mxu0  ;;  %v4325_v40 = vadd.f32 %v4320_v54, %v7094_v49  ;;  %v5630_v49 = vld [vmem:[#allocation20 + $0x30] ss:$8 sps:$4 sm:$0xff]  }
0x1009   : > { %4469 = vmatpush1.bf16.msra.mxu1 %v5630_v49 }
0x100a   : > { %4328 = vadd.xlane.f32.xlu0 %v4325_v40  ;;  %4470 = vmatprep.subr.bf16.mxu1 %v5635_v52 }
0x100d   : > { %4471 = vmatpush1.bf16.msra.mxu1 %v5633_v56  ;;  %v5058_v56 = vld [vmem:[%s7445_s1] ss:$0 sm:$0xff] }
0x100e   : > { %4472 = vmatprep.subr.bf16.mxu1 %v5638_v57 }
0x1011   : > { %4473 = vmatpush1.bf16.msra.mxu1 %v5636_v58  ;;  %v5059_v58 = vld [vmem:[%s7446_s6] ss:$0 sm:$0xff] }
0x1012   : > { %4474 = vmatprep.subr.bf16.mxu1 %v5641_v60 }
0x1015   : > { %4475 = vmatpush1.bf16.msra.mxu1 %v5639_v61 }
0x1016   : > { %4476 = vmatprep.subr.bf16.mxu1 %v5644_v62 }
0x1019   : > { %4477 = vmatpush1.bf16.msra.mxu1 %v5642_v1 }
0x1097   : > { %v4329_v0 = vpop.xlane.xlu0 %4328 }
0x1098   : > { %v4330_v35 = vmul.f32 0.0078125, %v4329_v0 }
0x109a   : > { %v4331_v28 = vsub.f32 %v4325_v40, %v4330_v35  ;;  %v5041_v40 = vld [vmem:[%s7443_s27] ss:$0 sm:$0xff]  ;;  %s6159_s27 = smov [#allocation23]  }
0x109b   : > { %s5987_s30 = sshll.u32 %s6159_s27, 4  ;;  %s5988_s30 = int_to_ptr.vmem [resolvable:$false] %s5987_s30 }
0x109c   : > { %v4332_v50 = vmul.f32 %v4331_v28, %v4331_v28  ;;  %s5989_s8 = scalar_lea.vmem %s5988_s30, 256  ;;  %p5990_p0 = scmp.lt.s32.totalorder %s7234_s9, %s5988_s30 }
0x109d   : > { %p5991_p13 = scmp.lt.s32.totalorder %s5989_s8, %s5983_s15 }
0x109e   : > { %4333 = vadd.xlane.f32.xlu1 %v4332_v50 }
0x109f   : > { %p5992_p5 = por %p5991_p13, %p5990_p0 }
0x10a1   : > { %p5993_p2 = pnand %p5992_p5, %p5986_p9 }
0x112b   : > { %v4334_v18 = vpop.xlane.xlu1 %4333 }
0x112c   : > { %v4335_v41 = vmul.f32 0.0078125, %v4334_v18 }
0x112e   : > { %v4336_v14 = vadd.f32 1e-05, %v4335_v41 }
0x1130   : > { %5695 = vrsqrt.f32 %v4336_v14 }
0x113a   : > { %v5696_v53 = vpop.eup %5695 }
0x113b   : > { %v4338_v19 = vmul.f32 %v5696_v53, %v4331_v28 }
0x113d   : > { %v4345_v2 = vmul.f32 %v5023_v11, %v4338_v19 }
0x113f   : > { %v4352_v20 = vadd.f32 %v5024_v63, %v4345_v2 }
0x1141   : > { %v4353_v21 = vpack.c.bf16 %v4352_v20, %v4352_v20 }
0x1143   : > { %4495 = vmatmul.mubr.bf16.vlgmr.msra.gmra.mrb[52].mxu1 %v4353_v21 }
0x1216   : > { %v4496_v55 = vpop.f32.mrb[52].mxu1 }
0x1217   : > { %v4497_v33 = vadd.f32 %v4496_v55, %v4375_v26  ;;  %v4498_v8 = vpop.f32.mrb[53].mxu1 }
0x1218   : > { %v4499_v34 = vadd.f32 %v4498_v8, %v4379_v32  ;;  %v4500_v59 = vpop.f32.mrb[54].mxu1 }
0x1219   : > { %v4503_v36 = vmax.f32 %v4497_v33, 0.0  ;;  %v4501_v25 = vpop.f32.mrb[55].mxu1 }
0x121a   : > { %v4504_v54 = vmax.f32 %v4499_v34, 0.0 }
0x121b   : > { %v4505_v37 = vpack.c.bf16 %v4503_v36, %v4503_v36 }
0x121c   : > { %v4506_v48 = vpack.c.bf16 %v4504_v54, %v4504_v54 }
0x121e   : > { %4674 = vmatprep.mubr.bf16.mxu0 %v4506_v48 }
0x121f   : > { %4675 = vmatmul.mubr.bf16.vlgmr.msra.gmra.mrb[28].mxu0 %v4505_v37 }
0x12f2   : > { %v5151_v39 = vpop.f32.mrb[28].mxu0 }
0x12f3   : > { %v5152_v43 = vpop.f32.mrb[29].mxu0 }
0x12f4   : > { %v5153_v24 = vadd.f32 %v5152_v43, %v5151_v39  ;;  %v5154_v42 = vpop.f32.mrb[30].mxu0 }
0x12f5   : > { %v5155_v44 = vpop.f32.mrb[31].mxu0 }
0x12f6   : > { %v4677_v45 = vadd.f32 %v5153_v24, %v5041_v40 }
0x12f8   : > { %v4682_v46 = vadd.f32 %v4677_v45, %v4352_v20 }
0x12fa   : > { %4685 = vadd.xlane.f32.xlu0 %v4682_v46 }
0x1387   : > { %v4686_v47 = vpop.xlane.xlu0 %4685 }
0x1388   : > { %v4687_v0 = vmul.f32 0.0078125, %v4686_v47 }
0x138a   : > { %v4688_v35 = vsub.f32 %v4682_v46, %v4687_v0 }
0x138c   : > { %v4689_v28 = vmul.f32 %v4688_v35, %v4688_v35 }
0x138e   : > { %4690 = vadd.xlane.f32.xlu0 %v4689_v28 }
0x141b   : > { %v4691_v50 = vpop.xlane.xlu0 %4690 }
0x141c   : > { %v4692_v51 = vmul.f32 0.0078125, %v4691_v50 }
0x141e   : > { %v4693_v49 = vadd.f32 1e-05, %v4692_v51 }
0x1420   : > { %5697 = vrsqrt.f32 %v4693_v49 }
0x142a   : > { %v5698_v52 = vpop.eup %5697 }
0x142b   : > { %v4695_v57 = vmul.f32 %v5698_v52, %v4688_v35 }
0x142d   : > { %v4702_v60 = vmul.f32 %v5058_v56, %v4695_v57 }
0x142f   : > { %v4709_v61 = vadd.f32 %v5059_v58, %v4702_v60 }
0x1431   : > { %4710 = vst [vmem:[%s891_s3] sm:$0xff] %v4709_v61 }
0x1432   : > { %5996 = shalt.err (!%p5993_p2)
}
0x1433   : > { %s5997_s22 = scalar_lea.hbm %s7232_s28, 128  ;;  %s6001_s25 = scalar_lea.hbm %s7448_s4, 512 }
0x1434   : > { %p5998_p12 = scmp.ne.s32.totalorder %s7232_s28, %s5997_s22  ;;  %p6002_p4 = scmp.lt.u32.totalorder %s7232_s28, %s7448_s4 }
0x1435   : > { %p6003_p3 = scmp.lt.u32.totalorder %s6001_s25, %s5997_s22  ;;  %p6005_p7 = scmp.lt.u32.totalorder %s5997_s22, %s7232_s28 }
0x1436   : > { %p5999_p6 = pnand %p5998_p12, %p7449_p8 }
0x1437   : > { %p6004_p11 = por %p6003_p3, %p6002_p4 }
0x1438   : > { %p6000_p1 = pneg %p5999_p6 }
0x1439   : > { %p6006_p10 = por %p6005_p7, %p6004_p11 }
0x143b   : > { %p6007_p9 = pnand %p6006_p10, %p6000_p1 }
0x143d   : > { %6010 = shalt.err (!%p6007_p9)
}
0x143e   : > { %5369 = dma.vmem_to_hbm [thread:$0]  (%p7449_p8), %s7234_s9, 128, %s7232_s28, %s4712_s2  }
0x143f PF: > { %s7450_s23 = sld [smem:[#allocation39_spill]]  ;;  %s7451_s18 = sld [smem:[#allocation32_spill]] }
0x1440   : > { %s7452_s6 = sld [smem:[#allocation43_spill]] }
0x1445   : > { %p5422_p0 = scmp.ge.s32.totalorder %s7450_s23, 2  ;;  %s4739_s29 = sand.u32 1, %s7451_s18  }
0x1446   : > { %p7453_p13 = scmp.ne.s32.totalorder %s7452_s6, 0  ;;  %s4740_s24 = scalar_lea.sflag [#allocation8], %s4739_s29 }
0x1448   : > { %p5403_p5 = pnand %p5422_p0, %p7453_p13 }
0x144a   : > { %6084 = dma.done.wait (!%p5403_p5), %s4740_s24, 128  }
0x144b   : > { %6086 = vsyncadd (!%p5403_p5), %s4740_s24, 4294967168  ;;  %s43_s3 = sadd.s32 1, %s7450_s23   ;;  %s7454_s11 = sld [smem:[#allocation33_spill]] }
0x144c   : > { %p40_p2 = scmp.ge.s32.totalorder %s43_s3, 6   ;;  %s7455_s27 = sld [smem:[#allocation45_spill]] }
0x144d   : > { %s7456_s28 = sld [smem:[#allocation34_spill]]  ;;  %s7457_s6 = sld [smem:[#allocation35_spill]] }
0x144e   : > { %s7458_s2 = sld [smem:[#allocation44_spill]]  ;;  %s7459_s29 = sld [smem:[#allocation37_spill]] }
0x144f   : > { %s7460_s0 = sld [smem:[#allocation38_spill]]  ;;  %s7461_s7 = sld [smem:[#allocation40_spill]] }
0x1450   : > { %s7462_s30 = sld [smem:[#allocation41_spill]]  ;;  %s7463_s5 = smov %s6093_s26 }
0x1451   : > { %s7464_s26 = smov %s7454_s11  ;;  %42 = sbr.rel (!%p40_p2) target bundleno = 35 (0x23), region = 196 }
0x1458   :  { %4745 = vsyncpa [#allocation7], 1 }
0x1459   :  { %4747 = vsyncpa [#allocation7 + $0x1], 1 }
0x145a   :  { %4748 = vsyncpa [#allocation10], 1 }
0x145b   :  { %4749 = vsyncpa [#allocation13], 1 }
0x145c   :  { %4750 = vsyncpa [#allocation16], 1 }
0x145d   :  { %4751 = vsyncpa [#allocation19], 1 }
0x145e   :  { %4752 = vsyncpa [#allocation22], 1 }
0x145f   :  { %4753 = vsyncpa [#allocation8], 1 }
0x1460   :  { %4755 = vsyncpa [#allocation8 + $0x1], 1 }

</bundles_post_ra>
